<compile_context>
chip_gen: v7x
topology: tpu7x:2x2x1
jax: 0.10.0
libtpu: 0.0.40
codegen_flags: <defaults>
</compile_context>

<pallas_src>
import functools

import jax
import jax.numpy as jnp
from jax.experimental import pallas as pl
from jax.experimental.pallas import tpu as pltpu

EPS = 1e-5


# ----------------------------- in-kernel helpers ----------------------------

def _bn_train(y, gamma, beta):
    """Training-mode BatchNorm: stats over rows (= N*H*W) per column (= channel), one pass."""
    n = y.shape[0]
    mean = jnp.sum(y, axis=0, keepdims=True) * (1.0 / n)
    msq = jnp.sum(y * y, axis=0, keepdims=True) * (1.0 / n)
    var = jnp.maximum(msq - mean * mean, 0.0)            # biased variance, clamped >= 0
    scale = gamma * jax.lax.rsqrt(var + EPS)
    return y * scale + (beta - mean * scale)


def _maxpool_sel(y, sel):
    """2x2/2 max pool: stacked 0/1 quadrant row-selection matmul + elementwise max."""
    t = jnp.dot(sel, y, preferred_element_type=jnp.float32)   # (4*R, C)
    r = t.shape[0] // 4
    return jnp.maximum(jnp.maximum(t[0:r], t[r:2 * r]),
                       jnp.maximum(t[2 * r:3 * r], t[3 * r:4 * r]))


# ----------------------------- the fused kernel ------------------------------

def net_kernel(batch,
               patches_ref, w1_ref, b1_ref, g1_ref, bt1_ref,
               wb1_ref, bb1_ref, g2_ref, bt2_ref,
               w2_ref, b2_ref,
               sel1_ref, sel2_ref,
               wfc_ref, bfc_ref,
               o_ref):
    # conv1 (5x5, stride 2, pad 2 via im2col) + ReLU + BN1
    y = jnp.dot(patches_ref[...], w1_ref[...],
                preferred_element_type=jnp.float32) + b1_ref[...]
    y = jnp.maximum(y, 0.0)
    y = _bn_train(y, g1_ref[...], bt1_ref[...])               # (B*256, 16)

    # block1: 1x1 conv 16->32 + ReLU + BN2
    y = jnp.dot(y, wb1_ref[...], preferred_element_type=jnp.float32) + bb1_ref[...]
    y = jnp.maximum(y, 0.0)
    y = _bn_train(y, g2_ref[...], bt2_ref[...])               # (B*256, 32)

    # maxpool 16x16 -> 8x8
    y = _maxpool_sel(y, sel1_ref[...])                        # (B*64, 32)

    # block2: 5 x (1x1 conv 32->32 + LeakyReLU(0.1))
    w2 = w2_ref[...]                                          # (5, 32, 32)
    b2 = b2_ref[...]                                          # (5, 1, 32)
    for i in range(5):                                        # static unroll
        z = jnp.dot(y, w2[i], preferred_element_type=jnp.float32) + b2[i]
        y = jnp.where(z >= 0.0, z, 0.1 * z)

    # maxpool 8x8 -> 4x4; rows reordered to (h*4+w)*8 + b so fc slices are 8-aligned
    y = _maxpool_sel(y, sel2_ref[...])                        # (128, 32)

    # fc (NCHW flatten folded into the weight): sum of 16 per-spatial-position matmuls
    wfc = wfc_ref[...]                                        # (16, 32, 10)
    logits8 = jnp.zeros((8, 10), jnp.float32)
    for r in range(16):                                       # static unroll
        logits8 = logits8 + jnp.dot(y[r * 8:(r + 1) * 8, :], wfc[r],
                                    preferred_element_type=jnp.float32)
    logits = logits8[0:batch, :] + bfc_ref[...]               # (B, 10)

    # Softmax(dim=0): over the BATCH axis, exactly as in the PyTorch module
    m = jnp.max(logits, axis=0, keepdims=True)
    e = jnp.exp(logits - m)
    s = jnp.sum(e, axis=0, keepdims=True)
    o_ref[...] = e * pl.reciprocal(s, approx=True)


# ----------------------------- JAX glue / wrapper -----------------------------

def _vmem():
    return pl.BlockSpec(memory_space=pltpu.MemorySpace.VMEM)


def _im2col_conv1(x_nhwc):
    """5x5 conv, stride 2, pad 2 on 32x32 -> [B*256, 128] (features kh,kw,cin; K zero-padded 75->128)."""
    B = x_nhwc.shape[0]
    xp = jnp.pad(x_nhwc, ((0, 0), (2, 2), (2, 2), (0, 0)))
    cols = [xp[:, kh:kh + 31:2, kw:kw + 31:2, :] for kh in range(5) for kw in range(5)]
    patches = jnp.concatenate(cols, axis=-1).reshape(B * 256, 75)
    return jnp.pad(patches, ((0, 0), (0, 128 - 75)))


def _make_pool_selectors(B):
    """Stacked 0/1 quadrant row-selection matrices for the two 2x2/2 max pools (constants)."""
    assert B <= 8, "pool2 row packing assumes batch <= 8"  # TODO(synk): tile batch for larger B
    # pool1: input rows b*256 + h*16 + w  ->  output rows b*64 + ho*8 + wo
    b = jnp.arange(B)[:, None, None]
    ho = jnp.arange(8)[None, :, None]
    wo = jnp.arange(8)[None, None, :]
    out1 = (b * 64 + ho * 8 + wo).reshape(-1)
    blocks = []
    for dh in range(2):
        for dw in range(2):
            in1 = (b * 256 + (2 * ho + dh) * 16 + (2 * wo + dw)).reshape(-1)
            blocks.append(jnp.zeros((B * 64, B * 256), jnp.float32).at[out1, in1].set(1.0))
    sel1 = jnp.concatenate(blocks, axis=0)                    # (4*B*64, B*256)
    # pool2: input rows b*64 + h*8 + w  ->  output rows (ho*4+wo)*8 + b  (b >= B rows stay zero)
    b = jnp.arange(B)[None, None, :]
    ho = jnp.arange(4)[:, None, None]
    wo = jnp.arange(4)[None, :, None]
    out2 = ((ho * 4 + wo) * 8 + b).reshape(-1)
    blocks = []
    for dh in range(2):
        for dw in range(2):
            in2 = (b * 64 + (2 * ho + dh) * 8 + (2 * wo + dw)).reshape(-1)
            blocks.append(jnp.zeros((16 * 8, B * 64), jnp.float32).at[out2, in2].set(1.0))
    sel2 = jnp.concatenate(blocks, axis=0)                    # (512, B*64)
    return sel1, sel2


def make_params(key, batch):
    ks = jax.random.split(key, 8)
    p = {}
    # conv1: 3->16, 5x5  (weight stored as [kh*kw*cin, cout] = [75,16], K zero-padded to 128)
    w1 = jax.random.normal(ks[0], (75, 16), jnp.float32) * 0.05
    p["w1"] = jnp.pad(w1, ((0, 128 - 75), (0, 0)))
    p["b1"] = jax.random.normal(ks[1], (1, 16), jnp.float32) * 0.05
    p["g1"] = jnp.ones((1, 16), jnp.float32)
    p["beta1"] = jnp.zeros((1, 16), jnp.float32)
    # block1: 1x1 conv 16->32 + ReLU + BN
    p["wb1"] = jax.random.normal(ks[2], (16, 32), jnp.float32) * 0.1
    p["bb1"] = jax.random.normal(ks[3], (1, 32), jnp.float32) * 0.05
    p["g2"] = jnp.ones((1, 32), jnp.float32)
    p["beta2"] = jnp.zeros((1, 32), jnp.float32)
    # block2: 5 x (1x1 conv 32->32 + LeakyReLU(0.1))
    p["w_blk2"] = jax.random.normal(ks[4], (5, 32, 32), jnp.float32) * 0.1
    p["b_blk2"] = jax.random.normal(ks[5], (5, 1, 32), jnp.float32) * 0.05
    # fc: Linear(32*4*4=512 -> 10).  Generated in PyTorch x.view(B,-1) row order
    # (idx = c*16 + h*4 + w), then permuted ONCE so the kernel consumes the NHWC-ordered
    # pooled activation without any per-forward transpose.
    w_fc_torch = jax.random.normal(ks[6], (512, 10), jnp.float32) * 0.05
    p["w_fc"] = w_fc_torch.reshape(32, 16, 10).transpose(1, 0, 2)   # (16, 32, 10) = [h*4+w, c, out]
    p["b_fc"] = jax.random.normal(ks[7], (1, 10), jnp.float32) * 0.05
    # pooling selectors (constants, depend only on batch)
    p["sel1"], p["sel2"] = _make_pool_selectors(batch)
    return p


@jax.jit
def net_forward(params, x_nchw):
    B = x_nchw.shape[0]
    x = jnp.transpose(x_nchw, (0, 2, 3, 1)).astype(jnp.float32)    # NCHW -> NHWC [B,32,32,3]
    patches = _im2col_conv1(x)                                      # (B*256, 128)
    args = (patches, params["w1"], params["b1"], params["g1"], params["beta1"],
            params["wb1"], params["bb1"], params["g2"], params["beta2"],
            params["w_blk2"], params["b_blk2"],
            params["sel1"], params["sel2"],
            params["w_fc"], params["b_fc"])
    return pl.pallas_call(
        functools.partial(net_kernel, B),
        out_shape=jax.ShapeDtypeStruct((B, 10), jnp.float32),
        in_specs=[_vmem() for _ in args],
        out_specs=_vmem(),
    )(*args)


if __name__ == "__main__":
    key = jax.random.PRNGKey(0)
    pkey, xkey = jax.random.split(key)
    B = 2
    params = make_params(pkey, B)
    # input implied by the module: fc in = 32*4*4  =>  3x32x32 images (CIFAR-like), batch=2
    x = jax.random.normal(xkey, (B, 3, 32, 32), jnp.float32)
    out = jax.block_until_ready(net_forward(params, x))
    assert out.shape == (B, 10)
    # Softmax(dim=0): each class column sums to ~1 over the batch (approx reciprocal on EUP)
    assert jnp.allclose(jnp.sum(out, axis=0), jnp.ones((10,)), atol=1e-2)
    print("KERNEL_OK")
</pallas_src>

<mosaic_0001>
module attributes {stable_mosaic.version = 11 : i64} {
  func.func @net_kernel(%arg0: memref<512x128xf32, #tpu.memory_space<vmem>>, %arg1: memref<128x16xf32, #tpu.memory_space<vmem>>, %arg2: memref<1x16xf32, #tpu.memory_space<vmem>>, %arg3: memref<1x16xf32, #tpu.memory_space<vmem>>, %arg4: memref<1x16xf32, #tpu.memory_space<vmem>>, %arg5: memref<16x32xf32, #tpu.memory_space<vmem>>, %arg6: memref<1x32xf32, #tpu.memory_space<vmem>>, %arg7: memref<1x32xf32, #tpu.memory_space<vmem>>, %arg8: memref<1x32xf32, #tpu.memory_space<vmem>>, %arg9: memref<5x32x32xf32, #tpu.memory_space<vmem>>, %arg10: memref<5x1x32xf32, #tpu.memory_space<vmem>>, %arg11: memref<512x512xf32, #tpu.memory_space<vmem>>, %arg12: memref<512x128xf32, #tpu.memory_space<vmem>>, %arg13: memref<16x32x10xf32, #tpu.memory_space<vmem>>, %arg14: memref<1x10xf32, #tpu.memory_space<vmem>>, %arg15: memref<2x10xf32, #tpu.memory_space<vmem>>) attributes {dimension_semantics = [], scalar_prefetch = 0 : i64, scratch_operands = 0 : i64, tpu.core_type = #tpu.core_type<tc>} {
    %c0 = arith.constant 0 : index
    %c0_0 = arith.constant 0 : index
    %0 = vector.load %arg0[%c0, %c0_0] : memref<512x128xf32, #tpu.memory_space<vmem>>, vector<512x128xf32>
    %c0_1 = arith.constant 0 : index
    %c0_2 = arith.constant 0 : index
    %1 = vector.load %arg1[%c0_1, %c0_2] : memref<128x16xf32, #tpu.memory_space<vmem>>, vector<128x16xf32>
    %cst = arith.constant dense<0.000000e+00> : vector<512x16xf32>
    %2 = tpu.matmul %0, %1, %cst {dimension_numbers = #tpu.dot_dimension_numbers<[1], [0], [0], [1], [0, 0, 1, 1], [], []>} : vector<512x128xf32>, vector<128x16xf32>, vector<512x16xf32> -> vector<512x16xf32>
    %c0_3 = arith.constant 0 : index
    %c0_4 = arith.constant 0 : index
    %3 = vector.load %arg2[%c0_3, %c0_4] : memref<1x16xf32, #tpu.memory_space<vmem>>, vector<1x16xf32>
    %4 = vector.broadcast %3 : vector<1x16xf32> to vector<512x16xf32>
    %5 = arith.addf %2, %4 : vector<512x16xf32>
    %cst_5 = arith.constant 0.000000e+00 : f32
    %6 = vector.broadcast %cst_5 : f32 to vector<512x16xf32>
    %7 = arith.maximumf %5, %6 : vector<512x16xf32>
    %c0_6 = arith.constant 0 : index
    %c0_7 = arith.constant 0 : index
    %8 = vector.load %arg3[%c0_6, %c0_7] : memref<1x16xf32, #tpu.memory_space<vmem>>, vector<1x16xf32>
    %c0_8 = arith.constant 0 : index
    %c0_9 = arith.constant 0 : index
    %9 = vector.load %arg4[%c0_8, %c0_9] : memref<1x16xf32, #tpu.memory_space<vmem>>, vector<1x16xf32>
    %cst_10 = arith.constant dense<0.000000e+00> : vector<16xf32>
    %10 = vector.multi_reduction <add>, %7, %cst_10 [0] : vector<512x16xf32> to vector<16xf32>
    %11 = vector.shape_cast %10 : vector<16xf32> to vector<1x16xf32>
    %cst_11 = arith.constant 0.001953125 : f32
    %12 = vector.broadcast %cst_11 : f32 to vector<1x16xf32>
    %13 = arith.mulf %11, %12 : vector<1x16xf32>
    %14 = arith.mulf %7, %7 : vector<512x16xf32>
    %cst_12 = arith.constant dense<0.000000e+00> : vector<16xf32>
    %15 = vector.multi_reduction <add>, %14, %cst_12 [0] : vector<512x16xf32> to vector<16xf32>
    %16 = vector.shape_cast %15 : vector<16xf32> to vector<1x16xf32>
    %cst_13 = arith.constant 0.001953125 : f32
    %17 = vector.broadcast %cst_13 : f32 to vector<1x16xf32>
    %18 = arith.mulf %16, %17 : vector<1x16xf32>
    %19 = arith.mulf %13, %13 : vector<1x16xf32>
    %20 = arith.subf %18, %19 : vector<1x16xf32>
    %cst_14 = arith.constant 0.000000e+00 : f32
    %21 = vector.broadcast %cst_14 : f32 to vector<1x16xf32>
    %22 = arith.maximumf %20, %21 : vector<1x16xf32>
    %cst_15 = arith.constant 9.99999974E-6 : f32
    %23 = vector.broadcast %cst_15 : f32 to vector<1x16xf32>
    %24 = arith.addf %22, %23 : vector<1x16xf32>
    %25 = math.rsqrt %24 : vector<1x16xf32>
    %26 = arith.mulf %8, %25 : vector<1x16xf32>
    %27 = vector.broadcast %26 : vector<1x16xf32> to vector<512x16xf32>
    %28 = arith.mulf %7, %27 : vector<512x16xf32>
    %29 = arith.mulf %13, %26 : vector<1x16xf32>
    %30 = arith.subf %9, %29 : vector<1x16xf32>
    %31 = vector.broadcast %30 : vector<1x16xf32> to vector<512x16xf32>
    %32 = arith.addf %28, %31 : vector<512x16xf32>
    %c0_16 = arith.constant 0 : index
    %c0_17 = arith.constant 0 : index
    %33 = vector.load %arg5[%c0_16, %c0_17] : memref<16x32xf32, #tpu.memory_space<vmem>>, vector<16x32xf32>
    %cst_18 = arith.constant dense<0.000000e+00> : vector<512x32xf32>
    %34 = tpu.matmul %32, %33, %cst_18 {dimension_numbers = #tpu.dot_dimension_numbers<[1], [0], [0], [1], [0, 0, 1, 1], [], []>} : vector<512x16xf32>, vector<16x32xf32>, vector<512x32xf32> -> vector<512x32xf32>
    %c0_19 = arith.constant 0 : index
    %c0_20 = arith.constant 0 : index
    %35 = vector.load %arg6[%c0_19, %c0_20] : memref<1x32xf32, #tpu.memory_space<vmem>>, vector<1x32xf32>
    %36 = vector.broadcast %35 : vector<1x32xf32> to vector<512x32xf32>
    %37 = arith.addf %34, %36 : vector<512x32xf32>
    %cst_21 = arith.constant 0.000000e+00 : f32
    %38 = vector.broadcast %cst_21 : f32 to vector<512x32xf32>
    %39 = arith.maximumf %37, %38 : vector<512x32xf32>
    %c0_22 = arith.constant 0 : index
    %c0_23 = arith.constant 0 : index
    %40 = vector.load %arg7[%c0_22, %c0_23] : memref<1x32xf32, #tpu.memory_space<vmem>>, vector<1x32xf32>
    %c0_24 = arith.constant 0 : index
    %c0_25 = arith.constant 0 : index
    %41 = vector.load %arg8[%c0_24, %c0_25] : memref<1x32xf32, #tpu.memory_space<vmem>>, vector<1x32xf32>
    %cst_26 = arith.constant dense<0.000000e+00> : vector<32xf32>
    %42 = vector.multi_reduction <add>, %39, %cst_26 [0] : vector<512x32xf32> to vector<32xf32>
    %43 = vector.shape_cast %42 : vector<32xf32> to vector<1x32xf32>
    %cst_27 = arith.constant 0.001953125 : f32
    %44 = vector.broadcast %cst_27 : f32 to vector<1x32xf32>
    %45 = arith.mulf %43, %44 : vector<1x32xf32>
    %46 = arith.mulf %39, %39 : vector<512x32xf32>
    %cst_28 = arith.constant dense<0.000000e+00> : vector<32xf32>
    %47 = vector.multi_reduction <add>, %46, %cst_28 [0] : vector<512x32xf32> to vector<32xf32>
    %48 = vector.shape_cast %47 : vector<32xf32> to vector<1x32xf32>
    %cst_29 = arith.constant 0.001953125 : f32
    %49 = vector.broadcast %cst_29 : f32 to vector<1x32xf32>
    %50 = arith.mulf %48, %49 : vector<1x32xf32>
    %51 = arith.mulf %45, %45 : vector<1x32xf32>
    %52 = arith.subf %50, %51 : vector<1x32xf32>
    %cst_30 = arith.constant 0.000000e+00 : f32
    %53 = vector.broadcast %cst_30 : f32 to vector<1x32xf32>
    %54 = arith.maximumf %52, %53 : vector<1x32xf32>
    %cst_31 = arith.constant 9.99999974E-6 : f32
    %55 = vector.broadcast %cst_31 : f32 to vector<1x32xf32>
    %56 = arith.addf %54, %55 : vector<1x32xf32>
    %57 = math.rsqrt %56 : vector<1x32xf32>
    %58 = arith.mulf %40, %57 : vector<1x32xf32>
    %59 = vector.broadcast %58 : vector<1x32xf32> to vector<512x32xf32>
    %60 = arith.mulf %39, %59 : vector<512x32xf32>
    %61 = arith.mulf %45, %58 : vector<1x32xf32>
    %62 = arith.subf %41, %61 : vector<1x32xf32>
    %63 = vector.broadcast %62 : vector<1x32xf32> to vector<512x32xf32>
    %64 = arith.addf %60, %63 : vector<512x32xf32>
    %c0_32 = arith.constant 0 : index
    %c0_33 = arith.constant 0 : index
    %65 = vector.load %arg11[%c0_32, %c0_33] : memref<512x512xf32, #tpu.memory_space<vmem>>, vector<512x512xf32>
    %cst_34 = arith.constant dense<0.000000e+00> : vector<512x32xf32>
    %66 = tpu.matmul %65, %64, %cst_34 {dimension_numbers = #tpu.dot_dimension_numbers<[1], [0], [0], [1], [0, 0, 1, 1], [], []>} : vector<512x512xf32>, vector<512x32xf32>, vector<512x32xf32> -> vector<512x32xf32>
    %67 = vector.extract_strided_slice %66 {offsets = [0, 0], sizes = [128, 32], strides = [1, 1]} : vector<512x32xf32> to vector<128x32xf32>
    %68 = vector.extract_strided_slice %66 {offsets = [128, 0], sizes = [128, 32], strides = [1, 1]} : vector<512x32xf32> to vector<128x32xf32>
    %69 = arith.maximumf %67, %68 : vector<128x32xf32>
    %70 = vector.extract_strided_slice %66 {offsets = [256, 0], sizes = [128, 32], strides = [1, 1]} : vector<512x32xf32> to vector<128x32xf32>
    %71 = vector.extract_strided_slice %66 {offsets = [384, 0], sizes = [128, 32], strides = [1, 1]} : vector<512x32xf32> to vector<128x32xf32>
    %72 = arith.maximumf %70, %71 : vector<128x32xf32>
    %73 = arith.maximumf %69, %72 : vector<128x32xf32>
    %c0_35 = arith.constant 0 : index
    %c0_36 = arith.constant 0 : index
    %c0_37 = arith.constant 0 : index
    %74 = vector.load %arg9[%c0_35, %c0_36, %c0_37] : memref<5x32x32xf32, #tpu.memory_space<vmem>>, vector<5x32x32xf32>
    %c0_38 = arith.constant 0 : index
    %c0_39 = arith.constant 0 : index
    %c0_40 = arith.constant 0 : index
    %75 = vector.load %arg10[%c0_38, %c0_39, %c0_40] : memref<5x1x32xf32, #tpu.memory_space<vmem>>, vector<5x1x32xf32>
    %76 = vector.extract_strided_slice %74 {offsets = [0, 0, 0], sizes = [1, 32, 32], strides = [1, 1, 1]} : vector<5x32x32xf32> to vector<1x32x32xf32>
    %77 = vector.shape_cast %76 : vector<1x32x32xf32> to vector<32x32xf32>
    %cst_41 = arith.constant dense<0.000000e+00> : vector<128x32xf32>
    %78 = tpu.matmul %73, %77, %cst_41 {dimension_numbers = #tpu.dot_dimension_numbers<[1], [0], [0], [1], [0, 0, 1, 1], [], []>} : vector<128x32xf32>, vector<32x32xf32>, vector<128x32xf32> -> vector<128x32xf32>
    %79 = vector.extract_strided_slice %75 {offsets = [0, 0, 0], sizes = [1, 1, 32], strides = [1, 1, 1]} : vector<5x1x32xf32> to vector<1x1x32xf32>
    %80 = vector.shape_cast %79 : vector<1x1x32xf32> to vector<1x32xf32>
    %81 = vector.broadcast %80 : vector<1x32xf32> to vector<128x32xf32>
    %82 = arith.addf %78, %81 : vector<128x32xf32>
    %cst_42 = arith.constant 0.000000e+00 : f32
    %83 = vector.broadcast %cst_42 : f32 to vector<128x32xf32>
    %84 = arith.cmpf oge, %82, %83 : vector<128x32xf32>
    %cst_43 = arith.constant 1.000000e-01 : f32
    %85 = vector.broadcast %cst_43 : f32 to vector<128x32xf32>
    %86 = arith.mulf %85, %82 : vector<128x32xf32>
    %87 = arith.select %84, %82, %86 : vector<128x32xi1>, vector<128x32xf32>
    %88 = vector.extract_strided_slice %74 {offsets = [1, 0, 0], sizes = [1, 32, 32], strides = [1, 1, 1]} : vector<5x32x32xf32> to vector<1x32x32xf32>
    %89 = vector.shape_cast %88 : vector<1x32x32xf32> to vector<32x32xf32>
    %cst_44 = arith.constant dense<0.000000e+00> : vector<128x32xf32>
    %90 = tpu.matmul %87, %89, %cst_44 {dimension_numbers = #tpu.dot_dimension_numbers<[1], [0], [0], [1], [0, 0, 1, 1], [], []>} : vector<128x32xf32>, vector<32x32xf32>, vector<128x32xf32> -> vector<128x32xf32>
    %91 = vector.extract_strided_slice %75 {offsets = [1, 0, 0], sizes = [1, 1, 32], strides = [1, 1, 1]} : vector<5x1x32xf32> to vector<1x1x32xf32>
    %92 = vector.shape_cast %91 : vector<1x1x32xf32> to vector<1x32xf32>
    %93 = vector.broadcast %92 : vector<1x32xf32> to vector<128x32xf32>
    %94 = arith.addf %90, %93 : vector<128x32xf32>
    %cst_45 = arith.constant 0.000000e+00 : f32
    %95 = vector.broadcast %cst_45 : f32 to vector<128x32xf32>
    %96 = arith.cmpf oge, %94, %95 : vector<128x32xf32>
    %cst_46 = arith.constant 1.000000e-01 : f32
    %97 = vector.broadcast %cst_46 : f32 to vector<128x32xf32>
    %98 = arith.mulf %97, %94 : vector<128x32xf32>
    %99 = arith.select %96, %94, %98 : vector<128x32xi1>, vector<128x32xf32>
    %100 = vector.extract_strided_slice %74 {offsets = [2, 0, 0], sizes = [1, 32, 32], strides = [1, 1, 1]} : vector<5x32x32xf32> to vector<1x32x32xf32>
    %101 = vector.shape_cast %100 : vector<1x32x32xf32> to vector<32x32xf32>
    %cst_47 = arith.constant dense<0.000000e+00> : vector<128x32xf32>
    %102 = tpu.matmul %99, %101, %cst_47 {dimension_numbers = #tpu.dot_dimension_numbers<[1], [0], [0], [1], [0, 0, 1, 1], [], []>} : vector<128x32xf32>, vector<32x32xf32>, vector<128x32xf32> -> vector<128x32xf32>
    %103 = vector.extract_strided_slice %75 {offsets = [2, 0, 0], sizes = [1, 1, 32], strides = [1, 1, 1]} : vector<5x1x32xf32> to vector<1x1x32xf32>
    %104 = vector.shape_cast %103 : vector<1x1x32xf32> to vector<1x32xf32>
    %105 = vector.broadcast %104 : vector<1x32xf32> to vector<128x32xf32>
    %106 = arith.addf %102, %105 : vector<128x32xf32>
    %cst_48 = arith.constant 0.000000e+00 : f32
    %107 = vector.broadcast %cst_48 : f32 to vector<128x32xf32>
    %108 = arith.cmpf oge, %106, %107 : vector<128x32xf32>
    %cst_49 = arith.constant 1.000000e-01 : f32
    %109 = vector.broadcast %cst_49 : f32 to vector<128x32xf32>
    %110 = arith.mulf %109, %106 : vector<128x32xf32>
    %111 = arith.select %108, %106, %110 : vector<128x32xi1>, vector<128x32xf32>
    %112 = vector.extract_strided_slice %74 {offsets = [3, 0, 0], sizes = [1, 32, 32], strides = [1, 1, 1]} : vector<5x32x32xf32> to vector<1x32x32xf32>
    %113 = vector.shape_cast %112 : vector<1x32x32xf32> to vector<32x32xf32>
    %cst_50 = arith.constant dense<0.000000e+00> : vector<128x32xf32>
    %114 = tpu.matmul %111, %113, %cst_50 {dimension_numbers = #tpu.dot_dimension_numbers<[1], [0], [0], [1], [0, 0, 1, 1], [], []>} : vector<128x32xf32>, vector<32x32xf32>, vector<128x32xf32> -> vector<128x32xf32>
    %115 = vector.extract_strided_slice %75 {offsets = [3, 0, 0], sizes = [1, 1, 32], strides = [1, 1, 1]} : vector<5x1x32xf32> to vector<1x1x32xf32>
    %116 = vector.shape_cast %115 : vector<1x1x32xf32> to vector<1x32xf32>
    %117 = vector.broadcast %116 : vector<1x32xf32> to vector<128x32xf32>
    %118 = arith.addf %114, %117 : vector<128x32xf32>
    %cst_51 = arith.constant 0.000000e+00 : f32
    %119 = vector.broadcast %cst_51 : f32 to vector<128x32xf32>
    %120 = arith.cmpf oge, %118, %119 : vector<128x32xf32>
    %cst_52 = arith.constant 1.000000e-01 : f32
    %121 = vector.broadcast %cst_52 : f32 to vector<128x32xf32>
    %122 = arith.mulf %121, %118 : vector<128x32xf32>
    %123 = arith.select %120, %118, %122 : vector<128x32xi1>, vector<128x32xf32>
    %124 = vector.extract_strided_slice %74 {offsets = [4, 0, 0], sizes = [1, 32, 32], strides = [1, 1, 1]} : vector<5x32x32xf32> to vector<1x32x32xf32>
    %125 = vector.shape_cast %124 : vector<1x32x32xf32> to vector<32x32xf32>
    %cst_53 = arith.constant dense<0.000000e+00> : vector<128x32xf32>
    %126 = tpu.matmul %123, %125, %cst_53 {dimension_numbers = #tpu.dot_dimension_numbers<[1], [0], [0], [1], [0, 0, 1, 1], [], []>} : vector<128x32xf32>, vector<32x32xf32>, vector<128x32xf32> -> vector<128x32xf32>
    %127 = vector.extract_strided_slice %75 {offsets = [4, 0, 0], sizes = [1, 1, 32], strides = [1, 1, 1]} : vector<5x1x32xf32> to vector<1x1x32xf32>
    %128 = vector.shape_cast %127 : vector<1x1x32xf32> to vector<1x32xf32>
    %129 = vector.broadcast %128 : vector<1x32xf32> to vector<128x32xf32>
    %130 = arith.addf %126, %129 : vector<128x32xf32>
    %cst_54 = arith.constant 0.000000e+00 : f32
    %131 = vector.broadcast %cst_54 : f32 to vector<128x32xf32>
    %132 = arith.cmpf oge, %130, %131 : vector<128x32xf32>
    %cst_55 = arith.constant 1.000000e-01 : f32
    %133 = vector.broadcast %cst_55 : f32 to vector<128x32xf32>
    %134 = arith.mulf %133, %130 : vector<128x32xf32>
    %135 = arith.select %132, %130, %134 : vector<128x32xi1>, vector<128x32xf32>
    %c0_56 = arith.constant 0 : index
    %c0_57 = arith.constant 0 : index
    %136 = vector.load %arg12[%c0_56, %c0_57] : memref<512x128xf32, #tpu.memory_space<vmem>>, vector<512x128xf32>
    %cst_58 = arith.constant dense<0.000000e+00> : vector<512x32xf32>
    %137 = tpu.matmul %136, %135, %cst_58 {dimension_numbers = #tpu.dot_dimension_numbers<[1], [0], [0], [1], [0, 0, 1, 1], [], []>} : vector<512x128xf32>, vector<128x32xf32>, vector<512x32xf32> -> vector<512x32xf32>
    %138 = vector.extract_strided_slice %137 {offsets = [0, 0], sizes = [128, 32], strides = [1, 1]} : vector<512x32xf32> to vector<128x32xf32>
    %139 = vector.extract_strided_slice %137 {offsets = [128, 0], sizes = [128, 32], strides = [1, 1]} : vector<512x32xf32> to vector<128x32xf32>
    %140 = arith.maximumf %138, %139 : vector<128x32xf32>
    %141 = vector.extract_strided_slice %137 {offsets = [256, 0], sizes = [128, 32], strides = [1, 1]} : vector<512x32xf32> to vector<128x32xf32>
    %142 = vector.extract_strided_slice %137 {offsets = [384, 0], sizes = [128, 32], strides = [1, 1]} : vector<512x32xf32> to vector<128x32xf32>
    %143 = arith.maximumf %141, %142 : vector<128x32xf32>
    %144 = arith.maximumf %140, %143 : vector<128x32xf32>
    %c0_59 = arith.constant 0 : index
    %c0_60 = arith.constant 0 : index
    %c0_61 = arith.constant 0 : index
    %145 = vector.load %arg13[%c0_59, %c0_60, %c0_61] : memref<16x32x10xf32, #tpu.memory_space<vmem>>, vector<16x32x10xf32>
    %cst_62 = arith.constant 0.000000e+00 : f32
    %146 = vector.broadcast %cst_62 : f32 to vector<8x10xf32>
    %147 = vector.extract_strided_slice %144 {offsets = [0, 0], sizes = [8, 32], strides = [1, 1]} : vector<128x32xf32> to vector<8x32xf32>
    %148 = vector.extract_strided_slice %145 {offsets = [0, 0, 0], sizes = [1, 32, 10], strides = [1, 1, 1]} : vector<16x32x10xf32> to vector<1x32x10xf32>
    %149 = vector.shape_cast %148 : vector<1x32x10xf32> to vector<32x10xf32>
    %cst_63 = arith.constant dense<0.000000e+00> : vector<8x10xf32>
    %150 = tpu.matmul %147, %149, %cst_63 {dimension_numbers = #tpu.dot_dimension_numbers<[1], [0], [0], [1], [0, 0, 1, 1], [], []>} : vector<8x32xf32>, vector<32x10xf32>, vector<8x10xf32> -> vector<8x10xf32>
    %151 = arith.addf %146, %150 : vector<8x10xf32>
    %152 = vector.extract_strided_slice %144 {offsets = [8, 0], sizes = [8, 32], strides = [1, 1]} : vector<128x32xf32> to vector<8x32xf32>
    %153 = vector.extract_strided_slice %145 {offsets = [1, 0, 0], sizes = [1, 32, 10], strides = [1, 1, 1]} : vector<16x32x10xf32> to vector<1x32x10xf32>
    %154 = vector.shape_cast %153 : vector<1x32x10xf32> to vector<32x10xf32>
    %cst_64 = arith.constant dense<0.000000e+00> : vector<8x10xf32>
    %155 = tpu.matmul %152, %154, %cst_64 {dimension_numbers = #tpu.dot_dimension_numbers<[1], [0], [0], [1], [0, 0, 1, 1], [], []>} : vector<8x32xf32>, vector<32x10xf32>, vector<8x10xf32> -> vector<8x10xf32>
    %156 = arith.addf %151, %155 : vector<8x10xf32>
    %157 = vector.extract_strided_slice %144 {offsets = [16, 0], sizes = [8, 32], strides = [1, 1]} : vector<128x32xf32> to vector<8x32xf32>
    %158 = vector.extract_strided_slice %145 {offsets = [2, 0, 0], sizes = [1, 32, 10], strides = [1, 1, 1]} : vector<16x32x10xf32> to vector<1x32x10xf32>
    %159 = vector.shape_cast %158 : vector<1x32x10xf32> to vector<32x10xf32>
    %cst_65 = arith.constant dense<0.000000e+00> : vector<8x10xf32>
    %160 = tpu.matmul %157, %159, %cst_65 {dimension_numbers = #tpu.dot_dimension_numbers<[1], [0], [0], [1], [0, 0, 1, 1], [], []>} : vector<8x32xf32>, vector<32x10xf32>, vector<8x10xf32> -> vector<8x10xf32>
    %161 = arith.addf %156, %160 : vector<8x10xf32>
    %162 = vector.extract_strided_slice %144 {offsets = [24, 0], sizes = [8, 32], strides = [1, 1]} : vector<128x32xf32> to vector<8x32xf32>
    %163 = vector.extract_strided_slice %145 {offsets = [3, 0, 0], sizes = [1, 32, 10], strides = [1, 1, 1]} : vector<16x32x10xf32> to vector<1x32x10xf32>
    %164 = vector.shape_cast %163 : vector<1x32x10xf32> to vector<32x10xf32>
    %cst_66 = arith.constant dense<0.000000e+00> : vector<8x10xf32>
    %165 = tpu.matmul %162, %164, %cst_66 {dimension_numbers = #tpu.dot_dimension_numbers<[1], [0], [0], [1], [0, 0, 1, 1], [], []>} : vector<8x32xf32>, vector<32x10xf32>, vector<8x10xf32> -> vector<8x10xf32>
    %166 = arith.addf %161, %165 : vector<8x10xf32>
    %167 = vector.extract_strided_slice %144 {offsets = [32, 0], sizes = [8, 32], strides = [1, 1]} : vector<128x32xf32> to vector<8x32xf32>
    %168 = vector.extract_strided_slice %145 {offsets = [4, 0, 0], sizes = [1, 32, 10], strides = [1, 1, 1]} : vector<16x32x10xf32> to vector<1x32x10xf32>
    %169 = vector.shape_cast %168 : vector<1x32x10xf32> to vector<32x10xf32>
    %cst_67 = arith.constant dense<0.000000e+00> : vector<8x10xf32>
    %170 = tpu.matmul %167, %169, %cst_67 {dimension_numbers = #tpu.dot_dimension_numbers<[1], [0], [0], [1], [0, 0, 1, 1], [], []>} : vector<8x32xf32>, vector<32x10xf32>, vector<8x10xf32> -> vector<8x10xf32>
    %171 = arith.addf %166, %170 : vector<8x10xf32>
    %172 = vector.extract_strided_slice %144 {offsets = [40, 0], sizes = [8, 32], strides = [1, 1]} : vector<128x32xf32> to vector<8x32xf32>
    %173 = vector.extract_strided_slice %145 {offsets = [5, 0, 0], sizes = [1, 32, 10], strides = [1, 1, 1]} : vector<16x32x10xf32> to vector<1x32x10xf32>
    %174 = vector.shape_cast %173 : vector<1x32x10xf32> to vector<32x10xf32>
    %cst_68 = arith.constant dense<0.000000e+00> : vector<8x10xf32>
    %175 = tpu.matmul %172, %174, %cst_68 {dimension_numbers = #tpu.dot_dimension_numbers<[1], [0], [0], [1], [0, 0, 1, 1], [], []>} : vector<8x32xf32>, vector<32x10xf32>, vector<8x10xf32> -> vector<8x10xf32>
    %176 = arith.addf %171, %175 : vector<8x10xf32>
    %177 = vector.extract_strided_slice %144 {offsets = [48, 0], sizes = [8, 32], strides = [1, 1]} : vector<128x32xf32> to vector<8x32xf32>
    %178 = vector.extract_strided_slice %145 {offsets = [6, 0, 0], sizes = [1, 32, 10], strides = [1, 1, 1]} : vector<16x32x10xf32> to vector<1x32x10xf32>
    %179 = vector.shape_cast %178 : vector<1x32x10xf32> to vector<32x10xf32>
    %cst_69 = arith.constant dense<0.000000e+00> : vector<8x10xf32>
    %180 = tpu.matmul %177, %179, %cst_69 {dimension_numbers = #tpu.dot_dimension_numbers<[1], [0], [0], [1], [0, 0, 1, 1], [], []>} : vector<8x32xf32>, vector<32x10xf32>, vector<8x10xf32> -> vector<8x10xf32>
    %181 = arith.addf %176, %180 : vector<8x10xf32>
    %182 = vector.extract_strided_slice %144 {offsets = [56, 0], sizes = [8, 32], strides = [1, 1]} : vector<128x32xf32> to vector<8x32xf32>
    %183 = vector.extract_strided_slice %145 {offsets = [7, 0, 0], sizes = [1, 32, 10], strides = [1, 1, 1]} : vector<16x32x10xf32> to vector<1x32x10xf32>
    %184 = vector.shape_cast %183 : vector<1x32x10xf32> to vector<32x10xf32>
    %cst_70 = arith.constant dense<0.000000e+00> : vector<8x10xf32>
    %185 = tpu.matmul %182, %184, %cst_70 {dimension_numbers = #tpu.dot_dimension_numbers<[1], [0], [0], [1], [0, 0, 1, 1], [], []>} : vector<8x32xf32>, vector<32x10xf32>, vector<8x10xf32> -> vector<8x10xf32>
    %186 = arith.addf %181, %185 : vector<8x10xf32>
    %187 = vector.extract_strided_slice %144 {offsets = [64, 0], sizes = [8, 32], strides = [1, 1]} : vector<128x32xf32> to vector<8x32xf32>
    %188 = vector.extract_strided_slice %145 {offsets = [8, 0, 0], sizes = [1, 32, 10], strides = [1, 1, 1]} : vector<16x32x10xf32> to vector<1x32x10xf32>
    %189 = vector.shape_cast %188 : vector<1x32x10xf32> to vector<32x10xf32>
    %cst_71 = arith.constant dense<0.000000e+00> : vector<8x10xf32>
    %190 = tpu.matmul %187, %189, %cst_71 {dimension_numbers = #tpu.dot_dimension_numbers<[1], [0], [0], [1], [0, 0, 1, 1], [], []>} : vector<8x32xf32>, vector<32x10xf32>, vector<8x10xf32> -> vector<8x10xf32>
    %191 = arith.addf %186, %190 : vector<8x10xf32>
    %192 = vector.extract_strided_slice %144 {offsets = [72, 0], sizes = [8, 32], strides = [1, 1]} : vector<128x32xf32> to vector<8x32xf32>
    %193 = vector.extract_strided_slice %145 {offsets = [9, 0, 0], sizes = [1, 32, 10], strides = [1, 1, 1]} : vector<16x32x10xf32> to vector<1x32x10xf32>
    %194 = vector.shape_cast %193 : vector<1x32x10xf32> to vector<32x10xf32>
    %cst_72 = arith.constant dense<0.000000e+00> : vector<8x10xf32>
    %195 = tpu.matmul %192, %194, %cst_72 {dimension_numbers = #tpu.dot_dimension_numbers<[1], [0], [0], [1], [0, 0, 1, 1], [], []>} : vector<8x32xf32>, vector<32x10xf32>, vector<8x10xf32> -> vector<8x10xf32>
    %196 = arith.addf %191, %195 : vector<8x10xf32>
    %197 = vector.extract_strided_slice %144 {offsets = [80, 0], sizes = [8, 32], strides = [1, 1]} : vector<128x32xf32> to vector<8x32xf32>
    %198 = vector.extract_strided_slice %145 {offsets = [10, 0, 0], sizes = [1, 32, 10], strides = [1, 1, 1]} : vector<16x32x10xf32> to vector<1x32x10xf32>
    %199 = vector.shape_cast %198 : vector<1x32x10xf32> to vector<32x10xf32>
    %cst_73 = arith.constant dense<0.000000e+00> : vector<8x10xf32>
    %200 = tpu.matmul %197, %199, %cst_73 {dimension_numbers = #tpu.dot_dimension_numbers<[1], [0], [0], [1], [0, 0, 1, 1], [], []>} : vector<8x32xf32>, vector<32x10xf32>, vector<8x10xf32> -> vector<8x10xf32>
    %201 = arith.addf %196, %200 : vector<8x10xf32>
    %202 = vector.extract_strided_slice %144 {offsets = [88, 0], sizes = [8, 32], strides = [1, 1]} : vector<128x32xf32> to vector<8x32xf32>
    %203 = vector.extract_strided_slice %145 {offsets = [11, 0, 0], sizes = [1, 32, 10], strides = [1, 1, 1]} : vector<16x32x10xf32> to vector<1x32x10xf32>
    %204 = vector.shape_cast %203 : vector<1x32x10xf32> to vector<32x10xf32>
    %cst_74 = arith.constant dense<0.000000e+00> : vector<8x10xf32>
    %205 = tpu.matmul %202, %204, %cst_74 {dimension_numbers = #tpu.dot_dimension_numbers<[1], [0], [0], [1], [0, 0, 1, 1], [], []>} : vector<8x32xf32>, vector<32x10xf32>, vector<8x10xf32> -> vector<8x10xf32>
    %206 = arith.addf %201, %205 : vector<8x10xf32>
    %207 = vector.extract_strided_slice %144 {offsets = [96, 0], sizes = [8, 32], strides = [1, 1]} : vector<128x32xf32> to vector<8x32xf32>
    %208 = vector.extract_strided_slice %145 {offsets = [12, 0, 0], sizes = [1, 32, 10], strides = [1, 1, 1]} : vector<16x32x10xf32> to vector<1x32x10xf32>
    %209 = vector.shape_cast %208 : vector<1x32x10xf32> to vector<32x10xf32>
    %cst_75 = arith.constant dense<0.000000e+00> : vector<8x10xf32>
    %210 = tpu.matmul %207, %209, %cst_75 {dimension_numbers = #tpu.dot_dimension_numbers<[1], [0], [0], [1], [0, 0, 1, 1], [], []>} : vector<8x32xf32>, vector<32x10xf32>, vector<8x10xf32> -> vector<8x10xf32>
    %211 = arith.addf %206, %210 : vector<8x10xf32>
    %212 = vector.extract_strided_slice %144 {offsets = [104, 0], sizes = [8, 32], strides = [1, 1]} : vector<128x32xf32> to vector<8x32xf32>
    %213 = vector.extract_strided_slice %145 {offsets = [13, 0, 0], sizes = [1, 32, 10], strides = [1, 1, 1]} : vector<16x32x10xf32> to vector<1x32x10xf32>
    %214 = vector.shape_cast %213 : vector<1x32x10xf32> to vector<32x10xf32>
    %cst_76 = arith.constant dense<0.000000e+00> : vector<8x10xf32>
    %215 = tpu.matmul %212, %214, %cst_76 {dimension_numbers = #tpu.dot_dimension_numbers<[1], [0], [0], [1], [0, 0, 1, 1], [], []>} : vector<8x32xf32>, vector<32x10xf32>, vector<8x10xf32> -> vector<8x10xf32>
    %216 = arith.addf %211, %215 : vector<8x10xf32>
    %217 = vector.extract_strided_slice %144 {offsets = [112, 0], sizes = [8, 32], strides = [1, 1]} : vector<128x32xf32> to vector<8x32xf32>
    %218 = vector.extract_strided_slice %145 {offsets = [14, 0, 0], sizes = [1, 32, 10], strides = [1, 1, 1]} : vector<16x32x10xf32> to vector<1x32x10xf32>
    %219 = vector.shape_cast %218 : vector<1x32x10xf32> to vector<32x10xf32>
    %cst_77 = arith.constant dense<0.000000e+00> : vector<8x10xf32>
    %220 = tpu.matmul %217, %219, %cst_77 {dimension_numbers = #tpu.dot_dimension_numbers<[1], [0], [0], [1], [0, 0, 1, 1], [], []>} : vector<8x32xf32>, vector<32x10xf32>, vector<8x10xf32> -> vector<8x10xf32>
    %221 = arith.addf %216, %220 : vector<8x10xf32>
    %222 = vector.extract_strided_slice %144 {offsets = [120, 0], sizes = [8, 32], strides = [1, 1]} : vector<128x32xf32> to vector<8x32xf32>
    %223 = vector.extract_strided_slice %145 {offsets = [15, 0, 0], sizes = [1, 32, 10], strides = [1, 1, 1]} : vector<16x32x10xf32> to vector<1x32x10xf32>
    %224 = vector.shape_cast %223 : vector<1x32x10xf32> to vector<32x10xf32>
    %cst_78 = arith.constant dense<0.000000e+00> : vector<8x10xf32>
    %225 = tpu.matmul %222, %224, %cst_78 {dimension_numbers = #tpu.dot_dimension_numbers<[1], [0], [0], [1], [0, 0, 1, 1], [], []>} : vector<8x32xf32>, vector<32x10xf32>, vector<8x10xf32> -> vector<8x10xf32>
    %226 = arith.addf %221, %225 : vector<8x10xf32>
    %227 = vector.extract_strided_slice %226 {offsets = [0, 0], sizes = [2, 10], strides = [1, 1]} : vector<8x10xf32> to vector<2x10xf32>
    %c0_79 = arith.constant 0 : index
    %c0_80 = arith.constant 0 : index
    %228 = vector.load %arg14[%c0_79, %c0_80] : memref<1x10xf32, #tpu.memory_space<vmem>>, vector<1x10xf32>
    %229 = vector.broadcast %228 : vector<1x10xf32> to vector<2x10xf32>
    %230 = arith.addf %227, %229 : vector<2x10xf32>
    %cst_81 = arith.constant dense<0xFF800000> : vector<10xf32>
    %231 = vector.multi_reduction <maximumf>, %230, %cst_81 [0] : vector<2x10xf32> to vector<10xf32>
    %232 = vector.shape_cast %231 : vector<10xf32> to vector<1x10xf32>
    %233 = vector.broadcast %232 : vector<1x10xf32> to vector<2x10xf32>
    %234 = arith.subf %230, %233 : vector<2x10xf32>
    %235 = math.exp %234 : vector<2x10xf32>
    %cst_82 = arith.constant dense<0.000000e+00> : vector<10xf32>
    %236 = vector.multi_reduction <add>, %235, %cst_82 [0] : vector<2x10xf32> to vector<10xf32>
    %237 = vector.shape_cast %236 : vector<10xf32> to vector<1x10xf32>
    %238 = tpu.reciprocal %237 {approx = true} : vector<1x10xf32> -> vector<1x10xf32>
    %239 = vector.broadcast %238 : vector<1x10xf32> to vector<2x10xf32>
    %240 = arith.mulf %235, %239 : vector<2x10xf32>
    %c0_83 = arith.constant 0 : index
    %c0_84 = arith.constant 0 : index
    %241 = vector.load %arg15[%c0_83, %c0_84] : memref<2x10xf32, #tpu.memory_space<vmem>>, vector<2x10xf32>
    tpu.vector_store %arg15[%c0_83, %c0_84], %240 {strides = array<i32>} : memref<2x10xf32, #tpu.memory_space<vmem>>, vector<2x10xf32>,
    return
  }
}

</mosaic_0001>

<bundles_post_ra>
// kernel: net_forward.1
= control target key start
LH: loop header
LB: loop body
LE: loop exit
PB: predicated region body
PF: predicated region fallthrough
CT: control target
= control target key end

     0   :  { %s12209_s0 = inlined_call_operand.vmem [shape: f32[512,128], index: 0, kind: input, shape index: {}]   ;;  %s12210_s1 = inlined_call_operand.vmem [shape: f32[128,16], index: 1, kind: input, shape index: {}]   ;;  %s12211_s2 = inlined_call_operand.vmem [shape: f32[1,16], index: 2, kind: input, shape index: {}]   ;;  %s12212_s3 = inlined_call_operand.vmem [shape: f32[1,16], index: 3, kind: input, shape index: {}]   ;;  %s12213_s4 = inlined_call_operand.vmem [shape: f32[1,16], index: 4, kind: input, shape index: {}]   ;;  %s12214_s5 = inlined_call_operand.vmem [shape: f32[16,32], index: 5, kind: input, shape index: {}]   ;;  %s12215_s6 = inlined_call_operand.vmem [shape: f32[1,32], index: 6, kind: input, shape index: {}]   ;;  %s12216_s7 = inlined_call_operand.vmem [shape: f32[1,32], index: 7, kind: input, shape index: {}]   ;;  %s12217_s8 = inlined_call_operand.vmem [shape: f32[1,32], index: 8, kind: input, shape index: {}]   ;;  %s12218_s9 = inlined_call_operand.vmem [shape: f32[5,32,32], index: 9, kind: input, shape index: {}]   ;;  %s12219_s10 = inlined_call_operand.vmem [shape: f32[5,1,32], index: 10, kind: input, shape index: {}]   ;;  %s12220_s11 = inlined_call_operand.vmem [shape: f32[512,512], index: 11, kind: input, shape index: {}]   ;;  %s12221_s12 = inlined_call_operand.vmem [shape: f32[512,128], index: 12, kind: input, shape index: {}]   ;;  %s12222_s13 = inlined_call_operand.vmem [shape: f32[16,32,10], index: 13, kind: input, shape index: {}]   ;;  %s12223_s14 = inlined_call_operand.vmem [shape: f32[1,10], index: 14, kind: input, shape index: {}]   ;;  %s12224_s15 = inlined_call_operand.hbm [shape: f32[2,10], index: 15, kind: output, shape index: {}]  }
   0x1   :  { %v115_v0 = vld [vmem:[%s12210_s1] sm:$0xff]  ;;  %v116_v1 = vld [vmem:[%s12210_s1 + $0x8] sm:$0xff]  ;;  %v117_v2 = vld [vmem:[%s12210_s1 + $0x10] sm:$0xff] }
   0x2   :  { %v7589_v3 = vpack.c.bf16 %v116_v1, %v115_v0  ;;  %v118_v4 = vld [vmem:[%s12210_s1 + $0x18] sm:$0xff]  ;;  %v119_v6 = vld [vmem:[%s12210_s1 + $0x20] sm:$0xff]  ;;  %v120_v7 = vld [vmem:[%s12210_s1 + $0x28] sm:$0xff] }
   0x3   :  { %v7593_v5 = vpack.c.bf16 %v118_v4, %v117_v2  ;;  %v7597_v8 = vpack.c.bf16 %v120_v7, %v119_v6  ;;  %v51_v9 = vld [vmem:[%s12209_s0] sm:$0xff]  ;;  %v121_v10 = vld [vmem:[%s12210_s1 + $0x30] sm:$0xff]  ;;  %v122_v11 = vld [vmem:[%s12210_s1 + $0x38] sm:$0xff] }
   0x4   :  { %7590 = vmatprep.subr.bf16.mxu0 %v7589_v3  ;;  %6929 = vmatprep.mubr.f32.mxu0 %v51_v9  ;;  %v7601_v12 = vpack.c.bf16 %v122_v11, %v121_v10  ;;  %v123_v13 = vld [vmem:[%s12210_s1 + $0x40] sm:$0xff]  ;;  %v124_v14 = vld [vmem:[%s12210_s1 + $0x48] sm:$0xff]  ;;  %v125_v16 = vld [vmem:[%s12210_s1 + $0x50] sm:$0xff] }
   0x5   :  { %7592 = vmatpush3.bf16.msra.mxu0 %v7589_v3  ;;  %v7605_v15 = vpack.c.bf16 %v124_v14, %v123_v13  ;;  %v126_v17 = vld [vmem:[%s12210_s1 + $0x58] sm:$0xff]  ;;  %v127_v19 = vld [vmem:[%s12210_s1 + $0x60] sm:$0xff]  ;;  %v128_v20 = vld [vmem:[%s12210_s1 + $0x68] sm:$0xff] }
   0x6   :  { %7594 = vmatprep.subr.bf16.mxu0 %v7593_v5  ;;  %v7609_v18 = vpack.c.bf16 %v126_v17, %v125_v16  ;;  %v7613_v21 = vpack.c.bf16 %v128_v20, %v127_v19  ;;  %v129_v22 = vld [vmem:[%s12210_s1 + $0x70] sm:$0xff]  ;;  %v130_v23 = vld [vmem:[%s12210_s1 + $0x78] sm:$0xff] }
   0x7   :  { %v7617_v24 = vpack.c.bf16 %v130_v23, %v129_v22 }
   0x9   :  { %7596 = vmatpush3.bf16.msra.mxu0 %v7593_v5 }
   0xa   :  { %7598 = vmatprep.subr.bf16.mxu0 %v7597_v8 }
   0xd   :  { %7600 = vmatpush3.bf16.msra.mxu0 %v7597_v8 }
   0xe   :  { %7602 = vmatprep.subr.bf16.mxu0 %v7601_v12 }
  0x11   :  { %7604 = vmatpush3.bf16.msra.mxu0 %v7601_v12 }
  0x12   :  { %7606 = vmatprep.subr.bf16.mxu0 %v7605_v15 }
  0x15   :  { %7608 = vmatpush3.bf16.msra.mxu0 %v7605_v15 }
  0x16   :  { %7610 = vmatprep.subr.bf16.mxu0 %v7609_v18 }
  0x19   :  { %7612 = vmatpush3.bf16.msra.mxu0 %v7609_v18 }
  0x1a   :  { %7614 = vmatprep.subr.bf16.mxu0 %v7613_v21 }
  0x1b   :  { %20 = vsyncpa [#allocation3], 0  ;;  %v52_v25 = vld [vmem:[%s12209_s0 + $0x8] sm:$0xff]  ;;  %v53_v26 = vld [vmem:[%s12209_s0 + $0x10] sm:$0xff]  ;;  %vm589_vm0 = vcmask 130048   ;;  %vm1722_vm1 = vcmask 261120  }
  0x1c   :  { %v54_v27 = vld [vmem:[%s12209_s0 + $0x18] sm:$0xff]  ;;  %v55_v28 = vld [vmem:[%s12209_s0 + $0x20] sm:$0xff]  ;;  %v56_v29 = vld [vmem:[%s12209_s0 + $0x28] sm:$0xff] }
  0x1d   :  { %7616 = vmatpush3.bf16.msra.mxu0 %v7613_v21  ;;  %v57_v30 = vld [vmem:[%s12209_s0 + $0x30] sm:$0xff]  ;;  %v58_v31 = vld [vmem:[%s12209_s0 + $0x38] sm:$0xff]  ;;  %v59_v32 = vld [vmem:[%s12209_s0 + $0x40] sm:$0xff] }
  0x1e   :  { %7618 = vmatprep.subr.bf16.mxu0 %v7617_v24  ;;  %v60_v33 = vld [vmem:[%s12209_s0 + $0x48] sm:$0xff]  ;;  %v61_v34 = vld [vmem:[%s12209_s0 + $0x50] sm:$0xff]  ;;  %v62_v35 = vld [vmem:[%s12209_s0 + $0x58] sm:$0xff] }
  0x1f   :  { %v63_v36 = vld [vmem:[%s12209_s0 + $0x60] sm:$0xff]  ;;  %v64_v37 = vld [vmem:[%s12209_s0 + $0x68] sm:$0xff]  ;;  %v65_v38 = vld [vmem:[%s12209_s0 + $0x70] sm:$0xff] }
  0x20   :  { %v66_v39 = vld [vmem:[%s12209_s0 + $0x78] sm:$0xff]  ;;  %v67_v40 = vld [vmem:[%s12209_s0 + $0x80] sm:$0xff]  ;;  %v68_v41 = vld [vmem:[%s12209_s0 + $0x88] sm:$0xff] }
  0x21   :  { %7620 = vmatpush3.bf16.msra.mxu0 %v7617_v24  ;;  %v69_v42 = vld [vmem:[%s12209_s0 + $0x90] sm:$0xff]  ;;  %v70_v43 = vld [vmem:[%s12209_s0 + $0x98] sm:$0xff]  ;;  %v71_v44 = vld [vmem:[%s12209_s0 + $0xa0] sm:$0xff] }
  0x22   :  { %v72_v45 = vld [vmem:[%s12209_s0 + $0xa8] sm:$0xff]  ;;  %v73_v46 = vld [vmem:[%s12209_s0 + $0xb0] sm:$0xff]  ;;  %v74_v47 = vld [vmem:[%s12209_s0 + $0xb8] sm:$0xff] }
  0x23   :  { %v75_v48 = vld [vmem:[%s12209_s0 + $0xc0] sm:$0xff]  ;;  %v76_v49 = vld [vmem:[%s12209_s0 + $0xc8] sm:$0xff]  ;;  %v77_v50 = vld [vmem:[%s12209_s0 + $0xd0] sm:$0xff] }
  0x24   :  { %6930 = vmatmul.mubr.f32.vlgmr.msra.gmra.mrb[0].mxu0 %v52_v25  ;;  %v78_v51 = vld [vmem:[%s12209_s0 + $0xd8] sm:$0xff]  ;;  %v79_v52 = vld [vmem:[%s12209_s0 + $0xe0] sm:$0xff]  ;;  %v80_v53 = vld [vmem:[%s12209_s0 + $0xe8] sm:$0xff] }
  0x25   :  { %6932 = vmatprep.mubr.f32.mxu0 %v53_v26  ;;  %v81_v54 = vld [vmem:[%s12209_s0 + $0xf0] sm:$0xff]  ;;  %v82_v55 = vld [vmem:[%s12209_s0 + $0xf8] sm:$0xff]  ;;  %v83_v56 = vld [vmem:[%s12209_s0 + $0x100] sm:$0xff] }
  0x26   :  { %v84_v57 = vld [vmem:[%s12209_s0 + $0x108] sm:$0xff]  ;;  %v85_v58 = vld [vmem:[%s12209_s0 + $0x110] sm:$0xff]  ;;  %v86_v59 = vld [vmem:[%s12209_s0 + $0x118] sm:$0xff] }
  0x27   :  { %v87_v60 = vld [vmem:[%s12209_s0 + $0x120] sm:$0xff]  ;;  %v88_v61 = vld [vmem:[%s12209_s0 + $0x128] sm:$0xff]  ;;  %v89_v62 = vld [vmem:[%s12209_s0 + $0x130] sm:$0xff] }
  0x28   :  { %6933 = vmatmul.mubr.f32.gmra.mrb[2].mxu0 %v54_v27  ;;  %v90_v63 = vld [vmem:[%s12209_s0 + $0x138] sm:$0xff]  ;;  %v91_v0 = vld [vmem:[%s12209_s0 + $0x140] sm:$0xff]  ;;  %v92_v1 = vld [vmem:[%s12209_s0 + $0x148] sm:$0xff] }
  0x29   :  { %6935 = vmatprep.mubr.f32.mxu0 %v55_v28  ;;  %v93_v2 = vld [vmem:[%s12209_s0 + $0x150] sm:$0xff]  ;;  %v94_v3 = vld [vmem:[%s12209_s0 + $0x158] sm:$0xff]  ;;  %v95_v4 = vld [vmem:[%s12209_s0 + $0x160] sm:$0xff] }
  0x2a   :  { %v96_v5 = vld [vmem:[%s12209_s0 + $0x168] sm:$0xff]  ;;  %v97_v6 = vld [vmem:[%s12209_s0 + $0x170] sm:$0xff]  ;;  %v98_v7 = vld [vmem:[%s12209_s0 + $0x178] sm:$0xff] }
  0x2b   :  { %v99_v8 = vld [vmem:[%s12209_s0 + $0x180] sm:$0xff]  ;;  %v100_v9 = vld [vmem:[%s12209_s0 + $0x188] sm:$0xff]  ;;  %v101_v10 = vld [vmem:[%s12209_s0 + $0x190] sm:$0xff] }
  0x2c   :  { %6936 = vmatmul.mubr.f32.gmra.mrb[4].mxu0 %v56_v29  ;;  %v102_v11 = vld [vmem:[%s12209_s0 + $0x198] sm:$0xff]  ;;  %v103_v12 = vld [vmem:[%s12209_s0 + $0x1a0] sm:$0xff]  ;;  %v104_v13 = vld [vmem:[%s12209_s0 + $0x1a8] sm:$0xff] }
  0x2d   :  { %6938 = vmatprep.mubr.f32.mxu0 %v57_v30  ;;  %v105_v14 = vld [vmem:[%s12209_s0 + $0x1b0] sm:$0xff]  ;;  %v106_v15 = vld [vmem:[%s12209_s0 + $0x1b8] sm:$0xff]  ;;  %v107_v16 = vld [vmem:[%s12209_s0 + $0x1c0] sm:$0xff] }
  0x2e   :  { %v108_v17 = vld [vmem:[%s12209_s0 + $0x1c8] sm:$0xff]  ;;  %v109_v18 = vld [vmem:[%s12209_s0 + $0x1d0] sm:$0xff]  ;;  %v110_v19 = vld [vmem:[%s12209_s0 + $0x1d8] sm:$0xff] }
  0x2f   :  { %v111_v20 = vld [vmem:[%s12209_s0 + $0x1e0] sm:$0xff]  ;;  %v112_v21 = vld [vmem:[%s12209_s0 + $0x1e8] sm:$0xff]  ;;  %v113_v22 = vld [vmem:[%s12209_s0 + $0x1f0] sm:$0xff] }
  0x30   :  { %6939 = vmatmul.mubr.f32.gmra.mrb[6].mxu0 %v58_v31  ;;  %v114_v23 = vld [vmem:[%s12209_s0 + $0x1f8] sm:$0xff]  ;;  %v1070_v24 = vld [vmem:[%s12214_s5] sm:$0xff]  ;;  %v1071_v25 = vld [vmem:[%s12214_s5 + $0x8] sm:$0xff] }
  0x31   :  { %6941 = vmatprep.mubr.f32.mxu0 %v59_v32  ;;  %v7621_v26 = vpack.c.bf16 %v1071_v25, %v1070_v24  ;;  %v8388_v27 = vld [vmem:[%s12211_s2] ss:$0 sm:$0xff] }
  0x33   :  { %7622 = vmatprep.subr.bf16.mxu0 %v7621_v26  ;;  %7889 = vmatprep.subr.bf16.mxu1 %v7621_v26 }
  0x34   :  { %6942 = vmatmul.mubr.f32.gmra.mrb[8].mxu0 %v60_v33  ;;  %7890 = vmatpush3.bf16.msra.mxu1 %v7621_v26 }
  0x35   :  { %6944 = vmatprep.mubr.f32.mxu0 %v61_v34  ;;  %7624 = vmatpush3.bf16.msra.mxu0 %v7621_v26 }
  0x38   :  { %6945 = vmatmul.mubr.f32.gmra.mrb[10].mxu0 %v62_v35 }
  0x39   :  { %6947 = vmatprep.mubr.f32.mxu0 %v63_v36 }
  0x3c   :  { %6948 = vmatmul.mubr.f32.gmra.mrb[12].mxu0 %v64_v37 }
  0x3d   :  { %6950 = vmatprep.mubr.f32.mxu0 %v65_v38 }
  0x40   :  { %6951 = vmatmul.mubr.f32.gmra.mrb[14].mxu0 %v66_v39 }
  0x41   :  { %6953 = vmatprep.mubr.f32.mxu0 %v67_v40 }
  0x44   :  { %6954 = vmatmul.mubr.f32.gmra.mrb[16].mxu0 %v68_v41 }
  0x45   :  { %6956 = vmatprep.mubr.f32.mxu0 %v69_v42 }
  0x48   :  { %6957 = vmatmul.mubr.f32.gmra.mrb[18].mxu0 %v70_v43 }
  0x49   :  { %6959 = vmatprep.mubr.f32.mxu0 %v71_v44 }
  0x4c   :  { %6960 = vmatmul.mubr.f32.gmra.mrb[20].mxu0 %v72_v45 }
  0x4d   :  { %6962 = vmatprep.mubr.f32.mxu0 %v73_v46 }
  0x50   :  { %6963 = vmatmul.mubr.f32.gmra.mrb[22].mxu0 %v74_v47 }
  0x51   :  { %6965 = vmatprep.mubr.f32.mxu0 %v75_v48 }
  0x54   :  { %6966 = vmatmul.mubr.f32.gmra.mrb[24].mxu0 %v76_v49 }
  0x55   :  { %6968 = vmatprep.mubr.f32.mxu0 %v77_v50 }
  0x58   :  { %6969 = vmatmul.mubr.f32.gmra.mrb[26].mxu0 %v78_v51 }
  0x59   :  { %6971 = vmatprep.mubr.f32.mxu0 %v79_v52 }
  0x5c   :  { %6972 = vmatmul.mubr.f32.gmra.mrb[28].mxu0 %v80_v53 }
  0x5d   :  { %6974 = vmatprep.mubr.f32.mxu0 %v81_v54 }
  0x60   :  { %6975 = vmatmul.mubr.f32.gmra.mrb[30].mxu0 %v82_v55 }
  0x61   :  { %6977 = vmatprep.mubr.f32.mxu0 %v83_v56 }
  0x64   :  { %6978 = vmatmul.mubr.f32.gmra.mrb[32].mxu0 %v84_v57 }
  0x65   :  { %6980 = vmatprep.mubr.f32.mxu0 %v85_v58 }
  0x68   :  { %6981 = vmatmul.mubr.f32.gmra.mrb[34].mxu0 %v86_v59 }
  0x69   :  { %6983 = vmatprep.mubr.f32.mxu0 %v87_v60 }
  0x6c   :  { %6984 = vmatmul.mubr.f32.gmra.mrb[36].mxu0 %v88_v61 }
  0x6d   :  { %6986 = vmatprep.mubr.f32.mxu0 %v89_v62 }
  0x70   :  { %6987 = vmatmul.mubr.f32.gmra.mrb[38].mxu0 %v90_v63 }
  0x71   :  { %6989 = vmatprep.mubr.f32.mxu0 %v91_v0 }
  0x74   :  { %6990 = vmatmul.mubr.f32.gmra.mrb[40].mxu0 %v92_v1 }
  0x75   :  { %6992 = vmatprep.mubr.f32.mxu0 %v93_v2 }
  0x78   :  { %6993 = vmatmul.mubr.f32.gmra.mrb[42].mxu0 %v94_v3 }
  0x79   :  { %6995 = vmatprep.mubr.f32.mxu0 %v95_v4 }
  0x7c   :  { %6996 = vmatmul.mubr.f32.gmra.mrb[44].mxu0 %v96_v5 }
  0x7d   :  { %6998 = vmatprep.mubr.f32.mxu0 %v97_v6 }
  0x80   :  { %6999 = vmatmul.mubr.f32.gmra.mrb[46].mxu0 %v98_v7 }
  0x81   :  { %7001 = vmatprep.mubr.f32.mxu0 %v99_v8 }
  0x84   :  { %7002 = vmatmul.mubr.f32.gmra.mrb[48].mxu0 %v100_v9 }
  0x85   :  { %7004 = vmatprep.mubr.f32.mxu0 %v101_v10 }
  0x88   :  { %7005 = vmatmul.mubr.f32.gmra.mrb[50].mxu0 %v102_v11 }
  0x89   :  { %7007 = vmatprep.mubr.f32.mxu0 %v103_v12 }
  0x8c   :  { %7008 = vmatmul.mubr.f32.gmra.mrb[52].mxu0 %v104_v13 }
  0x8d   :  { %7010 = vmatprep.mubr.f32.mxu0 %v105_v14 }
  0x90   :  { %7011 = vmatmul.mubr.f32.gmra.mrb[54].mxu0 %v106_v15 }
  0x91   :  { %7013 = vmatprep.mubr.f32.mxu0 %v107_v16 }
  0x94   :  { %7014 = vmatmul.mubr.f32.gmra.mrb[56].mxu0 %v108_v17 }
  0x95   :  { %7016 = vmatprep.mubr.f32.mxu0 %v109_v18 }
  0x98   :  { %7017 = vmatmul.mubr.f32.gmra.mrb[58].mxu0 %v110_v19 }
  0x99   :  { %7019 = vmatprep.mubr.f32.mxu0 %v111_v20 }
  0x9c   :  { %7020 = vmatmul.mubr.f32.gmra.mrb[60].mxu0 %v112_v21 }
  0x9d   :  { %7022 = vmatprep.mubr.f32.mxu0 %v113_v22 }
  0xa0   :  { %7023 = vmatmul.mubr.f32.gmra.mrb[62].mxu0 %v114_v23 }
  0xf7   :  { %v6931_v28 = vpop.f32.mrb[0].mxu0 }
  0xf8   :  { %v210_v29 = vadd.f32 %v6931_v28, %v8388_v27  ;;  %v204_v30 = vpop.f32.mrb[1].mxu0 }
  0xf9   :  { %v205_v31 = vadd.f32 %v8388_v27, %v204_v30 }
  0xfa   :  { %v8392_v32 = vmax.f32 %v210_v29, 0.0 }
  0xfb   :  { %v8394_v33 = vmax.f32 %v205_v31, 0.0  ;;  %v6934_v34 = vpop.f32.mrb[2].mxu0 }
  0xfc   :  { %v725_v35 = vmul.f32 %v8392_v32, %v8392_v32  ;;  %v220_v36 = vadd.f32 %v6934_v34, %v8388_v27  ;;  %v214_v37 = vpop.f32.mrb[3].mxu0  ;;  %v591_v38 = vsel %vm589_vm0, %v8392_v32, 0.0 }
  0xfd   :  { %v590_v39 = vsel %vm589_vm0, %v8394_v33, 0.0  ;;  %v724_v40 = vmul.f32 %v8394_v33, %v8394_v33  ;;  %v215_v41 = vadd.f32 %v8388_v27, %v214_v37 }
  0xfe   :  { %v8406_v42 = vmax.f32 %v220_v36, 0.0  ;;  %v789_v43 = vsel %vm589_vm0, %v725_v35, 0.0  ;;  %v592_v47 = vadd.f32 %v591_v38, %v590_v39 }
  0xff   :  { %v788_v44 = vsel %vm589_vm0, %v724_v40, 0.0  ;;  %v8410_v45 = vmax.f32 %v215_v41, 0.0  ;;  %v6937_v46 = vpop.f32.mrb[4].mxu0 }
 0x100   :  { %v727_v48 = vmul.f32 %v8406_v42, %v8406_v42  ;;  %v230_v49 = vadd.f32 %v6937_v46, %v8388_v27  ;;  %v224_v50 = vpop.f32.mrb[5].mxu0  ;;  %v790_v54 = vadd.f32 %v789_v43, %v788_v44  ;;  %v595_v57 = vsel %vm589_vm0, %v8406_v42, 0.0 }
 0x101   :  { %v593_v51 = vsel %vm589_vm0, %v8410_v45, 0.0  ;;  %v726_v52 = vmul.f32 %v8410_v45, %v8410_v45  ;;  %v225_v53 = vadd.f32 %v8388_v27, %v224_v50 }
 0x102   :  { %v594_v55 = vadd.f32 %v593_v51, %v592_v47  ;;  %v8420_v56 = vmax.f32 %v230_v49, 0.0  ;;  %v793_v61 = vsel %vm589_vm0, %v727_v48, 0.0 }
 0x103   :  { %v791_v58 = vsel %vm589_vm0, %v726_v52, 0.0  ;;  %v8425_v59 = vmax.f32 %v225_v53, 0.0  ;;  %v6940_v60 = vpop.f32.mrb[6].mxu0 }
 0x104   :  { %v596_v62 = vadd.f32 %v595_v57, %v594_v55  ;;  %v792_v63 = vadd.f32 %v791_v58, %v790_v54  ;;  %v729_v0 = vmul.f32 %v8420_v56, %v8420_v56  ;;  %v234_v1 = vpop.f32.mrb[7].mxu0  ;;  %v240_v4 = vadd.f32 %v6940_v60, %v8388_v27 }
 0x105   :  { %v597_v2 = vsel %vm589_vm0, %v8425_v59, 0.0  ;;  %v728_v3 = vmul.f32 %v8425_v59, %v8425_v59  ;;  %v235_v5 = vadd.f32 %v8388_v27, %v234_v1  ;;  %v599_v8 = vsel %vm589_vm0, %v8420_v56, 0.0 }
 0x106   :  { %v794_v6 = vadd.f32 %v793_v61, %v792_v63  ;;  %v598_v7 = vadd.f32 %v597_v2, %v596_v62  ;;  %v8439_v10 = vmax.f32 %v240_v4, 0.0  ;;  %v797_v17 = vsel %vm589_vm0, %v729_v0, 0.0 }
 0x107   :  { %v795_v9 = vsel %vm589_vm0, %v728_v3, 0.0  ;;  %v8441_v11 = vmax.f32 %v235_v5, 0.0  ;;  %v6943_v12 = vpop.f32.mrb[8].mxu0 }
 0x108   :  { %v796_v13 = vadd.f32 %v795_v9, %v794_v6  ;;  %v600_v14 = vadd.f32 %v599_v8, %v598_v7  ;;  %v250_v15 = vadd.f32 %v6943_v12, %v8388_v27  ;;  %v244_v16 = vpop.f32.mrb[9].mxu0  ;;  %v731_v18 = vmul.f32 %v8439_v10, %v8439_v10 }
 0x109   :  { %v601_v19 = vsel %vm589_vm0, %v8441_v11, 0.0  ;;  %v730_v20 = vmul.f32 %v8441_v11, %v8441_v11  ;;  %v245_v24 = vadd.f32 %v8388_v27, %v244_v16  ;;  %v603_v28 = vsel %vm589_vm0, %v8439_v10, 0.0 }
 0x10a   :  { %v602_v21 = vadd.f32 %v601_v19, %v600_v14  ;;  %v798_v22 = vadd.f32 %v797_v17, %v796_v13  ;;  %v8451_v23 = vmax.f32 %v250_v15, 0.0  ;;  %v801_v29 = vsel %vm589_vm0, %v731_v18, 0.0 }
 0x10b   :  { %v799_v25 = vsel %vm589_vm0, %v730_v20, 0.0  ;;  %v6946_v26 = vpop.f32.mrb[10].mxu0  ;;  %v8458_v31 = vmax.f32 %v245_v24, 0.0 }
 0x10c   :  { %v800_v30 = vadd.f32 %v799_v25, %v798_v22  ;;  %v254_v34 = vpop.f32.mrb[11].mxu0  ;;  %v733_v35 = vmul.f32 %v8451_v23, %v8451_v23  ;;  %v604_v36 = vadd.f32 %v603_v28, %v602_v21  ;;  %v260_v37 = vadd.f32 %v6946_v26, %v8388_v27 }
 0x10d   :  { %v255_v38 = vadd.f32 %v8388_v27, %v254_v34  ;;  %v605_v39 = vsel %vm589_vm0, %v8458_v31, 0.0  ;;  %v732_v40 = vmul.f32 %v8458_v31, %v8458_v31  ;;  %v607_v48 = vsel %vm589_vm0, %v8451_v23, 0.0 }
 0x10e   :  { %v802_v41 = vadd.f32 %v801_v29, %v800_v30  ;;  %v606_v43 = vadd.f32 %v605_v39, %v604_v36  ;;  %v8468_v44 = vmax.f32 %v260_v37, 0.0  ;;  %v805_v52 = vsel %vm589_vm0, %v733_v35, 0.0 }
 0x10f   :  { %v8470_v46 = vmax.f32 %v255_v38, 0.0  ;;  %v6949_v47 = vpop.f32.mrb[12].mxu0  ;;  %v803_v49 = vsel %vm589_vm0, %v732_v40, 0.0 }
 0x110   :  { %v270_v50 = vadd.f32 %v6949_v47, %v8388_v27  ;;  %v264_v51 = vpop.f32.mrb[13].mxu0  ;;  %v804_v53 = vadd.f32 %v803_v49, %v802_v41  ;;  %v735_v54 = vmul.f32 %v8468_v44, %v8468_v44  ;;  %v608_v55 = vadd.f32 %v607_v48, %v606_v43 }
 0x111   :  { %v609_v57 = vsel %vm589_vm0, %v8470_v46, 0.0  ;;  %v734_v58 = vmul.f32 %v8470_v46, %v8470_v46  ;;  %v265_v61 = vadd.f32 %v8388_v27, %v264_v51  ;;  %v611_v1 = vsel %vm589_vm0, %v8468_v44, 0.0 }
 0x112   :  { %v8483_v60 = vmax.f32 %v270_v50, 0.0  ;;  %v610_v62 = vadd.f32 %v609_v57, %v608_v55  ;;  %v806_v63 = vadd.f32 %v805_v52, %v804_v53  ;;  %v809_v12 = vsel %vm589_vm0, %v735_v54, 0.0 }
 0x113   :  { %v6952_v0 = vpop.f32.mrb[14].mxu0  ;;  %v807_v2 = vsel %vm589_vm0, %v734_v58, 0.0  ;;  %v8491_v4 = vmax.f32 %v265_v61, 0.0 }
 0x114   :  { %v737_v3 = vmul.f32 %v8483_v60, %v8483_v60  ;;  %v274_v5 = vpop.f32.mrb[15].mxu0  ;;  %v808_v6 = vadd.f32 %v807_v2, %v806_v63  ;;  %v612_v7 = vadd.f32 %v611_v1, %v610_v62  ;;  %v280_v8 = vadd.f32 %v6952_v0, %v8388_v27 }
 0x115   :  { %v275_v9 = vadd.f32 %v8388_v27, %v274_v5  ;;  %v613_v13 = vsel %vm589_vm0, %v8491_v4, 0.0  ;;  %v736_v14 = vmul.f32 %v8491_v4, %v8491_v4  ;;  %v615_v20 = vsel %vm589_vm0, %v8483_v60, 0.0 }
 0x116   :  { %v614_v15 = vadd.f32 %v613_v13, %v612_v7  ;;  %v810_v16 = vadd.f32 %v809_v12, %v808_v6  ;;  %v8500_v17 = vmax.f32 %v280_v8, 0.0  ;;  %v813_v25 = vsel %vm589_vm0, %v737_v3, 0.0 }
 0x117   :  { %v8502_v18 = vmax.f32 %v275_v9, 0.0  ;;  %v6955_v19 = vpop.f32.mrb[16].mxu0  ;;  %v811_v21 = vsel %vm589_vm0, %v736_v14, 0.0 }
 0x118   :  { %v290_v22 = vadd.f32 %v6955_v19, %v8388_v27  ;;  %v284_v24 = vpop.f32.mrb[17].mxu0  ;;  %v812_v26 = vadd.f32 %v811_v21, %v810_v16  ;;  %v739_v28 = vmul.f32 %v8500_v17, %v8500_v17  ;;  %v616_v29 = vadd.f32 %v615_v20, %v614_v15 }
 0x119   :  { %v617_v30 = vsel %vm589_vm0, %v8502_v18, 0.0  ;;  %v738_v34 = vmul.f32 %v8502_v18, %v8502_v18  ;;  %v285_v36 = vadd.f32 %v8388_v27, %v284_v24  ;;  %v619_v40 = vsel %vm589_vm0, %v8500_v17, 0.0 }
 0x11a   :  { %v8515_v35 = vmax.f32 %v290_v22, 0.0  ;;  %v618_v37 = vadd.f32 %v617_v30, %v616_v29  ;;  %v814_v38 = vadd.f32 %v813_v25, %v812_v26  ;;  %v817_v53 = vsel %vm589_vm0, %v739_v28, 0.0 }
 0x11b   :  { %v6958_v39 = vpop.f32.mrb[18].mxu0  ;;  %v815_v41 = vsel %vm589_vm0, %v738_v34, 0.0  ;;  %v8523_v47 = vmax.f32 %v285_v36, 0.0 }
 0x11c   :  { %v741_v43 = vmul.f32 %v8515_v35, %v8515_v35  ;;  %v294_v48 = vpop.f32.mrb[19].mxu0  ;;  %v816_v49 = vadd.f32 %v815_v41, %v814_v38  ;;  %v620_v50 = vadd.f32 %v619_v40, %v618_v37  ;;  %v300_v51 = vadd.f32 %v6958_v39, %v8388_v27 }
 0x11d   :  { %v295_v52 = vadd.f32 %v8388_v27, %v294_v48  ;;  %v621_v54 = vsel %vm589_vm0, %v8523_v47, 0.0  ;;  %v740_v55 = vmul.f32 %v8523_v47, %v8523_v47  ;;  %v623_v0 = vsel %vm589_vm0, %v8515_v35, 0.0 }
 0x11e   :  { %v622_v57 = vadd.f32 %v621_v54, %v620_v50  ;;  %v818_v58 = vadd.f32 %v817_v53, %v816_v49  ;;  %v8532_v61 = vmax.f32 %v300_v51, 0.0  ;;  %v821_v5 = vsel %vm589_vm0, %v741_v43, 0.0 }
 0x11f   :  { %v8534_v62 = vmax.f32 %v295_v52, 0.0  ;;  %v6961_v63 = vpop.f32.mrb[20].mxu0  ;;  %v819_v1 = vsel %vm589_vm0, %v740_v55, 0.0 }
 0x120   :  { %v310_v2 = vadd.f32 %v6961_v63, %v8388_v27  ;;  %v304_v3 = vpop.f32.mrb[21].mxu0  ;;  %v820_v6 = vadd.f32 %v819_v1, %v818_v58  ;;  %v743_v7 = vmul.f32 %v8532_v61, %v8532_v61  ;;  %v624_v8 = vadd.f32 %v623_v0, %v622_v57 }
 0x121   :  { %12273 = vst [vmem:[#allocation5_spill] sm:$0xff] %v8534_v62  ;;  %v625_v9 = vsel %vm589_vm0, %v8534_v62, 0.0  ;;  %v742_v12 = vmul.f32 %v8534_v62, %v8534_v62  ;;  %v305_v14 = vadd.f32 %v8388_v27, %v304_v3  ;;  %v627_v20 = vsel %vm589_vm0, %v8532_v61, 0.0 }
 0x122   :  { %v8547_v13 = vmax.f32 %v310_v2, 0.0  ;;  %v626_v15 = vadd.f32 %v625_v9, %v624_v8  ;;  %v822_v16 = vadd.f32 %v821_v5, %v820_v6  ;;  %v825_v34 = vsel %vm589_vm0, %v743_v7, 0.0 }
 0x123   :  { %v6964_v19 = vpop.f32.mrb[22].mxu0  ;;  %v823_v21 = vsel %vm589_vm0, %v742_v12, 0.0  ;;  %v8555_v24 = vmax.f32 %v305_v14, 0.0 }
 0x124   :  { %v745_v22 = vmul.f32 %v8547_v13, %v8547_v13  ;;  %v314_v25 = vpop.f32.mrb[23].mxu0  ;;  %v824_v26 = vadd.f32 %v823_v21, %v822_v16  ;;  %v628_v28 = vadd.f32 %v627_v20, %v626_v15  ;;  %v320_v29 = vadd.f32 %v6964_v19, %v8388_v27 }
 0x125   :  { %v315_v30 = vadd.f32 %v8388_v27, %v314_v25  ;;  %v629_v36 = vsel %vm589_vm0, %v8555_v24, 0.0  ;;  %v744_v37 = vmul.f32 %v8555_v24, %v8555_v24  ;;  %v631_v48 = vsel %vm589_vm0, %v8547_v13, 0.0 }
 0x126   :  { %v630_v38 = vadd.f32 %v629_v36, %v628_v28  ;;  %v826_v39 = vadd.f32 %v825_v34, %v824_v26  ;;  %v8564_v40 = vmax.f32 %v320_v29, 0.0  ;;  %v829_v52 = vsel %vm589_vm0, %v745_v22, 0.0 }
 0x127   :  { %v8566_v41 = vmax.f32 %v315_v30, 0.0  ;;  %v6967_v43 = vpop.f32.mrb[24].mxu0  ;;  %v827_v49 = vsel %vm589_vm0, %v744_v37, 0.0 }
 0x128   :  { %v330_v50 = vadd.f32 %v6967_v43, %v8388_v27  ;;  %v324_v51 = vpop.f32.mrb[25].mxu0  ;;  %v828_v53 = vadd.f32 %v827_v49, %v826_v39  ;;  %v747_v54 = vmul.f32 %v8564_v40, %v8564_v40  ;;  %v632_v55 = vadd.f32 %v631_v48, %v630_v38 }
 0x129   :  { %v633_v57 = vsel %vm589_vm0, %v8566_v41, 0.0  ;;  %v746_v58 = vmul.f32 %v8566_v41, %v8566_v41  ;;  %v325_v0 = vadd.f32 %v8388_v27, %v324_v51  ;;  %v635_v5 = vsel %vm589_vm0, %v8564_v40, 0.0 }
 0x12a   :  { %v8579_v63 = vmax.f32 %v330_v50, 0.0  ;;  %v634_v1 = vadd.f32 %v633_v57, %v632_v55  ;;  %v830_v2 = vadd.f32 %v829_v52, %v828_v53  ;;  %v833_v19 = vsel %vm589_vm0, %v747_v54, 0.0 }
 0x12b   :  { %v6970_v3 = vpop.f32.mrb[26].mxu0  ;;  %v831_v6 = vsel %vm589_vm0, %v746_v58, 0.0  ;;  %v8587_v8 = vmax.f32 %v325_v0, 0.0 }
 0x12c   :  { %v749_v7 = vmul.f32 %v8579_v63, %v8579_v63  ;;  %v334_v9 = vpop.f32.mrb[27].mxu0  ;;  %v832_v12 = vadd.f32 %v831_v6, %v830_v2  ;;  %v636_v14 = vadd.f32 %v635_v5, %v634_v1  ;;  %v340_v15 = vadd.f32 %v6970_v3, %v8388_v27 }
 0x12d   :  { %v335_v16 = vadd.f32 %v8388_v27, %v334_v9  ;;  %v637_v20 = vsel %vm589_vm0, %v8587_v8, 0.0  ;;  %v748_v21 = vmul.f32 %v8587_v8, %v8587_v8  ;;  %v639_v30 = vsel %vm589_vm0, %v8579_v63, 0.0 }
 0x12e   :  { %v638_v22 = vadd.f32 %v637_v20, %v636_v14  ;;  %v834_v25 = vadd.f32 %v833_v19, %v832_v12  ;;  %v8596_v26 = vmax.f32 %v340_v15, 0.0  ;;  %v837_v38 = vsel %vm589_vm0, %v749_v7, 0.0 }
 0x12f   :  { %v8598_v28 = vmax.f32 %v335_v16, 0.0  ;;  %v6973_v29 = vpop.f32.mrb[28].mxu0  ;;  %v835_v34 = vsel %vm589_vm0, %v748_v21, 0.0 }
 0x130   :  { %v350_v36 = vadd.f32 %v6973_v29, %v8388_v27  ;;  %v344_v37 = vpop.f32.mrb[29].mxu0  ;;  %v836_v39 = vadd.f32 %v835_v34, %v834_v25  ;;  %v751_v43 = vmul.f32 %v8596_v26, %v8596_v26  ;;  %v640_v48 = vadd.f32 %v639_v30, %v638_v22 }
 0x131   :  { %v641_v49 = vsel %vm589_vm0, %v8598_v28, 0.0  ;;  %v750_v50 = vmul.f32 %v8598_v28, %v8598_v28  ;;  %v345_v52 = vadd.f32 %v8388_v27, %v344_v37  ;;  %v643_v57 = vsel %vm589_vm0, %v8596_v26, 0.0 }
 0x132   :  { %v8611_v51 = vmax.f32 %v350_v36, 0.0  ;;  %v642_v53 = vadd.f32 %v641_v49, %v640_v48  ;;  %v838_v54 = vadd.f32 %v837_v38, %v836_v39  ;;  %v841_v9 = vsel %vm589_vm0, %v751_v43, 0.0 }
 0x133   :  { %v6976_v55 = vpop.f32.mrb[30].mxu0  ;;  %v839_v58 = vsel %vm589_vm0, %v750_v50, 0.0  ;;  %v8619_v1 = vmax.f32 %v345_v52, 0.0 }
 0x134   :  { %v753_v0 = vmul.f32 %v8611_v51, %v8611_v51  ;;  %v354_v2 = vpop.f32.mrb[31].mxu0  ;;  %v840_v3 = vadd.f32 %v839_v58, %v838_v54  ;;  %v644_v5 = vadd.f32 %v643_v57, %v642_v53  ;;  %v360_v6 = vadd.f32 %v6976_v55, %v8388_v27 }
 0x135   :  { %v355_v7 = vadd.f32 %v8388_v27, %v354_v2  ;;  %v645_v12 = vsel %vm589_vm0, %v8619_v1, 0.0  ;;  %v752_v14 = vmul.f32 %v8619_v1, %v8619_v1  ;;  %v647_v22 = vsel %vm589_vm0, %v8611_v51, 0.0 }
 0x136   :  { %v646_v15 = vadd.f32 %v645_v12, %v644_v5  ;;  %v842_v16 = vadd.f32 %v841_v9, %v840_v3  ;;  %v8628_v19 = vmax.f32 %v360_v6, 0.0  ;;  %v845_v34 = vsel %vm589_vm0, %v753_v0, 0.0 }
 0x137   :  { %v8630_v20 = vmax.f32 %v355_v7, 0.0  ;;  %v6979_v21 = vpop.f32.mrb[32].mxu0  ;;  %v843_v25 = vsel %vm589_vm0, %v752_v14, 0.0 }
 0x138   :  { %v370_v29 = vadd.f32 %v6979_v21, %v8388_v27  ;;  %v364_v30 = vpop.f32.mrb[33].mxu0  ;;  %v844_v36 = vadd.f32 %v843_v25, %v842_v16  ;;  %v755_v37 = vmul.f32 %v8628_v19, %v8628_v19  ;;  %v648_v38 = vadd.f32 %v647_v22, %v646_v15 }
 0x139   :  { %v649_v39 = vsel %vm589_vm0, %v8630_v20, 0.0  ;;  %v754_v43 = vmul.f32 %v8630_v20, %v8630_v20  ;;  %v365_v49 = vadd.f32 %v8388_v27, %v364_v30  ;;  %v651_v54 = vsel %vm589_vm0, %v8628_v19, 0.0 }
 0x13a   :  { %v8643_v48 = vmax.f32 %v370_v29, 0.0  ;;  %v650_v50 = vadd.f32 %v649_v39, %v648_v38  ;;  %v846_v52 = vadd.f32 %v845_v34, %v844_v36  ;;  %v849_v7 = vsel %vm589_vm0, %v755_v37, 0.0 }
 0x13b   :  { %v6982_v53 = vpop.f32.mrb[34].mxu0  ;;  %v847_v55 = vsel %vm589_vm0, %v754_v43, 0.0  ;;  %v8651_v58 = vmax.f32 %v365_v49, 0.0 }
 0x13c   :  { %v757_v57 = vmul.f32 %v8643_v48, %v8643_v48  ;;  %v374_v0 = vpop.f32.mrb[35].mxu0  ;;  %v848_v2 = vadd.f32 %v847_v55, %v846_v52  ;;  %v652_v3 = vadd.f32 %v651_v54, %v650_v50  ;;  %v380_v5 = vadd.f32 %v6982_v53, %v8388_v27 }
 0x13d   :  { %v375_v6 = vadd.f32 %v8388_v27, %v374_v0  ;;  %v653_v9 = vsel %vm589_vm0, %v8651_v58, 0.0  ;;  %v756_v12 = vmul.f32 %v8651_v58, %v8651_v58  ;;  %v655_v25 = vsel %vm589_vm0, %v8643_v48, 0.0 }
 0x13e   :  { %v654_v14 = vadd.f32 %v653_v9, %v652_v3  ;;  %v850_v15 = vadd.f32 %v849_v7, %v848_v2  ;;  %v8660_v16 = vmax.f32 %v380_v5, 0.0  ;;  %v853_v36 = vsel %vm589_vm0, %v757_v57, 0.0 }
 0x13f   :  { %v8662_v21 = vmax.f32 %v375_v6, 0.0  ;;  %v6985_v22 = vpop.f32.mrb[36].mxu0  ;;  %v851_v29 = vsel %vm589_vm0, %v756_v12, 0.0 }
 0x140   :  { %v390_v30 = vadd.f32 %v6985_v22, %v8388_v27  ;;  %v384_v34 = vpop.f32.mrb[37].mxu0  ;;  %v852_v37 = vadd.f32 %v851_v29, %v850_v15  ;;  %v759_v38 = vmul.f32 %v8660_v16, %v8660_v16  ;;  %v656_v39 = vadd.f32 %v655_v25, %v654_v14 }
 0x141   :  { %v657_v43 = vsel %vm589_vm0, %v8662_v21, 0.0  ;;  %v758_v49 = vmul.f32 %v8662_v21, %v8662_v21  ;;  %v385_v52 = vadd.f32 %v8388_v27, %v384_v34  ;;  %v659_v57 = vsel %vm589_vm0, %v8660_v16, 0.0 }
 0x142   :  { %v8675_v50 = vmax.f32 %v390_v30, 0.0  ;;  %v658_v53 = vadd.f32 %v657_v43, %v656_v39  ;;  %v854_v54 = vadd.f32 %v853_v36, %v852_v37  ;;  %v857_v14 = vsel %vm589_vm0, %v759_v38, 0.0 }
 0x143   :  { %v6988_v55 = vpop.f32.mrb[38].mxu0  ;;  %v855_v0 = vsel %vm589_vm0, %v758_v49, 0.0  ;;  %v8683_v3 = vmax.f32 %v385_v52, 0.0 }
 0x144   :  { %v761_v2 = vmul.f32 %v8675_v50, %v8675_v50  ;;  %v394_v5 = vpop.f32.mrb[39].mxu0  ;;  %v856_v6 = vadd.f32 %v855_v0, %v854_v54  ;;  %v660_v7 = vadd.f32 %v659_v57, %v658_v53  ;;  %v400_v9 = vadd.f32 %v6988_v55, %v8388_v27 }
 0x145   :  { %v395_v12 = vadd.f32 %v8388_v27, %v394_v5  ;;  %v661_v15 = vsel %vm589_vm0, %v8683_v3, 0.0  ;;  %v760_v22 = vmul.f32 %v8683_v3, %v8683_v3  ;;  %v663_v37 = vsel %vm589_vm0, %v8675_v50, 0.0 }
 0x146   :  { %v662_v25 = vadd.f32 %v661_v15, %v660_v7  ;;  %v858_v29 = vadd.f32 %v857_v14, %v856_v6  ;;  %v8692_v30 = vmax.f32 %v400_v9, 0.0  ;;  %v861_v49 = vsel %vm589_vm0, %v761_v2, 0.0 }
 0x147   :  { %v8694_v34 = vmax.f32 %v395_v12, 0.0  ;;  %v6991_v36 = vpop.f32.mrb[40].mxu0  ;;  %v859_v39 = vsel %vm589_vm0, %v760_v22, 0.0 }
 0x148   :  { %v410_v38 = vadd.f32 %v6991_v36, %v8388_v27  ;;  %v404_v43 = vpop.f32.mrb[41].mxu0  ;;  %v860_v52 = vadd.f32 %v859_v39, %v858_v29  ;;  %v763_v53 = vmul.f32 %v8692_v30, %v8692_v30  ;;  %v664_v54 = vadd.f32 %v663_v37, %v662_v25 }
 0x149   :  { %v665_v55 = vsel %vm589_vm0, %v8694_v34, 0.0  ;;  %v762_v57 = vmul.f32 %v8694_v34, %v8694_v34  ;;  %v405_v5 = vadd.f32 %v8388_v27, %v404_v43  ;;  %v667_v2 = vsel %vm589_vm0, %v8692_v30, 0.0 }
 0x14a   :  { %v8707_v0 = vmax.f32 %v410_v38, 0.0  ;;  %v666_v6 = vadd.f32 %v665_v55, %v664_v54  ;;  %v862_v7 = vadd.f32 %v861_v49, %v860_v52  ;;  %v865_v39 = vsel %vm589_vm0, %v763_v53, 0.0 }
 0x14b   :  { %v6994_v9 = vpop.f32.mrb[42].mxu0  ;;  %v863_v12 = vsel %vm589_vm0, %v762_v57, 0.0  ;;  %v8715_v15 = vmax.f32 %v405_v5, 0.0 }
 0x14c   :  { %12274 = vst [vmem:[#allocation6_spill] sm:$0xff] %v8707_v0  ;;  %v765_v14 = vmul.f32 %v8707_v0, %v8707_v0  ;;  %v414_v22 = vpop.f32.mrb[43].mxu0  ;;  %v864_v25 = vadd.f32 %v863_v12, %v862_v7  ;;  %v668_v29 = vadd.f32 %v667_v2, %v666_v6  ;;  %v420_v36 = vadd.f32 %v6994_v9, %v8388_v27 }
 0x14d   :  { %12275 = vst [vmem:[#allocation7_spill] sm:$0xff] %v8715_v15  ;;  %v415_v37 = vadd.f32 %v8388_v27, %v414_v22  ;;  %v669_v38 = vsel %vm589_vm0, %v8715_v15, 0.0  ;;  %v764_v43 = vmul.f32 %v8715_v15, %v8715_v15  ;;  %v671_v5 = vsel %vm589_vm0, %v8707_v0, 0.0 }
 0x14e   :  { %v670_v49 = vadd.f32 %v669_v38, %v668_v29  ;;  %v866_v52 = vadd.f32 %v865_v39, %v864_v25  ;;  %v8724_v54 = vmax.f32 %v420_v36, 0.0  ;;  %v869_v9 = vsel %vm589_vm0, %v765_v14, 0.0 }
 0x14f   :  { %v8726_v55 = vmax.f32 %v415_v37, 0.0  ;;  %v6997_v57 = vpop.f32.mrb[44].mxu0  ;;  %v867_v6 = vsel %vm589_vm0, %v764_v43, 0.0 }
 0x150   :  { %12276 = vst [vmem:[#allocation8_spill] sm:$0xff] %v8724_v54  ;;  %v430_v53 = vadd.f32 %v6997_v57, %v8388_v27  ;;  %v424_v7 = vpop.f32.mrb[45].mxu0  ;;  %v868_v2 = vadd.f32 %v867_v6, %v866_v52  ;;  %v767_v12 = vmul.f32 %v8724_v54, %v8724_v54  ;;  %v672_v22 = vadd.f32 %v671_v5, %v670_v49 }
 0x151   :  { %12277 = vst [vmem:[#allocation9_spill] sm:$0xff] %v8726_v55  ;;  %v673_v25 = vsel %vm589_vm0, %v8726_v55, 0.0  ;;  %v766_v29 = vmul.f32 %v8726_v55, %v8726_v55  ;;  %v425_v37 = vadd.f32 %v8388_v27, %v424_v7  ;;  %v675_v14 = vsel %vm589_vm0, %v8724_v54, 0.0 }
 0x152   :  { %v8739_v36 = vmax.f32 %v430_v53, 0.0  ;;  %v674_v39 = vadd.f32 %v673_v25, %v672_v22  ;;  %v870_v38 = vadd.f32 %v869_v9, %v868_v2  ;;  %v873_v9 = vsel %vm589_vm0, %v767_v12, 0.0 }
 0x153   :  { %v7000_v43 = vpop.f32.mrb[46].mxu0  ;;  %v871_v52 = vsel %vm589_vm0, %v766_v29, 0.0  ;;  %v8747_v57 = vmax.f32 %v425_v37, 0.0 }
 0x154   :  { %12278 = vst [vmem:[#allocation10_spill] sm:$0xff] %v8739_v36  ;;  %v769_v49 = vmul.f32 %v8739_v36, %v8739_v36  ;;  %v434_v5 = vpop.f32.mrb[47].mxu0  ;;  %v872_v6 = vadd.f32 %v871_v52, %v870_v38  ;;  %v676_v62 = vadd.f32 %v675_v14, %v674_v39  ;;  %v440_v53 = vadd.f32 %v7000_v43, %v8388_v27 }
 0x155   :  { %12279 = vst [vmem:[#allocation11_spill] sm:$0xff] %v8747_v57  ;;  %v435_v7 = vadd.f32 %v8388_v27, %v434_v5  ;;  %v677_v2 = vsel %vm589_vm0, %v8747_v57, 0.0  ;;  %v768_v22 = vmul.f32 %v8747_v57, %v8747_v57  ;;  %v679_v39 = vsel %vm589_vm0, %v8739_v36, 0.0 }
 0x156   :  { %v678_v25 = vadd.f32 %v677_v2, %v676_v62  ;;  %v874_v29 = vadd.f32 %v873_v9, %v872_v6  ;;  %v8756_v54 = vmax.f32 %v440_v53, 0.0  ;;  %v877_v52 = vsel %vm589_vm0, %v769_v49, 0.0 }
 0x157   :  { %v8758_v37 = vmax.f32 %v435_v7, 0.0  ;;  %v7003_v38 = vpop.f32.mrb[48].mxu0  ;;  %v875_v43 = vsel %vm589_vm0, %v768_v22, 0.0 }
 0x158   :  { %12280 = vst [vmem:[#allocation12_spill] sm:$0xff] %v8756_v54  ;;  %v450_v12 = vadd.f32 %v7003_v38, %v8388_v27  ;;  %v444_v14 = vpop.f32.mrb[49].mxu0  ;;  %v876_v5 = vadd.f32 %v875_v43, %v874_v29  ;;  %v771_v62 = vmul.f32 %v8756_v54, %v8756_v54  ;;  %v680_v6 = vadd.f32 %v679_v39, %v678_v25 }
 0x159   :  { %12281 = vst [vmem:[#allocation13_spill] sm:$0xff] %v8758_v37  ;;  %v681_v53 = vsel %vm589_vm0, %v8758_v37, 0.0  ;;  %v770_v7 = vmul.f32 %v8758_v37, %v8758_v37  ;;  %v445_v2 = vadd.f32 %v8388_v27, %v444_v14  ;;  %v683_v49 = vsel %vm589_vm0, %v8756_v54, 0.0 }
 0x15a   :  { %v8771_v9 = vmax.f32 %v450_v12, 0.0  ;;  %v682_v22 = vadd.f32 %v681_v53, %v680_v6  ;;  %v878_v38 = vadd.f32 %v877_v52, %v876_v5  ;;  %v881_v52 = vsel %vm589_vm0, %v771_v62, 0.0 }
 0x15b   :  { %v7006_v36 = vpop.f32.mrb[50].mxu0  ;;  %v879_v29 = vsel %vm589_vm0, %v770_v7, 0.0  ;;  %v8779_v39 = vmax.f32 %v445_v2, 0.0 }
 0x15c   :  { %12282 = vst [vmem:[#allocation14_spill] sm:$0xff] %v8771_v9  ;;  %v773_v25 = vmul.f32 %v8771_v9, %v8771_v9  ;;  %v454_v43 = vpop.f32.mrb[51].mxu0  ;;  %v880_v57 = vadd.f32 %v879_v29, %v878_v38  ;;  %v684_v37 = vadd.f32 %v683_v49, %v682_v22  ;;  %v460_v12 = vadd.f32 %v7006_v36, %v8388_v27 }
 0x15d   :  { %12283 = vst [vmem:[#allocation15_spill] sm:$0xff] %v8779_v39  ;;  %v455_v14 = vadd.f32 %v8388_v27, %v454_v43  ;;  %v685_v5 = vsel %vm589_vm0, %v8779_v39, 0.0  ;;  %v772_v6 = vmul.f32 %v8779_v39, %v8779_v39  ;;  %v687_v36 = vsel %vm589_vm0, %v8771_v9, 0.0 }
 0x15e   :  { %v686_v53 = vadd.f32 %v685_v5, %v684_v37  ;;  %v882_v7 = vadd.f32 %v881_v52, %v880_v57  ;;  %v8788_v54 = vmax.f32 %v460_v12, 0.0  ;;  %v885_v29 = vsel %vm589_vm0, %v773_v25, 0.0 }
 0x15f   :  { %v8790_v2 = vmax.f32 %v455_v14, 0.0  ;;  %v7009_v38 = vpop.f32.mrb[52].mxu0  ;;  %v883_v22 = vsel %vm589_vm0, %v772_v6, 0.0 }
 0x160   :  { %12284 = vst [vmem:[#allocation16_spill] sm:$0xff] %v8788_v54  ;;  %v470_v62 = vadd.f32 %v7009_v38, %v8388_v27  ;;  %v464_v49 = vpop.f32.mrb[53].mxu0  ;;  %v884_v43 = vadd.f32 %v883_v22, %v882_v7  ;;  %v775_v37 = vmul.f32 %v8788_v54, %v8788_v54  ;;  %v688_v57 = vadd.f32 %v687_v36, %v686_v53 }
 0x161   :  { %12285 = vst [vmem:[#allocation17_spill] sm:$0xff] %v8790_v2  ;;  %v689_v12 = vsel %vm589_vm0, %v8790_v2, 0.0  ;;  %v774_v14 = vmul.f32 %v8790_v2, %v8790_v2  ;;  %v465_v5 = vadd.f32 %v8388_v27, %v464_v49  ;;  %v691_v25 = vsel %vm589_vm0, %v8788_v54, 0.0 }
 0x162   :  { %v8803_v52 = vmax.f32 %v470_v62, 0.0  ;;  %v690_v6 = vadd.f32 %v689_v12, %v688_v57  ;;  %v886_v38 = vadd.f32 %v885_v29, %v884_v43  ;;  %v889_v29 = vsel %vm589_vm0, %v775_v37, 0.0 }
 0x163   :  { %v7012_v9 = vpop.f32.mrb[54].mxu0  ;;  %v887_v7 = vsel %vm589_vm0, %v774_v14, 0.0  ;;  %v8811_v36 = vmax.f32 %v465_v5, 0.0 }
 0x164   :  { %12286 = vst [vmem:[#allocation18_spill] sm:$0xff] %v8803_v52  ;;  %v777_v53 = vmul.f32 %v8803_v52, %v8803_v52  ;;  %v474_v22 = vpop.f32.mrb[55].mxu0  ;;  %v888_v39 = vadd.f32 %v887_v7, %v886_v38  ;;  %v692_v2 = vadd.f32 %v691_v25, %v690_v6  ;;  %v480_v62 = vadd.f32 %v7012_v9, %v8388_v27 }
 0x165   :  { %12287 = vst [vmem:[#allocation19_spill] sm:$0xff] %v8811_v36  ;;  %v475_v49 = vadd.f32 %v8388_v27, %v474_v22  ;;  %v693_v43 = vsel %vm589_vm0, %v8811_v36, 0.0  ;;  %v776_v57 = vmul.f32 %v8811_v36, %v8811_v36  ;;  %v695_v9 = vsel %vm589_vm0, %v8803_v52, 0.0 }
 0x166   :  { %v694_v12 = vadd.f32 %v693_v43, %v692_v2  ;;  %v890_v14 = vadd.f32 %v889_v29, %v888_v39  ;;  %v8820_v54 = vmax.f32 %v480_v62, 0.0  ;;  %v893_v7 = vsel %vm589_vm0, %v777_v53, 0.0 }
 0x167   :  { %v8822_v5 = vmax.f32 %v475_v49, 0.0  ;;  %v7015_v38 = vpop.f32.mrb[56].mxu0  ;;  %v891_v6 = vsel %vm589_vm0, %v776_v57, 0.0 }
 0x168   :  { %12288 = vst [vmem:[#allocation20_spill] sm:$0xff] %v8820_v54  ;;  %v490_v37 = vadd.f32 %v7015_v38, %v8388_v27  ;;  %v484_v25 = vpop.f32.mrb[57].mxu0  ;;  %v892_v22 = vadd.f32 %v891_v6, %v890_v14  ;;  %v779_v2 = vmul.f32 %v8820_v54, %v8820_v54  ;;  %v696_v39 = vadd.f32 %v695_v9, %v694_v12 }
 0x169   :  { %12289 = vst [vmem:[#allocation21_spill] sm:$0xff] %v8822_v5  ;;  %v697_v62 = vsel %vm589_vm0, %v8822_v5, 0.0  ;;  %v778_v49 = vmul.f32 %v8822_v5, %v8822_v5  ;;  %v485_v43 = vadd.f32 %v8388_v27, %v484_v25  ;;  %v699_v53 = vsel %vm589_vm0, %v8820_v54, 0.0 }
 0x16a   :  { %v8835_v29 = vmax.f32 %v490_v37, 0.0  ;;  %v698_v57 = vadd.f32 %v697_v62, %v696_v39  ;;  %v894_v38 = vadd.f32 %v893_v7, %v892_v22  ;;  %v897_v7 = vsel %vm589_vm0, %v779_v2, 0.0 }
 0x16b   :  { %v7018_v52 = vpop.f32.mrb[58].mxu0  ;;  %v895_v14 = vsel %vm589_vm0, %v778_v49, 0.0  ;;  %v8843_v9 = vmax.f32 %v485_v43, 0.0 }
 0x16c   :  { %12290 = vst [vmem:[#allocation22_spill] sm:$0xff] %v8835_v29  ;;  %v781_v12 = vmul.f32 %v8835_v29, %v8835_v29  ;;  %v494_v6 = vpop.f32.mrb[59].mxu0  ;;  %v896_v36 = vadd.f32 %v895_v14, %v894_v38  ;;  %v700_v5 = vadd.f32 %v699_v53, %v698_v57  ;;  %v500_v37 = vadd.f32 %v7018_v52, %v8388_v27 }
 0x16d   :  { %12291 = vst [vmem:[#allocation23_spill] sm:$0xff] %v8843_v9  ;;  %v495_v25 = vadd.f32 %v8388_v27, %v494_v6  ;;  %v701_v22 = vsel %vm589_vm0, %v8843_v9, 0.0  ;;  %v780_v39 = vmul.f32 %v8843_v9, %v8843_v9  ;;  %v703_v52 = vsel %vm589_vm0, %v8835_v29, 0.0 }
 0x16e   :  { %v702_v62 = vadd.f32 %v701_v22, %v700_v5  ;;  %v898_v49 = vadd.f32 %v897_v7, %v896_v36  ;;  %v8852_v54 = vmax.f32 %v500_v37, 0.0  ;;  %v901_v14 = vsel %vm589_vm0, %v781_v12, 0.0 }
 0x16f   :  { %v8854_v43 = vmax.f32 %v495_v25, 0.0  ;;  %v7021_v38 = vpop.f32.mrb[60].mxu0  ;;  %v899_v57 = vsel %vm589_vm0, %v780_v39, 0.0 }
 0x170   :  { %12292 = vst [vmem:[#allocation24_spill] sm:$0xff] %v8852_v54  ;;  %v510_v2 = vadd.f32 %v7021_v38, %v8388_v27  ;;  %v504_v53 = vpop.f32.mrb[61].mxu0  ;;  %v900_v6 = vadd.f32 %v899_v57, %v898_v49  ;;  %v783_v5 = vmul.f32 %v8852_v54, %v8852_v54  ;;  %v704_v36 = vadd.f32 %v703_v52, %v702_v62 }
 0x171   :  { %12293 = vst [vmem:[#allocation25_spill] sm:$0xff] %v8854_v43  ;;  %v705_v37 = vsel %vm589_vm0, %v8854_v43, 0.0  ;;  %v782_v25 = vmul.f32 %v8854_v43, %v8854_v43  ;;  %v505_v22 = vadd.f32 %v8388_v27, %v504_v53  ;;  %v707_v12 = vsel %vm589_vm0, %v8852_v54, 0.0 }
 0x172   :  { %v8867_v7 = vmax.f32 %v510_v2, 0.0  ;;  %v706_v39 = vadd.f32 %v705_v37, %v704_v36  ;;  %v902_v38 = vadd.f32 %v901_v14, %v900_v6  ;;  %v905_v43 = vsel %vm589_vm0, %v783_v5, 0.0 }
 0x173   :  { %v7024_v29 = vpop.f32.mrb[62].mxu0  ;;  %v903_v49 = vsel %vm589_vm0, %v782_v25, 0.0  ;;  %v8873_v57 = vmax.f32 %v505_v22, 0.0 }
 0x174   :  { %12294 = vst [vmem:[#allocation26_spill] sm:$0xff] %v8867_v7  ;;  %v514_v62 = vpop.f32.mrb[63].mxu0  ;;  %v904_v52 = vadd.f32 %v903_v49, %v902_v38  ;;  %v708_v9 = vadd.f32 %v707_v12, %v706_v39  ;;  %v520_v55 = vadd.f32 %v7024_v29, %v8388_v27  ;;  %v785_v53 = vmul.f32 %v8867_v7, %v8867_v7 }
 0x175   :  { %12295 = vst [vmem:[#allocation27_spill] sm:$0xff] %v8873_v57  ;;  %v515_v2 = vadd.f32 %v8388_v27, %v514_v62  ;;  %v709_v14 = vsel %vm589_vm0, %v8873_v57, 0.0  ;;  %v784_v6 = vmul.f32 %v8873_v57, %v8873_v57  ;;  %v711_v29 = vsel %vm589_vm0, %v8867_v7, 0.0 }
 0x176   :  { %v710_v36 = vadd.f32 %v709_v14, %v708_v9  ;;  %v906_v37 = vadd.f32 %v905_v43, %v904_v52  ;;  %v8884_v25 = vmax.f32 %v520_v55, 0.0  ;;  %v909_v38 = vsel %vm589_vm0, %v785_v53, 0.0 }
 0x177   :  { %v585_v22 = vmax.f32 %v515_v2, 0.0  ;;  %v907_v27 = vsel %vm589_vm0, %v784_v6, 0.0 }
 0x178   :  { %12296 = vst [vmem:[#allocation28_spill] sm:$0xff] %v8884_v25  ;;  %v908_v5 = vadd.f32 %v907_v27, %v906_v37  ;;  %v712_v39 = vadd.f32 %v711_v29, %v710_v36  ;;  %v787_v12 = vmul.f32 %v8884_v25, %v8884_v25  ;;  %v715_v55 = vsel %vm589_vm0, %v8884_v25, 0.0 }
 0x179   :  { %v713_v49 = vsel %vm589_vm0, %v585_v22, 0.0  ;;  %v786_v62 = vmul.f32 %v585_v22, %v585_v22 }
 0x17a   :  { %v714_v9 = vadd.f32 %v713_v49, %v712_v39  ;;  %v910_v43 = vadd.f32 %v909_v38, %v908_v5  ;;  %v913_v6 = vsel %vm589_vm0, %v787_v12, 0.0  ;;  %v929_v12 = vlaneseq }
 0x17b   :  { %v911_v52 = vsel %vm589_vm0, %v786_v62, 0.0 }
 0x17c   :  { %v716_v2 = vadd.f32 %v715_v55, %v714_v9  ;;  %v912_v14 = vadd.f32 %v911_v52, %v910_v43  ;;  %v930_v52 = vshrl.u32 %v929_v12, 7 }
 0x17e   :  { %v717_v36 = vrot.slane %v716_v2, 4  ;;  %v914_v37 = vadd.f32 %v913_v6, %v912_v14  ;;  %v8900_v14 = vsub.s32 0, %v930_v52  ;;  %v12306_v52 = vld [vmem:[#allocation12_spill] sm:$0xff] }
 0x180   :  { %v718_v53 = vadd.f32 %v717_v36, %v716_v2  ;;  %v915_v29 = vrot.slane %v914_v37, 4  ;;  %v587_v2 = vld [vmem:[%s12212_s3] sm:$0x1]  ;;  %12297 = vst [vmem:[#allocation29_spill] sm:$0xff] %v8900_v14 }
 0x182   :  { %v719_v27 = vrot.slane %v718_v53, 2  ;;  %v916_v7 = vadd.f32 %v915_v29, %v914_v37 }
 0x184   :  { %v720_v57 = vadd.f32 %v719_v27, %v718_v53  ;;  %v917_v54 = vrot.slane %v916_v7, 2 }
 0x186   :  { %v721_v0 = vrot.slane %v720_v57, 1  ;;  %v918_v39 = vadd.f32 %v917_v54, %v916_v7 }
 0x188   :  { %v722_v5 = vadd.f32 %v721_v0, %v720_v57  ;;  %v919_v38 = vrot.slane %v918_v39, 1  ;;  %v588_v0 = vld [vmem:[%s12213_s4] sm:$0x1] }
 0x18a   :  { %v723_v49 = vmul.f32 0.001953125, %v722_v5  ;;  %v920_v25 = vadd.f32 %v919_v38, %v918_v39  ;;  %v12301_v38 = vld [vmem:[#allocation9_spill] sm:$0xff] }
 0x18c   :  { %v921_v15 = vmul.f32 0.001953125, %v920_v25  ;;  %v922_v62 = vmul.f32 %v723_v49, %v723_v49 }
 0x18e   :  { %v923_v9 = vsub.f32 %v921_v15, %v922_v62  ;;  %v12303_v62 = vld [vmem:[#allocation11_spill] sm:$0xff] }
 0x190   :  { %v924_v43 = vmax.f32 %v923_v9, 0.0  ;;  %v12304_v9 = vld [vmem:[#allocation10_spill] sm:$0xff] }
 0x192   :  { %v925_v55 = vadd.f32 1e-05, %v924_v43 }
 0x194   :  { %8023 = vrsqrt.f32 %v925_v55  ;;  %v12305_v55 = vld [vmem:[#allocation13_spill] sm:$0xff] }
 0x19e   :  { %v8024_v6 = vpop.eup %8023 }
 0x19f   :  { %v927_v54 = vmul.f32 %v8024_v6, %v587_v2  ;;  %v12307_v6 = vld [vmem:[#allocation15_spill] sm:$0xff] }
 0x1a1   :  { %v8906_v7 = vrot.slane %v927_v54, %v8900_v14  ;;  %v998_v15 = vmul.f32 %v927_v54, %v723_v49  ;;  %v12302_v49 = vld [vmem:[#allocation8_spill] sm:$0xff] }
 0x1a3   :  { %v8909_v57 = vmul.f32 %v8906_v7, %v585_v22  ;;  %v999_v25 = vsub.f32 %v588_v0, %v998_v15  ;;  %v8913_v36 = vmul.f32 %v8906_v7, %v8394_v33  ;;  %v935_v37 = vmul.f32 %v8906_v7, %v8392_v32  ;;  %v12308_v0 = vld [vmem:[#allocation14_spill] sm:$0xff] }
 0x1a4   :  { %v8919_v53 = vmul.f32 %v8906_v7, %v8410_v45  ;;  %v8923_v29 = vmul.f32 %v8906_v7, %v8406_v42  ;;  %v8927_v22 = vmul.f32 %v8906_v7, %v8425_v59  ;;  %v8931_v27 = vmul.f32 %v8906_v7, %v8420_v56 }
 0x1a5   :  { %12298 = vst [vmem:[#allocation30_spill] sm:$0xff] %v8909_v57  ;;  %v8934_v33 = vrot.slane %v999_v25, %v8900_v14  ;;  %v8938_v32 = vmul.f32 %v8906_v7, %v8441_v11  ;;  %v8942_v45 = vmul.f32 %v8906_v7, %v8439_v10  ;;  %v8946_v42 = vmul.f32 %v8906_v7, %v8458_v31  ;;  %v12309_v25 = vld [vmem:[#allocation17_spill] sm:$0xff]  ;;  %v12319_v14 = vld [vmem:[#allocation23_spill] sm:$0xff]  ;;  %v12321_v57 = vld [vmem:[#allocation22_spill] sm:$0xff] }
 0x1a6   :  { %v8950_v59 = vmul.f32 %v8906_v7, %v8451_v23  ;;  %v8954_v56 = vmul.f32 %v8906_v7, %v8470_v46  ;;  %v8958_v11 = vmul.f32 %v8906_v7, %v8468_v44  ;;  %v8962_v10 = vmul.f32 %v8906_v7, %v8491_v4 }
 0x1a7   :  { %v8966_v31 = vmul.f32 %v8906_v7, %v8483_v60  ;;  %v8970_v23 = vmul.f32 %v8906_v7, %v8502_v18  ;;  %v8974_v46 = vmul.f32 %v8906_v7, %v8500_v17  ;;  %v8978_v44 = vmul.f32 %v8906_v7, %v8523_v47 }
 0x1a8   :  { %v8982_v4 = vmul.f32 %v8906_v7, %v8515_v35  ;;  %v953_v60 = vmul.f32 %v8906_v7, %v8532_v61  ;;  %v954_v39 = vmul.f32 %v8906_v7, %v8555_v24  ;;  %v955_v18 = vmul.f32 %v8906_v7, %v8547_v13 }
 0x1a9   :  { %v956_v17 = vmul.f32 %v8906_v7, %v8566_v41  ;;  %v957_v47 = vmul.f32 %v8906_v7, %v8564_v40  ;;  %v958_v5 = vmul.f32 %v8906_v7, %v8587_v8  ;;  %v959_v35 = vmul.f32 %v8906_v7, %v8579_v63 }
 0x1aa   :  { %v960_v61 = vmul.f32 %v8906_v7, %v8598_v28  ;;  %v961_v24 = vmul.f32 %v8906_v7, %v8596_v26  ;;  %v9004_v13 = vmul.f32 %v8906_v7, %v8619_v1  ;;  %v9008_v41 = vmul.f32 %v8906_v7, %v8611_v51 }
 0x1ab   :  { %v9012_v40 = vmul.f32 %v8906_v7, %v8630_v20  ;;  %v9016_v63 = vmul.f32 %v8906_v7, %v8628_v19  ;;  %v9020_v8 = vmul.f32 %v8906_v7, %v8651_v58  ;;  %v9024_v26 = vmul.f32 %v8906_v7, %v8643_v48  ;;  %v12299_v58 = vld [vmem:[#allocation7_spill] sm:$0xff] }
 0x1ac   :  { %v9028_v28 = vmul.f32 %v8906_v7, %v8662_v21  ;;  %v9032_v51 = vmul.f32 %v8906_v7, %v8660_v16  ;;  %v9036_v1 = vmul.f32 %v8906_v7, %v8683_v3  ;;  %v9040_v19 = vmul.f32 %v8906_v7, %v8675_v50  ;;  %v12300_v21 = vld [vmem:[#allocation6_spill] sm:$0xff] }
 0x1ad   :  { %v9044_v20 = vmul.f32 %v8906_v7, %v8694_v34  ;;  %v9048_v48 = vmul.f32 %v8906_v7, %v8692_v30  ;;  %v9052_v16 = vmul.f32 %v8906_v7, %v12299_v58  ;;  %v9056_v3 = vmul.f32 %v8906_v7, %v12300_v21  ;;  %v12310_v21 = vld [vmem:[#allocation16_spill] sm:$0xff] }
 0x1ae   :  { %v9060_v50 = vmul.f32 %v8906_v7, %v12301_v38  ;;  %v9064_v34 = vmul.f32 %v8906_v7, %v12302_v49  ;;  %v9068_v30 = vmul.f32 %v8906_v7, %v12303_v62  ;;  %v9072_v43 = vmul.f32 %v8906_v7, %v12304_v9  ;;  %v12311_v49 = vld [vmem:[#allocation19_spill] sm:$0xff]  ;;  %v12313_v9 = vld [vmem:[#allocation18_spill] sm:$0xff] }
 0x1af   :  { %v9076_v12 = vmul.f32 %v8906_v7, %v12305_v55  ;;  %v9080_v2 = vmul.f32 %v8906_v7, %v12306_v52  ;;  %v9084_v54 = vmul.f32 %v8906_v7, %v12307_v6  ;;  %v9088_v15 = vmul.f32 %v8906_v7, %v12308_v0  ;;  %v12315_v52 = vld [vmem:[#allocation21_spill] sm:$0xff]  ;;  %v12317_v0 = vld [vmem:[#allocation20_spill] sm:$0xff] }
 0x1b0   :  { %v9092_v58 = vmul.f32 %v8906_v7, %v12309_v25  ;;  %v9096_v38 = vmul.f32 %v8906_v7, %v12310_v21  ;;  %v9100_v62 = vmul.f32 %v8906_v7, %v12311_v49  ;;  %v9104_v55 = vmul.f32 %v8906_v7, %v12313_v9 }
 0x1b1   :  { %v9108_v6 = vmul.f32 %v8906_v7, %v12315_v52  ;;  %v9112_v25 = vmul.f32 %v8906_v7, %v12317_v0  ;;  %v9116_v21 = vmul.f32 %v8906_v7, %v12319_v14  ;;  %v9120_v49 = vmul.f32 %v8906_v7, %v12321_v57 }
 0x1b2   :  { %12312 = vst [vmem:[#allocation7_spill] sm:$0xff] %v9100_v62  ;;  %12314 = vst [vmem:[#allocation6_spill] sm:$0xff] %v9104_v55  ;;  %v12323_v62 = vld [vmem:[#allocation25_spill] sm:$0xff]  ;;  %v12325_v55 = vld [vmem:[#allocation24_spill] sm:$0xff] }
 0x1b3   :  { %12316 = vst [vmem:[#allocation9_spill] sm:$0xff] %v9108_v6  ;;  %12318 = vst [vmem:[#allocation8_spill] sm:$0xff] %v9112_v25  ;;  %v9124_v9 = vmul.f32 %v8906_v7, %v12323_v62  ;;  %v9128_v52 = vmul.f32 %v8906_v7, %v12325_v55  ;;  %v12327_v6 = vld [vmem:[#allocation27_spill] sm:$0xff]  ;;  %v12328_v25 = vld [vmem:[#allocation26_spill] sm:$0xff]  ;;  %v1006_v62 = vadd.f32 %v8934_v33, %v8913_v36 }
 0x1b4   :  { %12320 = vst [vmem:[#allocation11_spill] sm:$0xff] %v9116_v21  ;;  %12322 = vst [vmem:[#allocation10_spill] sm:$0xff] %v9120_v49  ;;  %v9132_v0 = vmul.f32 %v8906_v7, %v12327_v6  ;;  %v9136_v14 = vmul.f32 %v8906_v7, %v12328_v25  ;;  %v12330_v21 = vld [vmem:[#allocation28_spill] sm:$0xff]  ;;  %v1007_v49 = vadd.f32 %v8934_v33, %v935_v37 }
 0x1b5   :  { %12324 = vst [vmem:[#allocation13_spill] sm:$0xff] %v9124_v9  ;;  %12326 = vst [vmem:[#allocation12_spill] sm:$0xff] %v9128_v52  ;;  %v9140_v57 = vmul.f32 %v8906_v7, %v12330_v21  ;;  %v12331_v9 = vld [vmem:[#allocation5_spill] sm:$0xff]  ;;  %v1025_v52 = vadd.f32 %v8934_v33, %v953_v60  ;;  %v1008_v6 = vadd.f32 %v8934_v33, %v8919_v53  ;;  %7029 = vmatprep.mubr.msk.f32.mxu0 %vm589_vm0, %v1006_v62 }
 0x1b6   :  { %12329 = vst [vmem:[#allocation15_spill] sm:$0xff] %v9136_v14  ;;  %v952_v55 = vmul.f32 %v8906_v7, %v12331_v9  ;;  %v1026_v25 = vadd.f32 %v8934_v33, %v954_v39  ;;  %v1009_v14 = vadd.f32 %v8934_v33, %v8923_v29  ;;  %v1027_v21 = vadd.f32 %v8934_v33, %v955_v18 }
 0x1b7   :  { %v1010_v36 = vadd.f32 %v8934_v33, %v8927_v22  ;;  %v1028_v7 = vadd.f32 %v8934_v33, %v956_v17  ;;  %7030 = vmatmul.mubr.msk.f32.vlgmr.msra.gmra.mrb[64].mxu0 %vm589_vm0, %v1007_v49  ;;  %v1011_v53 = vadd.f32 %v8934_v33, %v8931_v27  ;;  %v1029_v60 = vadd.f32 %v8934_v33, %v957_v47 }
 0x1b8   :  { %v1024_v37 = vadd.f32 %v8934_v33, %v952_v55  ;;  %v1012_v29 = vadd.f32 %v8934_v33, %v8938_v32  ;;  %v1030_v39 = vadd.f32 %v8934_v33, %v958_v5  ;;  %7032 = vmatprep.mubr.msk.f32.mxu0 %vm589_vm0, %v1008_v6  ;;  %v1013_v22 = vadd.f32 %v8934_v33, %v8942_v45 }
 0x1b9   :  { %v1031_v18 = vadd.f32 %v8934_v33, %v959_v35  ;;  %v1014_v17 = vadd.f32 %v8934_v33, %v8946_v42  ;;  %v1032_v27 = vadd.f32 %v8934_v33, %v960_v61  ;;  %v1015_v32 = vadd.f32 %v8934_v33, %v8950_v59 }
 0x1ba   :  { %7056 = vmatprep.mubr.msk.f32.mxu1 %vm589_vm0, %v1024_v37  ;;  %v1033_v47 = vadd.f32 %v8934_v33, %v961_v24  ;;  %v1016_v5 = vadd.f32 %v8934_v33, %v8954_v56  ;;  %v1034_v45 = vadd.f32 %v8934_v33, %v9004_v13  ;;  %v1017_v42 = vadd.f32 %v8934_v33, %v8958_v11 }
 0x1bb   :  { %7057 = vmatmul.mubr.msk.f32.vlgmr.msra.gmra.mrb[0].mxu1 %vm589_vm0, %v1025_v52  ;;  %v1035_v35 = vadd.f32 %v8934_v33, %v9008_v41  ;;  %v1018_v61 = vadd.f32 %v8934_v33, %v8962_v10  ;;  %7033 = vmatmul.mubr.msk.f32.gmra.mrb[66].mxu0 %vm589_vm0, %v1009_v14  ;;  %v1036_v59 = vadd.f32 %v8934_v33, %v9012_v40  ;;  %v12335_v52 = vld [vmem:[#allocation8_spill] sm:$0xff]  ;;  %v12336_v14 = vld [vmem:[#allocation11_spill] sm:$0xff] }
 0x1bc   :  { %7059 = vmatprep.mubr.msk.f32.mxu1 %vm589_vm0, %v1026_v25  ;;  %v1019_v56 = vadd.f32 %v8934_v33, %v8966_v31  ;;  %v1037_v24 = vadd.f32 %v8934_v33, %v9016_v63  ;;  %v1020_v11 = vadd.f32 %v8934_v33, %v8970_v23  ;;  %7035 = vmatprep.mubr.msk.f32.mxu0 %vm589_vm0, %v1010_v36  ;;  %v12338_v55 = vld [vmem:[#allocation13_spill] sm:$0xff]  ;;  %v12339_v25 = vld [vmem:[#allocation12_spill] sm:$0xff] }
 0x1bd   :  { %v1038_v13 = vadd.f32 %v8934_v33, %v9020_v8  ;;  %v1021_v10 = vadd.f32 %v8934_v33, %v8974_v46  ;;  %v1039_v41 = vadd.f32 %v8934_v33, %v9024_v26  ;;  %v1022_v31 = vadd.f32 %v8934_v33, %v8978_v44  ;;  %v12340_v36 = vld [vmem:[#allocation15_spill] sm:$0xff] }
 0x1be   :  { %v1040_v40 = vadd.f32 %v8934_v33, %v9028_v28  ;;  %v1023_v23 = vadd.f32 %v8934_v33, %v8982_v4  ;;  %v1041_v63 = vadd.f32 %v8934_v33, %v9032_v51  ;;  %v1042_v46 = vadd.f32 %v8934_v33, %v9036_v1 }
 0x1bf   :  { %7060 = vmatmul.mubr.msk.f32.gmra.mrb[2].mxu1 %vm589_vm0, %v1027_v21  ;;  %v1043_v8 = vadd.f32 %v8934_v33, %v9040_v19  ;;  %v1044_v44 = vadd.f32 %v8934_v33, %v9044_v20  ;;  %v1045_v26 = vadd.f32 %v8934_v33, %v9048_v48  ;;  %v1046_v4 = vadd.f32 %v8934_v33, %v9052_v16 }
 0x1c0   :  { %7062 = vmatprep.mubr.msk.f32.mxu1 %vm589_vm0, %v1028_v7  ;;  %7036 = vmatmul.mubr.msk.f32.gmra.mrb[68].mxu0 %vm589_vm0, %v1011_v53  ;;  %v1047_v28 = vadd.f32 %v8934_v33, %v9056_v3  ;;  %v1048_v51 = vadd.f32 %v8934_v33, %v9060_v50  ;;  %v1049_v1 = vadd.f32 %v8934_v33, %v9064_v34  ;;  %v12341_v53 = vld [vmem:[#allocation30_spill] sm:$0xff] }
 0x1c1   :  { %v1050_v19 = vadd.f32 %v8934_v33, %v9068_v30  ;;  %7038 = vmatprep.mubr.msk.f32.mxu0 %vm589_vm0, %v1012_v29  ;;  %v1051_v20 = vadd.f32 %v8934_v33, %v9072_v43  ;;  %v1052_v48 = vadd.f32 %v8934_v33, %v9076_v12  ;;  %v1053_v16 = vadd.f32 %v8934_v33, %v9080_v2  ;;  %v12332_v43 = vld [vmem:[#allocation7_spill] sm:$0xff]  ;;  %v12333_v2 = vld [vmem:[#allocation6_spill] sm:$0xff] }
 0x1c2   :  { %v1054_v3 = vadd.f32 %v8934_v33, %v9084_v54  ;;  %v1055_v50 = vadd.f32 %v8934_v33, %v9088_v15  ;;  %v1056_v34 = vadd.f32 %v8934_v33, %v9092_v58  ;;  %v1057_v30 = vadd.f32 %v8934_v33, %v9096_v38  ;;  %v12334_v54 = vld [vmem:[#allocation9_spill] sm:$0xff]  ;;  %v12337_v38 = vld [vmem:[#allocation10_spill] sm:$0xff] }
 0x1c3   :  { %7063 = vmatmul.mubr.msk.f32.gmra.mrb[4].mxu1 %vm589_vm0, %v1029_v60  ;;  %v1058_v12 = vadd.f32 %v8934_v33, %v12332_v43  ;;  %v1059_v49 = vadd.f32 %v8934_v33, %v12333_v2  ;;  %v1060_v9 = vadd.f32 %v8934_v33, %v12334_v54  ;;  %v1061_v15 = vadd.f32 %v8934_v33, %v12335_v52 }
 0x1c4   :  { %7065 = vmatprep.mubr.msk.f32.mxu1 %vm589_vm0, %v1030_v39  ;;  %v1062_v58 = vadd.f32 %v8934_v33, %v12336_v14  ;;  %7039 = vmatmul.mubr.msk.f32.gmra.mrb[70].mxu0 %vm589_vm0, %v1013_v22  ;;  %v1063_v62 = vadd.f32 %v8934_v33, %v12337_v38  ;;  %v1064_v6 = vadd.f32 %v8934_v33, %v12338_v55 }
 0x1c5   :  { %v1065_v37 = vadd.f32 %v8934_v33, %v12339_v25  ;;  %v1066_v21 = vadd.f32 %v8934_v33, %v9132_v0  ;;  %7041 = vmatprep.mubr.msk.f32.mxu0 %vm589_vm0, %v1014_v17  ;;  %v1067_v7 = vadd.f32 %v8934_v33, %v12340_v36  ;;  %v1068_v60 = vadd.f32 %v8934_v33, %v12341_v53 }
 0x1c6   :  { %v1069_v29 = vadd.f32 %v8934_v33, %v9140_v57  ;;  %v9328_v33 = vld [vmem:[%s12215_s6] ss:$0 sm:$0xff] }
 0x1c7   :  { %7066 = vmatmul.mubr.msk.f32.gmra.mrb[6].mxu1 %vm589_vm0, %v1031_v18 }
 0x1c8   :  { %7068 = vmatprep.mubr.msk.f32.mxu1 %vm589_vm0, %v1032_v27  ;;  %7042 = vmatmul.mubr.msk.f32.gmra.mrb[72].mxu0 %vm589_vm0, %v1015_v32 }
 0x1c9   :  { %7044 = vmatprep.mubr.msk.f32.mxu0 %vm589_vm0, %v1016_v5 }
 0x1cb   :  { %7069 = vmatmul.mubr.msk.f32.gmra.mrb[8].mxu1 %vm589_vm0, %v1033_v47 }
 0x1cc   :  { %7071 = vmatprep.mubr.msk.f32.mxu1 %vm589_vm0, %v1034_v45  ;;  %7045 = vmatmul.mubr.msk.f32.gmra.mrb[74].mxu0 %vm589_vm0, %v1017_v42 }
 0x1cd   :  { %7047 = vmatprep.mubr.msk.f32.mxu0 %vm589_vm0, %v1018_v61 }
 0x1cf   :  { %7072 = vmatmul.mubr.msk.f32.gmra.mrb[10].mxu1 %vm589_vm0, %v1035_v35 }
 0x1d0   :  { %7074 = vmatprep.mubr.msk.f32.mxu1 %vm589_vm0, %v1036_v59  ;;  %7048 = vmatmul.mubr.msk.f32.gmra.mrb[76].mxu0 %vm589_vm0, %v1019_v56 }
 0x1d1   :  { %7050 = vmatprep.mubr.msk.f32.mxu0 %vm589_vm0, %v1020_v11 }
 0x1d3   :  { %7075 = vmatmul.mubr.msk.f32.gmra.mrb[12].mxu1 %vm589_vm0, %v1037_v24 }
 0x1d4   :  { %7077 = vmatprep.mubr.msk.f32.mxu1 %vm589_vm0, %v1038_v13  ;;  %7051 = vmatmul.mubr.msk.f32.gmra.mrb[78].mxu0 %vm589_vm0, %v1021_v10 }
 0x1d5   :  { %7053 = vmatprep.mubr.msk.f32.mxu0 %vm589_vm0, %v1022_v31 }
 0x1d7   :  { %7078 = vmatmul.mubr.msk.f32.gmra.mrb[14].mxu1 %vm589_vm0, %v1039_v41 }
 0x1d8   :  { %7080 = vmatprep.mubr.msk.f32.mxu1 %vm589_vm0, %v1040_v40  ;;  %7054 = vmatmul.mubr.msk.f32.gmra.mrb[80].mxu0 %vm589_vm0, %v1023_v23 }
 0x1db   :  { %7081 = vmatmul.mubr.msk.f32.gmra.mrb[16].mxu1 %vm589_vm0, %v1041_v63 }
 0x1dc   :  { %7083 = vmatprep.mubr.msk.f32.mxu1 %vm589_vm0, %v1042_v46 }
 0x1df   :  { %7084 = vmatmul.mubr.msk.f32.gmra.mrb[18].mxu1 %vm589_vm0, %v1043_v8 }
 0x1e0   :  { %7086 = vmatprep.mubr.msk.f32.mxu1 %vm589_vm0, %v1044_v44 }
 0x1e3   :  { %7087 = vmatmul.mubr.msk.f32.gmra.mrb[20].mxu1 %vm589_vm0, %v1045_v26 }
 0x1e4   :  { %7089 = vmatprep.mubr.msk.f32.mxu1 %vm589_vm0, %v1046_v4 }
 0x1e7   :  { %7090 = vmatmul.mubr.msk.f32.gmra.mrb[22].mxu1 %vm589_vm0, %v1047_v28 }
 0x1e8   :  { %7092 = vmatprep.mubr.msk.f32.mxu1 %vm589_vm0, %v1048_v51 }
 0x1eb   :  { %7093 = vmatmul.mubr.msk.f32.gmra.mrb[24].mxu1 %vm589_vm0, %v1049_v1 }
 0x1ec   :  { %7095 = vmatprep.mubr.msk.f32.mxu1 %vm589_vm0, %v1050_v19 }
 0x1ef   :  { %7096 = vmatmul.mubr.msk.f32.gmra.mrb[26].mxu1 %vm589_vm0, %v1051_v20 }
 0x1f0   :  { %7098 = vmatprep.mubr.msk.f32.mxu1 %vm589_vm0, %v1052_v48 }
 0x1f3   :  { %7099 = vmatmul.mubr.msk.f32.gmra.mrb[28].mxu1 %vm589_vm0, %v1053_v16 }
 0x1f4   :  { %7101 = vmatprep.mubr.msk.f32.mxu1 %vm589_vm0, %v1054_v3 }
 0x1f7   :  { %7102 = vmatmul.mubr.msk.f32.gmra.mrb[30].mxu1 %vm589_vm0, %v1055_v50 }
 0x1f8   :  { %7104 = vmatprep.mubr.msk.f32.mxu1 %vm589_vm0, %v1056_v34 }
 0x1fb   :  { %7105 = vmatmul.mubr.msk.f32.gmra.mrb[32].mxu1 %vm589_vm0, %v1057_v30 }
 0x1fc   :  { %7107 = vmatprep.mubr.msk.f32.mxu1 %vm589_vm0, %v1058_v12 }
 0x1ff   :  { %7108 = vmatmul.mubr.msk.f32.gmra.mrb[34].mxu1 %vm589_vm0, %v1059_v49 }
 0x200   :  { %7110 = vmatprep.mubr.msk.f32.mxu1 %vm589_vm0, %v1060_v9 }
 0x203   :  { %7111 = vmatmul.mubr.msk.f32.gmra.mrb[36].mxu1 %vm589_vm0, %v1061_v15 }
 0x204   :  { %7113 = vmatprep.mubr.msk.f32.mxu1 %vm589_vm0, %v1062_v58 }
 0x207   :  { %7114 = vmatmul.mubr.msk.f32.gmra.mrb[38].mxu1 %vm589_vm0, %v1063_v62 }
 0x208   :  { %7116 = vmatprep.mubr.msk.f32.mxu1 %vm589_vm0, %v1064_v6 }
 0x20b   :  { %7117 = vmatmul.mubr.msk.f32.gmra.mrb[40].mxu1 %vm589_vm0, %v1065_v37 }
 0x20c   :  { %7119 = vmatprep.mubr.msk.f32.mxu1 %vm589_vm0, %v1066_v21 }
 0x20f   :  { %7120 = vmatmul.mubr.msk.f32.gmra.mrb[42].mxu1 %vm589_vm0, %v1067_v7 }
 0x210   :  { %7122 = vmatprep.mubr.msk.f32.mxu1 %vm589_vm0, %v1068_v60 }
 0x213   :  { %7123 = vmatmul.mubr.msk.f32.gmra.mrb[44].mxu1 %vm589_vm0, %v1069_v29 }
 0x28a   :  { %v7031_v0 = vpop.f32.mrb[64].mxu0 }
 0x28b   :  { %v1343_v57 = vadd.f32 %v7031_v0, %v9328_v33  ;;  %v1337_v39 = vpop.f32.mrb[65].mxu0 }
 0x28c   :  { %v1338_v18 = vadd.f32 %v9328_v33, %v1337_v39 }
 0x28d   :  { %v9334_v17 = vmax.f32 %v1343_v57, 0.0 }
 0x28e   :  { %v9331_v22 = vpop.f32.mrb[0].mxu1  ;;  %v9338_v32 = vmax.f32 %v1338_v18, 0.0  ;;  %v7034_v47 = vpop.f32.mrb[66].mxu0 }
 0x28f   :  { %v9336_v27 = vpop.f32.mrb[1].mxu1  ;;  %v1858_v5 = vmul.f32 %v9334_v17, %v9334_v17  ;;  %v1353_v45 = vadd.f32 %v7034_v47, %v9328_v33  ;;  %v1347_v42 = vpop.f32.mrb[67].mxu0  ;;  %v1724_v56 = vsel %vm1722_vm1, %v9334_v17, 0.0 }
 0x290   :  { %v1857_v35 = vmul.f32 %v9338_v32, %v9338_v32  ;;  %v1348_v59 = vadd.f32 %v9328_v33, %v1347_v42  ;;  %v1723_v24 = vsel %vm1722_vm1, %v9338_v32, 0.0 }
 0x291   :  { %v1922_v10 = vsel %vm1722_vm1, %v1858_v5, 0.0  ;;  %v9356_v31 = vmax.f32 %v1353_v45, 0.0  ;;  %v1725_v63 = vadd.f32 %v1724_v56, %v1723_v24 }
 0x292   :  { %v9345_v61 = vpop.f32.mrb[2].mxu1  ;;  %v1921_v41 = vsel %vm1722_vm1, %v1857_v35, 0.0  ;;  %v9358_v40 = vmax.f32 %v1348_v59, 0.0 }
 0x293   :  { %v9352_v11 = vpop.f32.mrb[3].mxu1  ;;  %v7037_v13 = vpop.f32.mrb[68].mxu0  ;;  %v1923_v28 = vadd.f32 %v1922_v10, %v1921_v41  ;;  %v1860_v19 = vmul.f32 %v9356_v31, %v9356_v31  ;;  %v1728_v50 = vsel %vm1722_vm1, %v9356_v31, 0.0 }
 0x294   :  { %v1357_v23 = vpop.f32.mrb[69].mxu0  ;;  %v1726_v8 = vsel %vm1722_vm1, %v9358_v40, 0.0  ;;  %v1859_v44 = vmul.f32 %v9358_v40, %v9358_v40  ;;  %v1363_v26 = vadd.f32 %v7037_v13, %v9328_v33 }
 0x295   :  { %v1727_v51 = vadd.f32 %v1726_v8, %v1725_v63  ;;  %v1358_v30 = vadd.f32 %v9328_v33, %v1357_v23  ;;  %v1926_v49 = vsel %vm1722_vm1, %v1860_v19, 0.0 }
 0x296   :  { %v9360_v46 = vpop.f32.mrb[4].mxu1  ;;  %v1924_v20 = vsel %vm1722_vm1, %v1859_v44, 0.0  ;;  %v9376_v34 = vmax.f32 %v1363_v26, 0.0 }
 0x297   :  { %v9367_v4 = vpop.f32.mrb[5].mxu1  ;;  %v7040_v1 = vpop.f32.mrb[70].mxu0  ;;  %v1925_v16 = vadd.f32 %v1924_v20, %v1923_v28  ;;  %v1729_v12 = vadd.f32 %v1728_v50, %v1727_v51  ;;  %v9382_v54 = vmax.f32 %v1358_v30, 0.0 }
 0x298   :  { %v1367_v48 = vpop.f32.mrb[71].mxu0  ;;  %v1373_v15 = vadd.f32 %v7040_v1, %v9328_v33  ;;  %v1862_v38 = vmul.f32 %v9376_v34, %v9376_v34  ;;  %v1732_v60 = vsel %vm1722_vm1, %v9376_v34, 0.0 }
 0x299   :  { %v1927_v52 = vadd.f32 %v1926_v49, %v1925_v16  ;;  %v1368_v14 = vadd.f32 %v9328_v33, %v1367_v48  ;;  %v1730_v62 = vsel %vm1722_vm1, %v9382_v54, 0.0  ;;  %v1861_v55 = vmul.f32 %v9382_v54, %v9382_v54 }
 0x29a   :  { %v9372_v3 = vpop.f32.mrb[6].mxu1  ;;  %v1731_v25 = vadd.f32 %v1730_v62, %v1729_v12  ;;  %v9396_v37 = vmax.f32 %v1373_v15, 0.0  ;;  %v1930_v57 = vsel %vm1722_vm1, %v1862_v38, 0.0 }
 0x29b   :  { %v9379_v43 = vpop.f32.mrb[7].mxu1  ;;  %v7043_v2 = vpop.f32.mrb[72].mxu0  ;;  %v9398_v21 = vmax.f32 %v1368_v14, 0.0  ;;  %v1928_v7 = vsel %vm1722_vm1, %v1861_v55, 0.0 }
 0x29c   :  { %v1377_v9 = vpop.f32.mrb[73].mxu0  ;;  %v1929_v29 = vadd.f32 %v1928_v7, %v1927_v52  ;;  %v1733_v39 = vadd.f32 %v1732_v60, %v1731_v25  ;;  %v1864_v5 = vmul.f32 %v9396_v37, %v9396_v37  ;;  %v1383_v56 = vadd.f32 %v7043_v2, %v9328_v33 }
 0x29d   :  { %v1734_v18 = vsel %vm1722_vm1, %v9398_v21, 0.0  ;;  %v1863_v45 = vmul.f32 %v9398_v21, %v9398_v21  ;;  %v1736_v13 = vsel %vm1722_vm1, %v9396_v37, 0.0  ;;  %v1378_v41 = vadd.f32 %v9328_v33, %v1377_v9 }
 0x29e   :  { %v9386_v58 = vpop.f32.mrb[8].mxu1  ;;  %v1931_v42 = vadd.f32 %v1930_v57, %v1929_v29  ;;  %v1735_v59 = vadd.f32 %v1734_v18, %v1733_v39  ;;  %v9421_v8 = vmax.f32 %v1383_v56, 0.0  ;;  %v1934_v28 = vsel %vm1722_vm1, %v1864_v5, 0.0 }
 0x29f   :  { %v9394_v6 = vpop.f32.mrb[9].mxu1  ;;  %v7046_v36 = vpop.f32.mrb[74].mxu0  ;;  %v1932_v10 = vsel %vm1722_vm1, %v1863_v45, 0.0  ;;  %v9426_v51 = vmax.f32 %v1378_v41, 0.0 }
 0x2a0   :  { %v1387_v53 = vpop.f32.mrb[75].mxu0  ;;  %v1933_v63 = vadd.f32 %v1932_v10, %v1931_v42  ;;  %v1737_v44 = vadd.f32 %v1736_v13, %v1735_v59  ;;  %v1393_v20 = vadd.f32 %v7046_v36, %v9328_v33  ;;  %v1866_v12 = vmul.f32 %v9421_v8, %v9421_v8 }
 0x2a1   :  { %v1738_v16 = vsel %vm1722_vm1, %v9426_v51, 0.0  ;;  %v1865_v50 = vmul.f32 %v9426_v51, %v9426_v51  ;;  %v1740_v15 = vsel %vm1722_vm1, %v9421_v8, 0.0  ;;  %v1388_v62 = vadd.f32 %v9328_v33, %v1387_v53 }
 0x2a2   :  { %v9403_v0 = vpop.f32.mrb[10].mxu1  ;;  %v1935_v19 = vadd.f32 %v1934_v28, %v1933_v63  ;;  %v1739_v2 = vadd.f32 %v1738_v16, %v1737_v44  ;;  %v9442_v38 = vmax.f32 %v1393_v20, 0.0  ;;  %v1938_v7 = vsel %vm1722_vm1, %v1866_v12, 0.0 }
 0x2a3   :  { %v9408_v47 = vpop.f32.mrb[11].mxu1  ;;  %v7049_v35 = vpop.f32.mrb[76].mxu0  ;;  %v1936_v9 = vsel %vm1722_vm1, %v1865_v50, 0.0  ;;  %v9448_v60 = vmax.f32 %v1388_v62, 0.0 }
 0x2a4   :  { %v1397_v24 = vpop.f32.mrb[77].mxu0  ;;  %v1937_v14 = vadd.f32 %v1936_v9, %v1935_v19  ;;  %v1741_v25 = vadd.f32 %v1740_v15, %v1739_v2  ;;  %v1403_v29 = vadd.f32 %v7049_v35, %v9328_v33  ;;  %v1868_v5 = vmul.f32 %v9442_v38, %v9442_v38 }
 0x2a5   :  { %v1398_v18 = vadd.f32 %v9328_v33, %v1397_v24  ;;  %v1742_v53 = vsel %vm1722_vm1, %v9448_v60, 0.0  ;;  %v1867_v45 = vmul.f32 %v9448_v60, %v9448_v60  ;;  %v1744_v24 = vsel %vm1722_vm1, %v9442_v38, 0.0 }
 0x2a6   :  { %v9419_v23 = vpop.f32.mrb[12].mxu1  ;;  %v1939_v39 = vadd.f32 %v1938_v7, %v1937_v14  ;;  %v1743_v42 = vadd.f32 %v1742_v53, %v1741_v25  ;;  %v9460_v59 = vmax.f32 %v1403_v29, 0.0  ;;  %v1942_v63 = vsel %vm1722_vm1, %v1868_v5, 0.0 }
 0x2a7   :  { %v9423_v26 = vpop.f32.mrb[13].mxu1  ;;  %v7052_v1 = vpop.f32.mrb[78].mxu0  ;;  %v9462_v56 = vmax.f32 %v1398_v18, 0.0  ;;  %v1940_v13 = vsel %vm1722_vm1, %v1867_v45, 0.0 }
 0x2a8   :  { %v1407_v48 = vpop.f32.mrb[79].mxu0  ;;  %12342 = vst [vmem:[#allocation14_spill] sm:$0xff] %v9460_v59  ;;  %v1941_v41 = vadd.f32 %v1940_v13, %v1939_v39  ;;  %v1745_v44 = vadd.f32 %v1744_v24, %v1743_v42  ;;  %v1870_v20 = vmul.f32 %v9460_v59, %v9460_v59  ;;  %v1413_v9 = vadd.f32 %v7052_v1, %v9328_v33 }
 0x2a9   :  { %12343 = vst [vmem:[#allocation17_spill] sm:$0xff] %v9462_v56  ;;  %v1746_v28 = vsel %vm1722_vm1, %v9462_v56, 0.0  ;;  %v1869_v19 = vmul.f32 %v9462_v56, %v9462_v56  ;;  %v1748_v14 = vsel %vm1722_vm1, %v9460_v59, 0.0  ;;  %v1408_v25 = vadd.f32 %v9328_v33, %v1407_v48 }
 0x2aa   :  { %v9433_v30 = vpop.f32.mrb[14].mxu1  ;;  %v1943_v16 = vadd.f32 %v1942_v63, %v1941_v41  ;;  %v1747_v12 = vadd.f32 %v1746_v28, %v1745_v44  ;;  %v9487_v7 = vmax.f32 %v1413_v9, 0.0  ;;  %v1946_v39 = vsel %vm1722_vm1, %v1870_v20, 0.0 }
 0x2ab   :  { %v9437_v49 = vpop.f32.mrb[15].mxu1  ;;  %v7055_v52 = vpop.f32.mrb[80].mxu0  ;;  %v1944_v2 = vsel %vm1722_vm1, %v1869_v19, 0.0  ;;  %v9490_v18 = vmax.f32 %v1408_v25, 0.0  ;;  %v1428_v42 = vadd.f32 %v9328_v33, %v9336_v27  ;;  %v1433_v63 = vadd.f32 %v9331_v22, %v9328_v33 }
 0x2ac   :  { %v1417_v55 = vpop.f32.mrb[81].mxu0  ;;  %v1945_v62 = vadd.f32 %v1944_v2, %v1943_v16  ;;  %12344 = vst [vmem:[#allocation16_spill] sm:$0xff] %v9487_v7  ;;  %v1749_v29 = vadd.f32 %v1748_v14, %v1747_v12  ;;  %v1423_v1 = vadd.f32 %v7055_v52, %v9328_v33  ;;  %v1872_v24 = vmul.f32 %v9487_v7, %v9487_v7 }
 0x2ad   :  { %12345 = vst [vmem:[#allocation19_spill] sm:$0xff] %v9490_v18  ;;  %v1750_v48 = vsel %vm1722_vm1, %v9490_v18, 0.0  ;;  %v1871_v13 = vmul.f32 %v9490_v18, %v9490_v18  ;;  %v1752_v27 = vsel %vm1722_vm1, %v9487_v7, 0.0  ;;  %v1418_v20 = vadd.f32 %v9328_v33, %v1417_v55 }
 0x2ae   :  { %v9445_v36 = vpop.f32.mrb[16].mxu1  ;;  %v1947_v53 = vadd.f32 %v1946_v39, %v1945_v62  ;;  %v1751_v41 = vadd.f32 %v1750_v48, %v1749_v29  ;;  %v9512_v19 = vmax.f32 %v1423_v1, 0.0  ;;  %v9517_v12 = vmax.f32 %v1428_v42, 0.0 }
 0x2af   :  { %v9451_v57 = vpop.f32.mrb[17].mxu1  ;;  %v1948_v52 = vsel %vm1722_vm1, %v1871_v13, 0.0  ;;  %v1438_v22 = vadd.f32 %v9328_v33, %v9352_v11  ;;  %v1950_v9 = vsel %vm1722_vm1, %v1872_v24, 0.0  ;;  %v9522_v14 = vmax.f32 %v1418_v20, 0.0 }
 0x2b0   :  { %v1949_v28 = vadd.f32 %v1948_v52, %v1947_v53  ;;  %12346 = vst [vmem:[#allocation18_spill] sm:$0xff] %v9512_v19  ;;  %12347 = vst [vmem:[#allocation21_spill] sm:$0xff] %v9517_v12  ;;  %v1753_v2 = vadd.f32 %v1752_v27, %v1751_v41  ;;  %v9524_v62 = vmax.f32 %v1433_v63, 0.0  ;;  %v1443_v55 = vadd.f32 %v9345_v61, %v9328_v33 }
 0x2b1   :  { %12348 = vst [vmem:[#allocation20_spill] sm:$0xff] %v9522_v14  ;;  %v1874_v39 = vmul.f32 %v9512_v19, %v9512_v19  ;;  %v1754_v53 = vsel %vm1722_vm1, %v9522_v14, 0.0  ;;  %v1873_v11 = vmul.f32 %v9522_v14, %v9522_v14  ;;  %v1875_v42 = vmul.f32 %v9517_v12, %v9517_v12 }
 0x2b2   :  { %v9464_v35 = vpop.f32.mrb[18].mxu1  ;;  %12349 = vst [vmem:[#allocation23_spill] sm:$0xff] %v9524_v62  ;;  %v1951_v25 = vadd.f32 %v1950_v9, %v1949_v28  ;;  %v1755_v48 = vadd.f32 %v1754_v53, %v1753_v2  ;;  %v9540_v13 = vmax.f32 %v1438_v22, 0.0  ;;  %v1448_v61 = vadd.f32 %v9328_v33, %v9367_v4 }
 0x2b3   :  { %v9467_v10 = vpop.f32.mrb[19].mxu1  ;;  %v1756_v24 = vsel %vm1722_vm1, %v9512_v19, 0.0  ;;  %v1952_v41 = vsel %vm1722_vm1, %v1873_v11, 0.0  ;;  %v1876_v63 = vmul.f32 %v9524_v62, %v9524_v62  ;;  %v1758_v20 = vsel %vm1722_vm1, %v9517_v12, 0.0 }
 0x2b4   :  { %12350 = vst [vmem:[#allocation22_spill] sm:$0xff] %v9540_v13  ;;  %v1757_v52 = vadd.f32 %v1756_v24, %v1755_v48  ;;  %v1953_v27 = vadd.f32 %v1952_v41, %v1951_v25  ;;  %v9553_v2 = vmax.f32 %v1443_v55, 0.0  ;;  %v1453_v4 = vadd.f32 %v9360_v46, %v9328_v33 }
 0x2b5   :  { %v1954_v22 = vsel %vm1722_vm1, %v1874_v39, 0.0  ;;  %v1760_v53 = vsel %vm1722_vm1, %v9524_v62, 0.0  ;;  %v1956_v25 = vsel %vm1722_vm1, %v1875_v42, 0.0  ;;  %v1877_v24 = vmul.f32 %v9540_v13, %v9540_v13 }
 0x2b6   :  { %v9478_v50 = vpop.f32.mrb[20].mxu1  ;;  %12351 = vst [vmem:[#allocation25_spill] sm:$0xff] %v9553_v2  ;;  %v1759_v11 = vadd.f32 %v1758_v20, %v1757_v52  ;;  %v1955_v48 = vadd.f32 %v1954_v22, %v1953_v27  ;;  %v9565_v41 = vmax.f32 %v1448_v61, 0.0  ;;  %v1458_v55 = vadd.f32 %v9328_v33, %v9379_v43 }
 0x2b7   :  { %v9482_v15 = vpop.f32.mrb[21].mxu1  ;;  %v1463_v46 = vadd.f32 %v9372_v3, %v9328_v33  ;;  %v1958_v52 = vsel %vm1722_vm1, %v1876_v63, 0.0  ;;  %v1878_v42 = vmul.f32 %v9553_v2, %v9553_v2  ;;  %v1762_v27 = vsel %vm1722_vm1, %v9540_v13, 0.0 }
 0x2b8   :  { %12352 = vst [vmem:[#allocation24_spill] sm:$0xff] %v9565_v41  ;;  %v1761_v39 = vadd.f32 %v1760_v53, %v1759_v11  ;;  %v1957_v12 = vadd.f32 %v1956_v25, %v1955_v48  ;;  %v9578_v61 = vmax.f32 %v1453_v4, 0.0  ;;  %v1764_v43 = vsel %vm1722_vm1, %v9553_v2, 0.0 }
 0x2b9   :  { %v1960_v53 = vsel %vm1722_vm1, %v1877_v24, 0.0  ;;  %v1879_v63 = vmul.f32 %v9565_v41, %v9565_v41  ;;  %v9587_v11 = vmax.f32 %v1458_v55, 0.0  ;;  %v1468_v48 = vadd.f32 %v9328_v33, %v9394_v6 }
 0x2ba   :  { %v9492_v5 = vpop.f32.mrb[22].mxu1  ;;  %12353 = vst [vmem:[#allocation27_spill] sm:$0xff] %v9578_v61  ;;  %v1763_v3 = vadd.f32 %v1762_v27, %v1761_v39  ;;  %v1959_v22 = vadd.f32 %v1958_v52, %v1957_v12  ;;  %v9591_v25 = vmax.f32 %v1463_v46, 0.0  ;;  %v1962_v2 = vsel %vm1722_vm1, %v1878_v42, 0.0 }
 0x2bb   :  { %v9495_v45 = vpop.f32.mrb[23].mxu1  ;;  %12354 = vst [vmem:[#allocation26_spill] sm:$0xff] %v9587_v11  ;;  %v1880_v12 = vmul.f32 %v9578_v61, %v9578_v61  ;;  %v1766_v24 = vsel %vm1722_vm1, %v9565_v41, 0.0  ;;  %v1473_v55 = vadd.f32 %v9386_v58, %v9328_v33  ;;  %v1768_v6 = vsel %vm1722_vm1, %v9578_v61, 0.0 }
 0x2bc   :  { %12355 = vst [vmem:[#allocation28_spill] sm:$0xff] %v9591_v25  ;;  %v1765_v4 = vadd.f32 %v1764_v43, %v1763_v3  ;;  %v1961_v13 = vadd.f32 %v1960_v53, %v1959_v22  ;;  %v1964_v27 = vsel %vm1722_vm1, %v1879_v63, 0.0  ;;  %v1881_v42 = vmul.f32 %v9587_v11, %v9587_v11 }
 0x2bd   :  { %v9609_v43 = vmax.f32 %v1468_v48, 0.0  ;;  %v1478_v3 = vadd.f32 %v9328_v33, %v9408_v47  ;;  %v1882_v58 = vmul.f32 %v9591_v25, %v9591_v25  ;;  %v1483_v63 = vadd.f32 %v9403_v0, %v9328_v33 }
 0x2be   :  { %v9508_v44 = vpop.f32.mrb[24].mxu1  ;;  %v1767_v46 = vadd.f32 %v1766_v24, %v1765_v4  ;;  %v1963_v52 = vadd.f32 %v1962_v2, %v1961_v13  ;;  %v1966_v4 = vsel %vm1722_vm1, %v1880_v12, 0.0  ;;  %v1770_v13 = vsel %vm1722_vm1, %v9587_v11, 0.0 }
 0x2bf   :  { %v9515_v16 = vpop.f32.mrb[25].mxu1  ;;  %12356 = vst [vmem:[#allocation5_spill] sm:$0xff] %v9609_v43  ;;  %v9620_v2 = vmax.f32 %v1473_v55, 0.0  ;;  %v1772_v47 = vsel %vm1722_vm1, %v9591_v25, 0.0  ;;  %v1883_v12 = vmul.f32 %v9609_v43, %v9609_v43  ;;  %v1488_v55 = vadd.f32 %v9328_v33, %v9423_v26 }
 0x2c0   :  { %v1769_v22 = vadd.f32 %v1768_v6, %v1767_v46  ;;  %v1965_v53 = vadd.f32 %v1964_v27, %v1963_v52  ;;  %v1968_v46 = vsel %vm1722_vm1, %v1881_v42, 0.0  ;;  %v9631_v52 = vmax.f32 %v1478_v3, 0.0 }
 0x2c1   :  { %12357 = vst [vmem:[#allocation7_spill] sm:$0xff] %v9620_v2  ;;  %v1970_v27 = vsel %vm1722_vm1, %v1882_v58, 0.0  ;;  %v1774_v42 = vsel %vm1722_vm1, %v9609_v43, 0.0  ;;  %v1493_v3 = vadd.f32 %v9419_v23, %v9328_v33  ;;  %v1776_v26 = vsel %vm1722_vm1, %v9620_v2, 0.0 }
 0x2c2   :  { %v9526_v29 = vpop.f32.mrb[26].mxu1  ;;  %v1771_v24 = vadd.f32 %v1770_v13, %v1769_v22  ;;  %v1967_v6 = vadd.f32 %v1966_v4, %v1965_v53  ;;  %12358 = vst [vmem:[#allocation6_spill] sm:$0xff] %v9631_v52  ;;  %v1884_v22 = vmul.f32 %v9620_v2, %v9620_v2  ;;  %v9642_v53 = vmax.f32 %v1483_v63, 0.0 }
 0x2c3   :  { %v9536_v1 = vpop.f32.mrb[27].mxu1  ;;  %v1498_v63 = vadd.f32 %v9328_v33, %v9437_v49  ;;  %v1503_v23 = vadd.f32 %v9433_v30, %v9328_v33 }
 0x2c4   :  { %v1969_v0 = vadd.f32 %v1968_v46, %v1967_v6  ;;  %v1773_v11 = vadd.f32 %v1772_v47, %v1771_v24  ;;  %12359 = vst [vmem:[#allocation9_spill] sm:$0xff] %v9642_v53  ;;  %v1972_v47 = vsel %vm1722_vm1, %v1883_v12, 0.0  ;;  %v1885_v24 = vmul.f32 %v9631_v52, %v9631_v52 }
 0x2c5   :  { %v9653_v6 = vmax.f32 %v1488_v55, 0.0  ;;  %v1886_v12 = vmul.f32 %v9642_v53, %v9642_v53  ;;  %v9666_v55 = vmax.f32 %v1493_v3, 0.0  ;;  %v1780_v49 = vsel %vm1722_vm1, %v9642_v53, 0.0 }
 0x2c6   :  { %v9549_v28 = vpop.f32.mrb[28].mxu1  ;;  %v1775_v58 = vadd.f32 %v1774_v42, %v1773_v11  ;;  %v1971_v13 = vadd.f32 %v1970_v27, %v1969_v0  ;;  %v1974_v11 = vsel %vm1722_vm1, %v1884_v22, 0.0  ;;  %v1778_v27 = vsel %vm1722_vm1, %v9631_v52, 0.0 }
 0x2c7   :  { %v9558_v9 = vpop.f32.mrb[29].mxu1  ;;  %12360 = vst [vmem:[#allocation8_spill] sm:$0xff] %v9653_v6  ;;  %12361 = vst [vmem:[#allocation11_spill] sm:$0xff] %v9666_v55  ;;  %v1887_v22 = vmul.f32 %v9653_v6, %v9653_v6  ;;  %v1978_v53 = vsel %vm1722_vm1, %v1886_v12, 0.0 }
 0x2c8   :  { %v1777_v46 = vadd.f32 %v1776_v26, %v1775_v58  ;;  %v1973_v43 = vadd.f32 %v1972_v47, %v1971_v13  ;;  %v1976_v26 = vsel %vm1722_vm1, %v1885_v24, 0.0  ;;  %v9675_v58 = vmax.f32 %v1498_v63, 0.0 }
 0x2c9   :  { %v1508_v13 = vadd.f32 %v9328_v33, %v9451_v57  ;;  %v9679_v47 = vmax.f32 %v1503_v23, 0.0  ;;  %v1782_v24 = vsel %vm1722_vm1, %v9653_v6, 0.0  ;;  %v1513_v63 = vadd.f32 %v9445_v36, %v9328_v33 }
 0x2ca   :  { %v9571_v19 = vpop.f32.mrb[30].mxu1  ;;  %v1779_v30 = vadd.f32 %v1778_v27, %v1777_v46  ;;  %v1975_v42 = vadd.f32 %v1974_v11, %v1973_v43  ;;  %v1888_v43 = vmul.f32 %v9666_v55, %v9666_v55  ;;  %v1784_v57 = vsel %vm1722_vm1, %v9666_v55, 0.0 }
 0x2cb   :  { %v9580_v20 = vpop.f32.mrb[31].mxu1  ;;  %v1980_v27 = vsel %vm1722_vm1, %v1887_v22, 0.0  ;;  %v1889_v12 = vmul.f32 %v9675_v58, %v9675_v58  ;;  %v1890_v36 = vmul.f32 %v9679_v47, %v9679_v47  ;;  %v1523_v22 = vadd.f32 %v9464_v35, %v9328_v33 }
 0x2cc   :  { %v1781_v3 = vadd.f32 %v1780_v49, %v1779_v30  ;;  %v1977_v52 = vadd.f32 %v1976_v26, %v1975_v42  ;;  %v9697_v49 = vmax.f32 %v1508_v13, 0.0  ;;  %v1518_v30 = vadd.f32 %v9328_v33, %v9467_v10 }
 0x2ce   :  { %v9593_v62 = vpop.f32.mrb[32].mxu1  ;;  %v1783_v23 = vadd.f32 %v1782_v24, %v1781_v3  ;;  %v1979_v11 = vadd.f32 %v1978_v53, %v1977_v52  ;;  %v1982_v3 = vsel %vm1722_vm1, %v1888_v43, 0.0  ;;  %v1786_v52 = vsel %vm1722_vm1, %v9675_v58, 0.0 }
 0x2cf   :  { %v9602_v39 = vpop.f32.mrb[33].mxu1  ;;  %v9708_v53 = vmax.f32 %v1513_v63, 0.0  ;;  %v1984_v43 = vsel %vm1722_vm1, %v1889_v12, 0.0  ;;  %v9721_v63 = vmax.f32 %v1518_v30, 0.0  ;;  %v1533_v12 = vadd.f32 %v9478_v50, %v9328_v33 }
 0x2d0   :  { %v1785_v42 = vadd.f32 %v1784_v57, %v1783_v23  ;;  %v1981_v26 = vadd.f32 %v1980_v27, %v1979_v11  ;;  %v1528_v57 = vadd.f32 %v9328_v33, %v9482_v15  ;;  %v1788_v23 = vsel %vm1722_vm1, %v9679_v47, 0.0 }
 0x2d1   :  { %v1891_v11 = vmul.f32 %v9697_v49, %v9697_v49  ;;  %v1986_v27 = vsel %vm1722_vm1, %v1890_v36, 0.0  ;;  %v1790_v15 = vsel %vm1722_vm1, %v9697_v49, 0.0  ;;  %v1543_v50 = vadd.f32 %v9492_v5, %v9328_v33 }
 0x2d2   :  { %v9615_v41 = vpop.f32.mrb[34].mxu1  ;;  %v1787_v10 = vadd.f32 %v1786_v52, %v1785_v42  ;;  %v1983_v24 = vadd.f32 %v1982_v3, %v1981_v26  ;;  %v1892_v42 = vmul.f32 %v9708_v53, %v9708_v53  ;;  %v9730_v26 = vmax.f32 %v1523_v22, 0.0 }
 0x2d3   :  { %v9624_v48 = vpop.f32.mrb[35].mxu1  ;;  %v9736_v36 = vmax.f32 %v1528_v57, 0.0  ;;  %v1538_v22 = vadd.f32 %v9328_v33, %v9495_v45  ;;  %v9763_v18 = vmax.f32 %v1543_v50, 0.0 }
 0x2d4   :  { %v1789_v35 = vadd.f32 %v1788_v23, %v1787_v10  ;;  %v1985_v55 = vadd.f32 %v1984_v43, %v1983_v24  ;;  %v1792_v10 = vsel %vm1722_vm1, %v9708_v53, 0.0  ;;  %v1988_v24 = vsel %vm1722_vm1, %v1891_v11, 0.0 }
 0x2d5   :  { %v1893_v23 = vmul.f32 %v9721_v63, %v9721_v63  ;;  %v1894_v57 = vmul.f32 %v9730_v26, %v9730_v26  ;;  %v9752_v11 = vmax.f32 %v1533_v12, 0.0  ;;  %v1895_v45 = vmul.f32 %v9736_v36, %v9736_v36 }
 0x2d6   :  { %v9636_v61 = vpop.f32.mrb[36].mxu1  ;;  %v1791_v30 = vadd.f32 %v1790_v15, %v1789_v35  ;;  %v1987_v52 = vadd.f32 %v1986_v27, %v1985_v55  ;;  %v1990_v55 = vsel %vm1722_vm1, %v1892_v42, 0.0  ;;  %v1794_v27 = vsel %vm1722_vm1, %v9721_v63, 0.0 }
 0x2d7   :  { %v9646_v4 = vpop.f32.mrb[37].mxu1  ;;  %v1992_v5 = vsel %vm1722_vm1, %v1893_v23, 0.0  ;;  %v1548_v42 = vadd.f32 %v9328_v33, %v9515_v16  ;;  %v1896_v12 = vmul.f32 %v9752_v11, %v9752_v11  ;;  %v1553_v23 = vadd.f32 %v9508_v44, %v9328_v33 }
 0x2d8   :  { %v1989_v43 = vadd.f32 %v1988_v24, %v1987_v52  ;;  %v1793_v7 = vadd.f32 %v1792_v10, %v1791_v30  ;;  %v1796_v30 = vsel %vm1722_vm1, %v9730_v26, 0.0  ;;  %v9759_v52 = vmax.f32 %v1538_v22, 0.0 }
 0x2d9   :  { %v1800_v22 = vsel %vm1722_vm1, %v9752_v11, 0.0 }
 0x2da   :  { %v9659_v25 = vpop.f32.mrb[38].mxu1  ;;  %v1795_v35 = vadd.f32 %v1794_v27, %v1793_v7  ;;  %v1991_v15 = vadd.f32 %v1990_v55, %v1989_v43  ;;  %v1994_v7 = vsel %vm1722_vm1, %v1894_v57, 0.0  ;;  %v1798_v43 = vsel %vm1722_vm1, %v9736_v36, 0.0 }
 0x2db   :  { %v9668_v0 = vpop.f32.mrb[39].mxu1  ;;  %v1996_v27 = vsel %vm1722_vm1, %v1895_v45, 0.0  ;;  %v1897_v50 = vmul.f32 %v9759_v52, %v9759_v52  ;;  %v9777_v57 = vmax.f32 %v1548_v42, 0.0  ;;  %v1802_v45 = vsel %vm1722_vm1, %v9759_v52, 0.0 }
 0x2dc   :  { %v1993_v10 = vadd.f32 %v1992_v5, %v1991_v15  ;;  %v1797_v24 = vadd.f32 %v1796_v30, %v1795_v35  ;;  %v1558_v35 = vadd.f32 %v9328_v33, %v9536_v1  ;;  %v1898_v30 = vmul.f32 %v9763_v18, %v9763_v18 }
 0x2dd   :  { %v12269_v5 = vmov 0.0|0.0   ;;  %v1563_v42 = vadd.f32 %v9526_v29, %v9328_v33  ;;  %v1804_v1 = vsel %vm1722_vm1, %v9763_v18, 0.0 }
 0x2de   :  { %v9681_v2 = vpop.f32.mrb[40].mxu1  ;;  %v1799_v55 = vadd.f32 %v1798_v43, %v1797_v24  ;;  %v1995_v16 = vadd.f32 %v1994_v7, %v1993_v10  ;;  %7625 = vmatprep.subr.bf16.mxu1 %v12269_v5  ;;  %v1998_v10 = vsel %vm1722_vm1, %v1896_v12, 0.0  ;;  %v9787_v24 = vmax.f32 %v1553_v23, 0.0 }
 0x2df   :  { %v9690_v46 = vpop.f32.mrb[41].mxu1  ;;  %v1568_v12 = vadd.f32 %v9328_v33, %v9558_v9  ;;  %v2002_v23 = vsel %vm1722_vm1, %v1898_v30, 0.0 }
 0x2e0   :  { %v1997_v15 = vadd.f32 %v1996_v27, %v1995_v16  ;;  %v1801_v44 = vadd.f32 %v1800_v22, %v1799_v55  ;;  %v2000_v22 = vsel %vm1722_vm1, %v1897_v50, 0.0  ;;  %v1899_v55 = vmul.f32 %v9777_v57, %v9777_v57 }
 0x2e1   :  { %v9796_v16 = vmax.f32 %v1558_v35, 0.0  ;;  %v1900_v29 = vmul.f32 %v9787_v24, %v9787_v24  ;;  %v1573_v50 = vadd.f32 %v9549_v28, %v9328_v33  ;;  %v1808_v35 = vsel %vm1722_vm1, %v9787_v24, 0.0 }
 0x2e2   :  { %v9703_v6 = vpop.f32.mrb[42].mxu1  ;;  %v1803_v7 = vadd.f32 %v1802_v45, %v1801_v44  ;;  %v1999_v43 = vadd.f32 %v1998_v10, %v1997_v15  ;;  %v1806_v15 = vsel %vm1722_vm1, %v9777_v57, 0.0  ;;  %v9805_v44 = vmax.f32 %v1563_v42, 0.0 }
 0x2e3   :  { %v9712_v13 = vpop.f32.mrb[43].mxu1  ;;  %v2004_v30 = vsel %vm1722_vm1, %v1899_v55, 0.0  ;;  %v1901_v45 = vmul.f32 %v9796_v16, %v9796_v16  ;;  %v1583_v28 = vadd.f32 %v9571_v19, %v9328_v33  ;;  %v1810_v55 = vsel %vm1722_vm1, %v9796_v16, 0.0 }
 0x2e4   :  { %v2001_v27 = vadd.f32 %v2000_v22, %v1999_v43  ;;  %v1805_v5 = vadd.f32 %v1804_v1, %v1803_v7  ;;  %v9814_v1 = vmax.f32 %v1568_v12, 0.0  ;;  %v1578_v7 = vadd.f32 %v9328_v33, %v9580_v20 }
 0x2e5   :  { %v2006_v22 = vsel %vm1722_vm1, %v1900_v29, 0.0  ;;  %v1812_v12 = vsel %vm1722_vm1, %v9805_v44, 0.0  ;;  %v1588_v29 = vadd.f32 %v9328_v33, %v9602_v39 }
 0x2e6   :  { %v9724_v14 = vpop.f32.mrb[44].mxu1  ;;  %v1807_v10 = vadd.f32 %v1806_v15, %v1805_v5  ;;  %v2003_v9 = vadd.f32 %v2002_v23, %v2001_v27  ;;  %v1902_v5 = vmul.f32 %v9805_v44, %v9805_v44  ;;  %v9825_v23 = vmax.f32 %v1573_v50, 0.0 }
 0x2e7   :  { %v9734_v3 = vpop.f32.mrb[45].mxu1  ;;  %v2008_v15 = vsel %vm1722_vm1, %v1901_v45, 0.0  ;;  %v1903_v19 = vmul.f32 %v9814_v1, %v9814_v1  ;;  %v1814_v45 = vsel %vm1722_vm1, %v9814_v1, 0.0 }
 0x2e8   :  { %v2005_v42 = vadd.f32 %v2004_v30, %v2003_v9  ;;  %v1809_v43 = vadd.f32 %v1808_v35, %v1807_v10  ;;  %v9832_v35 = vmax.f32 %v1578_v7, 0.0  ;;  %v9836_v30 = vmax.f32 %v1583_v28, 0.0 }
 0x2e9   :  { %v2010_v50 = vsel %vm1722_vm1, %v1902_v5, 0.0  ;;  %v1816_v7 = vsel %vm1722_vm1, %v9825_v23, 0.0  ;;  %v9850_v5 = vmax.f32 %v1588_v29, 0.0 }
 0x2ea   :  { %v1811_v27 = vadd.f32 %v1810_v55, %v1809_v43  ;;  %v2007_v20 = vadd.f32 %v2006_v22, %v2005_v42  ;;  %v1904_v43 = vmul.f32 %v9825_v23, %v9825_v23  ;;  %v1593_v42 = vadd.f32 %v9593_v62, %v9328_v33 }
 0x2eb   :  { %v2012_v55 = vsel %vm1722_vm1, %v1903_v19, 0.0  ;;  %v1905_v28 = vmul.f32 %v9832_v35, %v9832_v35  ;;  %v1603_v19 = vadd.f32 %v9615_v41, %v9328_v33  ;;  %v1820_v29 = vsel %vm1722_vm1, %v9836_v30, 0.0 }
 0x2ec   :  { %v2009_v10 = vadd.f32 %v2008_v15, %v2007_v20  ;;  %v1813_v9 = vadd.f32 %v1812_v12, %v1811_v27  ;;  %v1598_v12 = vadd.f32 %v9328_v33, %v9624_v48  ;;  %v1906_v20 = vmul.f32 %v9836_v30, %v9836_v30 }
 0x2ed   :  { %v2014_v15 = vsel %vm1722_vm1, %v1904_v43, 0.0  ;;  %v1608_v43 = vadd.f32 %v9328_v33, %v9646_v4 }
 0x2ee   :  { %v1815_v22 = vadd.f32 %v1814_v45, %v1813_v9  ;;  %v2011_v39 = vadd.f32 %v2010_v50, %v2009_v10  ;;  %v1818_v10 = vsel %vm1722_vm1, %v9832_v35, 0.0  ;;  %v9859_v9 = vmax.f32 %v1593_v42, 0.0 }
 0x2ef   :  { %v2016_v45 = vsel %vm1722_vm1, %v1905_v28, 0.0  ;;  %v2018_v42 = vsel %vm1722_vm1, %v1906_v20, 0.0  ;;  %v1613_v28 = vadd.f32 %v9636_v61, %v9328_v33  ;;  %v1623_v61 = vadd.f32 %v9659_v25, %v9328_v33 }
 0x2f0   :  { %v2013_v27 = vadd.f32 %v2012_v55, %v2011_v39  ;;  %v1817_v62 = vadd.f32 %v1816_v7, %v1815_v22  ;;  %v1907_v7 = vmul.f32 %v9850_v5, %v9850_v5  ;;  %v9868_v22 = vmax.f32 %v1598_v12, 0.0 }
 0x2f1   :  { %v1908_v41 = vmul.f32 %v9859_v9, %v9859_v9  ;;  %v1824_v12 = vsel %vm1722_vm1, %v9859_v9, 0.0 }
 0x2f2   :  { %v1819_v50 = vadd.f32 %v1818_v10, %v1817_v62  ;;  %v2015_v48 = vadd.f32 %v2014_v15, %v2013_v27  ;;  %v1822_v27 = vsel %vm1722_vm1, %v9850_v5, 0.0  ;;  %v9877_v62 = vmax.f32 %v1603_v19, 0.0 }
 0x2f3   :  { %v2020_v20 = vsel %vm1722_vm1, %v1907_v7, 0.0  ;;  %v1909_v10 = vmul.f32 %v9868_v22, %v9868_v22  ;;  %v1826_v7 = vsel %vm1722_vm1, %v9868_v22, 0.0 }
 0x2f4   :  { %v2017_v39 = vadd.f32 %v2016_v45, %v2015_v48  ;;  %v1821_v55 = vadd.f32 %v1820_v29, %v1819_v50  ;;  %v9886_v29 = vmax.f32 %v1608_v43, 0.0  ;;  %v1618_v50 = vadd.f32 %v9328_v33, %v9668_v0 }
 0x2f5   :  { %v2022_v45 = vsel %vm1722_vm1, %v1908_v41, 0.0  ;;  %v1828_v43 = vsel %vm1722_vm1, %v9877_v62, 0.0  ;;  %v1628_v41 = vadd.f32 %v9328_v33, %v9690_v46 }
 0x2f6   :  { %v1823_v15 = vadd.f32 %v1822_v27, %v1821_v55  ;;  %v2019_v4 = vadd.f32 %v2018_v42, %v2017_v39  ;;  %v1910_v42 = vmul.f32 %v9877_v62, %v9877_v62  ;;  %v9897_v39 = vmax.f32 %v1613_v28, 0.0 }
 0x2f7   :  { %v2024_v27 = vsel %vm1722_vm1, %v1909_v10, 0.0  ;;  %v1911_v25 = vmul.f32 %v9886_v29, %v9886_v29  ;;  %v1830_v10 = vsel %vm1722_vm1, %v9886_v29, 0.0 }
 0x2f8   :  { %v2021_v19 = vadd.f32 %v2020_v20, %v2019_v4  ;;  %v1825_v48 = vadd.f32 %v1824_v12, %v1823_v15  ;;  %v9904_v12 = vmax.f32 %v1618_v50, 0.0  ;;  %v9908_v20 = vmax.f32 %v1623_v61, 0.0 }
 0x2f9   :  { %v2026_v28 = vsel %vm1722_vm1, %v1910_v42, 0.0  ;;  %v1832_v50 = vsel %vm1722_vm1, %v9897_v39, 0.0  ;;  %v9922_v42 = vmax.f32 %v1628_v41, 0.0 }
 0x2fa   :  { %v1827_v55 = vadd.f32 %v1826_v7, %v1825_v48  ;;  %v2023_v0 = vadd.f32 %v2022_v45, %v2021_v19  ;;  %v1912_v48 = vmul.f32 %v9897_v39, %v9897_v39  ;;  %v1633_v19 = vadd.f32 %v9681_v2, %v9328_v33 }
 0x2fb   :  { %v2028_v7 = vsel %vm1722_vm1, %v1911_v25, 0.0  ;;  %v1913_v61 = vmul.f32 %v9904_v12, %v9904_v12  ;;  %v1643_v25 = vadd.f32 %v9703_v6, %v9328_v33  ;;  %v1836_v41 = vsel %vm1722_vm1, %v9908_v20, 0.0 }
 0x2fc   :  { %v2025_v15 = vadd.f32 %v2024_v27, %v2023_v0  ;;  %v1829_v4 = vadd.f32 %v1828_v43, %v1827_v55  ;;  %v1638_v43 = vadd.f32 %v9328_v33, %v9712_v13  ;;  %v1914_v0 = vmul.f32 %v9908_v20, %v9908_v20 }
 0x2fd   :  { %v2030_v27 = vsel %vm1722_vm1, %v1912_v48, 0.0  ;;  %v1648_v48 = vadd.f32 %v9328_v33, %v9734_v3 }
 0x2fe   :  { %v1831_v45 = vadd.f32 %v1830_v10, %v1829_v4  ;;  %v2027_v46 = vadd.f32 %v2026_v28, %v2025_v15  ;;  %v1834_v15 = vsel %vm1722_vm1, %v9904_v12, 0.0  ;;  %v9931_v4 = vmax.f32 %v1633_v19, 0.0 }
 0x2ff   :  { %v2032_v10 = vsel %vm1722_vm1, %v1913_v61, 0.0  ;;  %v2034_v19 = vsel %vm1722_vm1, %v1914_v0, 0.0  ;;  %v1653_v61 = vadd.f32 %v9724_v14, %v9328_v33 }
 0x300   :  { %v2029_v55 = vadd.f32 %v2028_v7, %v2027_v46  ;;  %v1833_v2 = vadd.f32 %v1832_v50, %v1831_v45  ;;  %v1915_v50 = vmul.f32 %v9922_v42, %v9922_v42  ;;  %v9940_v45 = vmax.f32 %v1638_v43, 0.0 }
 0x301   :  { %v1916_v6 = vmul.f32 %v9931_v4, %v9931_v4  ;;  %v1840_v3 = vsel %vm1722_vm1, %v9931_v4, 0.0  ;;  %v9963_v14 = vmax.f32 %v1653_v61, 0.0 }
 0x302   :  { %v1835_v28 = vadd.f32 %v1834_v15, %v1833_v2  ;;  %v2031_v13 = vadd.f32 %v2030_v27, %v2029_v55  ;;  %v1838_v55 = vsel %vm1722_vm1, %v9922_v42, 0.0  ;;  %v9949_v2 = vmax.f32 %v1643_v25, 0.0 }
 0x303   :  { %v2036_v0 = vsel %vm1722_vm1, %v1915_v50, 0.0  ;;  %v1917_v15 = vmul.f32 %v9940_v45, %v9940_v45  ;;  %v1842_v33 = vsel %vm1722_vm1, %v9940_v45, 0.0 }
 0x304   :  { %v2033_v46 = vadd.f32 %v2032_v10, %v2031_v13  ;;  %v1837_v7 = vadd.f32 %v1836_v41, %v1835_v28  ;;  %v1718_v41 = vmax.f32 %v1648_v48, 0.0  ;;  %v2038_v10 = vsel %vm1722_vm1, %v1916_v6, 0.0 }
 0x305   :  { %v1918_v25 = vmul.f32 %v9949_v2, %v9949_v2  ;;  %v1844_v50 = vsel %vm1722_vm1, %v9949_v2, 0.0 }
 0x306   :  { %v1839_v43 = vadd.f32 %v1838_v55, %v1837_v7  ;;  %v2035_v27 = vadd.f32 %v2034_v19, %v2033_v46  ;;  %v2040_v7 = vsel %vm1722_vm1, %v1917_v15, 0.0  ;;  %v1919_v48 = vmul.f32 %v1718_v41, %v1718_v41 }
 0x307   :  { %v2042_v6 = vsel %vm1722_vm1, %v1918_v25, 0.0 }
 0x308   :  { %v2037_v28 = vadd.f32 %v2036_v0, %v2035_v27  ;;  %v1841_v13 = vadd.f32 %v1840_v3, %v1839_v43  ;;  %v1920_v27 = vmul.f32 %v9963_v14, %v9963_v14  ;;  %v1846_v3 = vsel %vm1722_vm1, %v1718_v41, 0.0 }
 0x30a   :  { %v1843_v19 = vadd.f32 %v1842_v33, %v1841_v13  ;;  %v2039_v46 = vadd.f32 %v2038_v10, %v2037_v28  ;;  %v1848_v28 = vsel %vm1722_vm1, %v9963_v14, 0.0  ;;  %v2044_v13 = vsel %vm1722_vm1, %v1919_v48, 0.0 }
 0x30b   :  { %v2046_v15 = vsel %vm1722_vm1, %v1920_v27, 0.0 }
 0x30c   :  { %v2041_v55 = vadd.f32 %v2040_v7, %v2039_v46  ;;  %v1845_v43 = vadd.f32 %v1844_v50, %v1843_v19  ;;  %v2204_v7 = vld [vmem:[%s12220_s11 + $0x8] sm:$0xff] }
 0x30d   :  { %2523 = vmatprep.mubr.f32.mxu1 %v2204_v7 }
 0x30e   :  { %v1847_v0 = vadd.f32 %v1846_v3, %v1845_v43  ;;  %v2043_v61 = vadd.f32 %v2042_v6, %v2041_v55 }
 0x310   :  { %v1849_v10 = vadd.f32 %v1848_v28, %v1847_v0  ;;  %v2045_v33 = vadd.f32 %v2044_v13, %v2043_v61 }
 0x312   :  { %v1850_v46 = vrot.slane %v1849_v10, 4  ;;  %v2047_v19 = vadd.f32 %v2046_v15, %v2045_v33 }
 0x314   :  { %v1851_v50 = vadd.f32 %v1850_v46, %v1849_v10  ;;  %v2048_v25 = vrot.slane %v2047_v19, 4  ;;  %v1720_v46 = vld [vmem:[%s12216_s7] sm:$0x1] }
 0x316   :  { %v1852_v59 = vrot.slane %v1851_v50, 2  ;;  %v2049_v43 = vadd.f32 %v2048_v25, %v2047_v19 }
 0x318   :  { %v1853_v55 = vadd.f32 %v1852_v59, %v1851_v50  ;;  %v2050_v6 = vrot.slane %v2049_v43, 2  ;;  %v1721_v59 = vld [vmem:[%s12217_s8] sm:$0x1]  ;;  %v12362_v50 = vld [vmem:[#allocation29_spill] sm:$0xff] }
 0x31a   :  { %v1854_v3 = vrot.slane %v1853_v55, 1  ;;  %v2051_v56 = vadd.f32 %v2050_v6, %v2049_v43 }
 0x31c   :  { %v1855_v48 = vadd.f32 %v1854_v3, %v1853_v55  ;;  %v2052_v0 = vrot.slane %v2051_v56, 1 }
 0x31e   :  { %v1856_v61 = vmul.f32 0.001953125, %v1855_v48  ;;  %v2053_v28 = vadd.f32 %v2052_v0, %v2051_v56 }
 0x320   :  { %v2054_v27 = vmul.f32 0.001953125, %v2053_v28  ;;  %v2055_v13 = vmul.f32 %v1856_v61, %v1856_v61 }
 0x322   :  { %v2056_v33 = vsub.f32 %v2054_v27, %v2055_v13 }
 0x324   :  { %v2057_v10 = vmax.f32 %v2056_v33, 0.0 }
 0x326   :  { %v2058_v15 = vadd.f32 1e-05, %v2057_v10 }
 0x328   :  { %8025 = vrsqrt.f32 %v2058_v15 }
 0x332   :  { %v8026_v19 = vpop.eup %8025 }
 0x333   :  { %v2060_v25 = vmul.f32 %v8026_v19, %v1720_v46 }
 0x335   :  { %v9986_v7 = vrot.slane %v2060_v25, %v12362_v50  ;;  %v2131_v56 = vmul.f32 %v2060_v25, %v1856_v61 }
 0x337   :  { %v2132_v43 = vsub.f32 %v1721_v59, %v2131_v56  ;;  %v2129_v55 = vmul.f32 %v9986_v7, %v1718_v41  ;;  %v2067_v48 = vmul.f32 %v9986_v7, %v9338_v32  ;;  %v2068_v0 = vmul.f32 %v9986_v7, %v9334_v17 }
 0x338   :  { %v2069_v28 = vmul.f32 %v9986_v7, %v9358_v40  ;;  %v10003_v61 = vmul.f32 %v9986_v7, %v9356_v31  ;;  %v2099_v41 = vmul.f32 %v9986_v7, %v9675_v58  ;;  %v2100_v27 = vmul.f32 %v9986_v7, %v9679_v47 }
 0x339   :  { %v9990_v6 = vrot.slane %v2132_v43, %v12362_v50  ;;  %v2101_v13 = vmul.f32 %v9986_v7, %v9697_v49  ;;  %v2102_v32 = vmul.f32 %v9986_v7, %v9708_v53  ;;  %v2103_v17 = vmul.f32 %v9986_v7, %v9721_v63 }
 0x33a   :  { %v2104_v40 = vmul.f32 %v9986_v7, %v9730_v26  ;;  %v2105_v31 = vmul.f32 %v9986_v7, %v9736_v36  ;;  %v2106_v58 = vmul.f32 %v9986_v7, %v9752_v11  ;;  %v2107_v47 = vmul.f32 %v9986_v7, %v9759_v52 }
 0x33b   :  { %v9993_v3 = vadd.f32 %v9990_v6, %v2129_v55  ;;  %v2108_v49 = vmul.f32 %v9986_v7, %v9763_v18  ;;  %v2109_v53 = vmul.f32 %v9986_v7, %v9777_v57  ;;  %v2110_v63 = vmul.f32 %v9986_v7, %v9787_v24 }
 0x33c   :  { %v2111_v26 = vmul.f32 %v9986_v7, %v9796_v16  ;;  %v2112_v36 = vmul.f32 %v9986_v7, %v9805_v44  ;;  %v2113_v11 = vmul.f32 %v9986_v7, %v9814_v1  ;;  %v2114_v52 = vmul.f32 %v9986_v7, %v9825_v23 }
 0x33d   :  { %v2115_v18 = vmul.f32 %v9986_v7, %v9832_v35  ;;  %v2116_v57 = vmul.f32 %v9986_v7, %v9836_v30  ;;  %v2117_v24 = vmul.f32 %v9986_v7, %v9850_v5  ;;  %v2118_v16 = vmul.f32 %v9986_v7, %v9859_v9 }
 0x33e   :  { %v2119_v44 = vmul.f32 %v9986_v7, %v9868_v22  ;;  %v2120_v1 = vmul.f32 %v9986_v7, %v9877_v62  ;;  %v2121_v23 = vmul.f32 %v9986_v7, %v9886_v29  ;;  %v2122_v35 = vmul.f32 %v9986_v7, %v9897_v39 }
 0x33f   :  { %v2123_v30 = vmul.f32 %v9986_v7, %v9904_v12  ;;  %v2124_v5 = vmul.f32 %v9986_v7, %v9908_v20  ;;  %v2125_v9 = vmul.f32 %v9986_v7, %v9922_v42  ;;  %v2126_v22 = vmul.f32 %v9986_v7, %v9931_v4 }
 0x340   :  { %v2127_v62 = vmul.f32 %v9986_v7, %v9940_v45  ;;  %v2128_v29 = vmul.f32 %v9986_v7, %v9949_v2  ;;  %v2130_v39 = vmul.f32 %v9986_v7, %v9963_v14  ;;  %v2139_v12 = vadd.f32 %v9990_v6, %v2067_v48 }
 0x341   :  { %v2140_v33 = vadd.f32 %v9990_v6, %v2068_v0  ;;  %v2141_v20 = vadd.f32 %v9990_v6, %v2069_v28  ;;  %v10071_v42 = vadd.f32 %v9990_v6, %v2099_v41  ;;  %v10074_v4 = vadd.f32 %v9990_v6, %v2100_v27 }
 0x342   :  { %v10077_v45 = vadd.f32 %v9990_v6, %v2101_v13  ;;  %v10080_v2 = vadd.f32 %v9990_v6, %v2102_v32  ;;  %v10083_v14 = vadd.f32 %v9990_v6, %v2103_v17  ;;  %v10086_v10 = vadd.f32 %v9990_v6, %v2104_v40 }
 0x343   :  { %v10089_v15 = vadd.f32 %v9990_v6, %v2105_v31  ;;  %v10092_v46 = vadd.f32 %v9990_v6, %v2106_v58  ;;  %v10095_v19 = vadd.f32 %v9990_v6, %v2107_v47  ;;  %v10098_v25 = vadd.f32 %v9990_v6, %v2108_v49 }
 0x344   :  { %v10101_v59 = vadd.f32 %v9990_v6, %v2109_v53  ;;  %v10104_v50 = vadd.f32 %v9990_v6, %v2110_v63  ;;  %v10107_v56 = vadd.f32 %v9990_v6, %v2111_v26  ;;  %v10110_v43 = vadd.f32 %v9990_v6, %v2112_v36 }
 0x345   :  { %v10113_v55 = vadd.f32 %v9990_v6, %v2113_v11  ;;  %v10116_v48 = vadd.f32 %v9990_v6, %v2114_v52  ;;  %v10119_v0 = vadd.f32 %v9990_v6, %v2115_v18  ;;  %v10122_v28 = vadd.f32 %v9990_v6, %v2116_v57 }
 0x346   :  { %v10125_v41 = vadd.f32 %v9990_v6, %v2117_v24  ;;  %v10128_v27 = vadd.f32 %v9990_v6, %v2118_v16  ;;  %v10131_v13 = vadd.f32 %v9990_v6, %v2119_v44  ;;  %v10134_v32 = vadd.f32 %v9990_v6, %v2120_v1 }
 0x347   :  { %v10137_v17 = vadd.f32 %v9990_v6, %v2121_v23  ;;  %v10140_v40 = vadd.f32 %v9990_v6, %v2122_v35  ;;  %v10143_v31 = vadd.f32 %v9990_v6, %v2123_v30  ;;  %v10146_v58 = vadd.f32 %v9990_v6, %v2124_v5 }
 0x348   :  { %v10149_v47 = vadd.f32 %v9990_v6, %v2125_v9  ;;  %v10152_v49 = vadd.f32 %v9990_v6, %v2126_v22  ;;  %v10155_v53 = vadd.f32 %v9990_v6, %v2127_v62  ;;  %v2142_v63 = vadd.f32 %v9990_v6, %v10003_v61 }
 0x349   :  { %v10160_v26 = vadd.f32 %v9990_v6, %v2128_v29  ;;  %v10163_v36 = vadd.f32 %v9990_v6, %v2130_v39  ;;  %v7626_v11 = vpack.c.bf16 %v2140_v33, %v2139_v12  ;;  %v2071_v52 = vmul.f32 %v9986_v7, %v9382_v54  ;;  %v12365_v33 = vld [vmem:[#allocation14_spill] sm:$0xff] }
 0x34a   :  { %v2072_v18 = vmul.f32 %v9986_v7, %v9376_v34  ;;  %v2073_v57 = vmul.f32 %v9986_v7, %v9398_v21  ;;  %v2074_v61 = vmul.f32 %v9986_v7, %v9396_v37  ;;  %v12363_v44 = vmov 0.0|0.0  }
 0x34b   :  { %7627 = vmatpush1.bf16.msra.mxu1 %v7626_v11  ;;  %v2143_v24 = vadd.f32 %v9990_v6, %v2071_v52  ;;  %v7629_v23 = vpack.c.bf16 %v2142_v63, %v2141_v20  ;;  %v7674_v54 = vpack.c.bf16 %v10074_v4, %v10071_v42  ;;  %v7677_v34 = vpack.c.bf16 %v10080_v2, %v10077_v45  ;;  %v12364_v11 = vld [vmem:[#allocation17_spill] sm:$0xff] }
 0x34c   :  { %v2144_v16 = vadd.f32 %v9990_v6, %v2072_v18  ;;  %7628 = vmatprep.subr.bf16.mxu1 %v12363_v44  ;;  %v2145_v1 = vadd.f32 %v9990_v6, %v2073_v57  ;;  %v7680_v21 = vpack.c.bf16 %v10086_v10, %v10083_v14  ;;  %v7683_v37 = vpack.c.bf16 %v10092_v46, %v10089_v15  ;;  %v2211_v42 = vld [vmem:[%s12220_s11 + $0x40] sm:$0xff]  ;;  %v2216_v4 = vld [vmem:[%s12220_s11 + $0x68] sm:$0xff] }
 0x34d   :  { %v7686_v35 = vpack.c.bf16 %v10098_v25, %v10095_v19  ;;  %v7689_v30 = vpack.c.bf16 %v10104_v50, %v10101_v59  ;;  %v7692_v5 = vpack.c.bf16 %v10110_v43, %v10107_v56  ;;  %v7695_v9 = vpack.c.bf16 %v10116_v48, %v10113_v55  ;;  %v2215_v45 = vld [vmem:[%s12220_s11 + $0x60] sm:$0xff]  ;;  %v2220_v2 = vld [vmem:[%s12220_s11 + $0x88] sm:$0xff] }
 0x34e   :  { %v7698_v22 = vpack.c.bf16 %v10122_v28, %v10119_v0  ;;  %v7701_v62 = vpack.c.bf16 %v10128_v27, %v10125_v41  ;;  %v7704_v29 = vpack.c.bf16 %v10134_v32, %v10131_v13  ;;  %v7707_v39 = vpack.c.bf16 %v10140_v40, %v10137_v17  ;;  %v2219_v14 = vld [vmem:[%s12220_s11 + $0x80] sm:$0xff]  ;;  %v2224_v10 = vld [vmem:[%s12220_s11 + $0xa8] sm:$0xff] }
 0x34f   :  { %7630 = vmatpush1.bf16.msra.mxu1 %v7629_v23  ;;  %v7710_v12 = vpack.c.bf16 %v10146_v58, %v10143_v31  ;;  %v2146_v20 = vadd.f32 %v9990_v6, %v2074_v61  ;;  %v7632_v63 = vpack.c.bf16 %v2144_v16, %v2143_v24  ;;  %v2075_v18 = vmul.f32 %v9986_v7, %v9426_v51  ;;  %v2223_v15 = vld [vmem:[%s12220_s11 + $0xa0] sm:$0xff]  ;;  %v2228_v46 = vld [vmem:[%s12220_s11 + $0xc8] sm:$0xff] }
 0x350   :  { %7631 = vmatprep.subr.bf16.mxu1 %v12363_v44  ;;  %v2076_v57 = vmul.f32 %v9986_v7, %v9421_v8  ;;  %v2077_v16 = vmul.f32 %v9986_v7, %v9448_v60  ;;  %v2078_v52 = vmul.f32 %v9986_v7, %v9442_v38  ;;  %v2227_v19 = vld [vmem:[%s12220_s11 + $0xc0] sm:$0xff]  ;;  %v2232_v25 = vld [vmem:[%s12220_s11 + $0xe8] sm:$0xff] }
 0x351   :  { %v2147_v23 = vadd.f32 %v9990_v6, %v2075_v18  ;;  %v7635_v24 = vpack.c.bf16 %v2146_v20, %v2145_v1  ;;  %v2079_v18 = vmul.f32 %v9986_v7, %v12364_v11  ;;  %v2080_v1 = vmul.f32 %v9986_v7, %v12365_v33  ;;  %v2231_v59 = vld [vmem:[%s12220_s11 + $0xe0] sm:$0xff]  ;;  %v2236_v50 = vld [vmem:[%s12220_s11 + $0x108] sm:$0xff] }
 0x352   :  { %v2148_v61 = vadd.f32 %v9990_v6, %v2076_v57  ;;  %v2149_v51 = vadd.f32 %v9990_v6, %v2077_v16  ;;  %v2150_v8 = vadd.f32 %v9990_v6, %v2078_v52  ;;  %v12366_v57 = vld [vmem:[#allocation19_spill] sm:$0xff]  ;;  %v12367_v16 = vld [vmem:[#allocation16_spill] sm:$0xff]  ;;  %v2240_v43 = vld [vmem:[%s12220_s11 + $0x128] sm:$0xff] }
 0x353   :  { %7633 = vmatpush1.bf16.msra.mxu1 %v7632_v63  ;;  %v2151_v60 = vadd.f32 %v9990_v6, %v2079_v18  ;;  %v2152_v38 = vadd.f32 %v9990_v6, %v2080_v1  ;;  %v2082_v52 = vmul.f32 %v9986_v7, %v12367_v16  ;;  %v12369_v18 = vld [vmem:[#allocation18_spill] sm:$0xff]  ;;  %v12371_v16 = vld [vmem:[#allocation23_spill] sm:$0xff]  ;;  %v2235_v56 = vld [vmem:[%s12220_s11 + $0x100] sm:$0xff] }
 0x354   :  { %7634 = vmatprep.subr.bf16.mxu1 %v12363_v44  ;;  %v7638_v63 = vpack.c.bf16 %v2148_v61, %v2147_v23  ;;  %v7641_v20 = vpack.c.bf16 %v2150_v8, %v2149_v51  ;;  %v12368_v61 = vld [vmem:[#allocation20_spill] sm:$0xff]  ;;  %v2084_v51 = vmul.f32 %v9986_v7, %v12369_v18  ;;  %v12373_v18 = vld [vmem:[#allocation25_spill] sm:$0xff] }
 0x355   :  { %v2154_v33 = vadd.f32 %v9990_v6, %v2082_v52  ;;  %v7644_v23 = vpack.c.bf16 %v2152_v38, %v2151_v60  ;;  %v2086_v60 = vmul.f32 %v9986_v7, %v12371_v16  ;;  %v12375_v16 = vld [vmem:[#allocation27_spill] sm:$0xff]  ;;  %v2239_v55 = vld [vmem:[%s12220_s11 + $0x120] sm:$0xff]  ;;  %v2244_v48 = vld [vmem:[%s12220_s11 + $0x148] sm:$0xff] }
 0x356   :  { %v2156_v1 = vadd.f32 %v9990_v6, %v2084_v51  ;;  %v2243_v0 = vld [vmem:[%s12220_s11 + $0x140] sm:$0xff]  ;;  %v2248_v28 = vld [vmem:[%s12220_s11 + $0x168] sm:$0xff] }
 0x357   :  { %7636 = vmatpush1.bf16.msra.mxu1 %v7635_v24  ;;  %v2081_v24 = vmul.f32 %v9986_v7, %v12366_v57  ;;  %v12370_v57 = vld [vmem:[#allocation21_spill] sm:$0xff]  ;;  %v2158_v52 = vadd.f32 %v9990_v6, %v2086_v60 }
 0x358   :  { %7637 = vmatprep.subr.bf16.mxu1 %v12363_v44  ;;  %v2247_v41 = vld [vmem:[%s12220_s11 + $0x160] sm:$0xff]  ;;  %v2252_v27 = vld [vmem:[%s12220_s11 + $0x188] sm:$0xff] }
 0x359   :  { %v2153_v11 = vadd.f32 %v9990_v6, %v2081_v24  ;;  %v2085_v24 = vmul.f32 %v9986_v7, %v12370_v57  ;;  %v12374_v57 = vld [vmem:[#allocation24_spill] sm:$0xff]  ;;  %v2256_v32 = vld [vmem:[%s12220_s11 + $0x1a8] sm:$0xff] }
 0x35a   :  { %v2251_v13 = vld [vmem:[%s12220_s11 + $0x180] sm:$0xff]  ;;  %v2260_v40 = vld [vmem:[%s12220_s11 + $0x1c8] sm:$0xff] }
 0x35b   :  { %7639 = vmatpush1.bf16.msra.mxu1 %v7638_v63  ;;  %v2083_v63 = vmul.f32 %v9986_v7, %v12368_v61  ;;  %v2157_v38 = vadd.f32 %v9990_v6, %v2085_v24  ;;  %v12372_v61 = vld [vmem:[#allocation22_spill] sm:$0xff]  ;;  %v2089_v24 = vmul.f32 %v9986_v7, %v12374_v57  ;;  %v12378_v57 = vld [vmem:[#allocation5_spill] sm:$0xff] }
 0x35c   :  { %7640 = vmatprep.subr.bf16.mxu1 %v12363_v44  ;;  %v2255_v17 = vld [vmem:[%s12220_s11 + $0x1a0] sm:$0xff]  ;;  %v2264_v58 = vld [vmem:[%s12220_s11 + $0x1e8] sm:$0xff] }
 0x35d   :  { %v2155_v8 = vadd.f32 %v9990_v6, %v2083_v63  ;;  %v2087_v63 = vmul.f32 %v9986_v7, %v12372_v61  ;;  %v12376_v61 = vld [vmem:[#allocation26_spill] sm:$0xff]  ;;  %v2259_v31 = vld [vmem:[%s12220_s11 + $0x1c0] sm:$0xff] }
 0x35f   :  { %7642 = vmatpush1.bf16.msra.mxu1 %v7641_v20  ;;  %v7647_v20 = vpack.c.bf16 %v2154_v33, %v2153_v11  ;;  %v2088_v11 = vmul.f32 %v9986_v7, %v12373_v18  ;;  %v2159_v33 = vadd.f32 %v9990_v6, %v2087_v63  ;;  %v2091_v63 = vmul.f32 %v9986_v7, %v12376_v61  ;;  %v12377_v18 = vld [vmem:[#allocation28_spill] sm:$0xff]  ;;  %v12380_v61 = vld [vmem:[#allocation6_spill] sm:$0xff] }
 0x360   :  { %7643 = vmatprep.subr.bf16.mxu1 %v12363_v44 }
 0x361   :  { %v2160_v51 = vadd.f32 %v9990_v6, %v2088_v11 }
 0x363   :  { %7645 = vmatpush1.bf16.msra.mxu1 %v7644_v23  ;;  %v7650_v23 = vpack.c.bf16 %v2156_v1, %v2155_v8  ;;  %v2090_v8 = vmul.f32 %v9986_v7, %v12375_v16  ;;  %v2161_v1 = vadd.f32 %v9990_v6, %v2089_v24  ;;  %v2093_v24 = vmul.f32 %v9986_v7, %v12378_v57  ;;  %v12379_v16 = vld [vmem:[#allocation7_spill] sm:$0xff]  ;;  %v12382_v57 = vld [vmem:[#allocation8_spill] sm:$0xff] }
 0x364   :  { %7646 = vmatprep.subr.bf16.mxu1 %v12363_v44 }
 0x365   :  { %v2162_v60 = vadd.f32 %v9990_v6, %v2090_v8 }
 0x367   :  { %7648 = vmatpush1.bf16.msra.mxu1 %v7647_v20  ;;  %v7653_v20 = vpack.c.bf16 %v2158_v52, %v2157_v38  ;;  %v2092_v38 = vmul.f32 %v9986_v7, %v12377_v18  ;;  %v2163_v52 = vadd.f32 %v9990_v6, %v2091_v63  ;;  %v2095_v63 = vmul.f32 %v9986_v7, %v12380_v61  ;;  %v12381_v18 = vld [vmem:[#allocation9_spill] sm:$0xff] }
 0x368   :  { %7649 = vmatprep.subr.bf16.mxu1 %v12363_v44 }
 0x369   :  { %v2164_v11 = vadd.f32 %v9990_v6, %v2092_v38 }
 0x36b   :  { %7651 = vmatpush1.bf16.msra.mxu1 %v7650_v23  ;;  %v7656_v23 = vpack.c.bf16 %v2160_v51, %v2159_v33  ;;  %v2094_v33 = vmul.f32 %v9986_v7, %v12379_v16  ;;  %v2165_v51 = vadd.f32 %v9990_v6, %v2093_v24  ;;  %v2097_v24 = vmul.f32 %v9986_v7, %v12382_v57  ;;  %v12383_v16 = vld [vmem:[#allocation11_spill] sm:$0xff]  ;;  %v2307_v57 = vld [vmem:[%s12220_s11 + $0x340] sm:$0xff] }
 0x36c   :  { %7652 = vmatprep.subr.bf16.mxu1 %v12363_v44 }
 0x36d   :  { %v2166_v8 = vadd.f32 %v9990_v6, %v2094_v33 }
 0x36f   :  { %7654 = vmatpush1.bf16.msra.mxu1 %v7653_v20  ;;  %v7659_v20 = vpack.c.bf16 %v2162_v60, %v2161_v1  ;;  %v2096_v1 = vmul.f32 %v9986_v7, %v12381_v18  ;;  %v2167_v60 = vadd.f32 %v9990_v6, %v2095_v63  ;;  %v2295_v63 = vld [vmem:[%s12220_s11 + $0x2e0] sm:$0xff]  ;;  %v2300_v18 = vld [vmem:[%s12220_s11 + $0x308] sm:$0xff] }
 0x370   :  { %7655 = vmatprep.subr.bf16.mxu1 %v12363_v44 }
 0x371   :  { %v2168_v38 = vadd.f32 %v9990_v6, %v2096_v1  ;;  %v2299_v1 = vld [vmem:[%s12220_s11 + $0x300] sm:$0xff] }
 0x373   :  { %7657 = vmatpush1.bf16.msra.mxu1 %v7656_v23  ;;  %v7662_v23 = vpack.c.bf16 %v2164_v11, %v2163_v52  ;;  %v2098_v52 = vmul.f32 %v9986_v7, %v12383_v16  ;;  %v2169_v11 = vadd.f32 %v9990_v6, %v2097_v24  ;;  %v2208_v7 = vld [vmem:[%s12220_s11 + $0x28] sm:$0xff]  ;;  %v2311_v16 = vld [vmem:[%s12220_s11 + $0x360] sm:$0xff] }
 0x374   :  { %7658 = vmatprep.subr.bf16.mxu1 %v12363_v44  ;;  %v2312_v24 = vld [vmem:[%s12220_s11 + $0x368] sm:$0xff] }
 0x375   :  { %v2170_v33 = vadd.f32 %v9990_v6, %v2098_v52  ;;  %v2207_v6 = vld [vmem:[%s12220_s11 + $0x20] sm:$0xff]  ;;  %v2316_v52 = vld [vmem:[%s12220_s11 + $0x388] sm:$0xff] }
 0x377   :  { %7660 = vmatpush1.bf16.msra.mxu1 %v7659_v20  ;;  %v7665_v20 = vpack.c.bf16 %v2166_v8, %v2165_v51  ;;  %v7671_v61 = vpack.c.bf16 %v2170_v33, %v2169_v11  ;;  %v2203_v51 = vld [vmem:[%s12220_s11] sm:$0xff]  ;;  %v2212_v8 = vld [vmem:[%s12220_s11 + $0x48] sm:$0xff] }
 0x378   :  { %7661 = vmatprep.subr.bf16.mxu1 %v12363_v44  ;;  %v2315_v11 = vld [vmem:[%s12220_s11 + $0x380] sm:$0xff]  ;;  %v2320_v33 = vld [vmem:[%s12220_s11 + $0x3a8] sm:$0xff] }
 0x37b   :  { %7663 = vmatpush1.bf16.msra.mxu1 %v7662_v23  ;;  %v7668_v23 = vpack.c.bf16 %v2168_v38, %v2167_v60  ;;  %v2304_v60 = vld [vmem:[%s12220_s11 + $0x328] sm:$0xff]  ;;  %v2303_v38 = vld [vmem:[%s12220_s11 + $0x320] sm:$0xff] }
 0x37c   :  { %7664 = vmatprep.subr.bf16.mxu1 %v12363_v44 }
 0x37f   :  { %7666 = vmatpush1.bf16.msra.mxu1 %v7665_v20  ;;  %v2308_v20 = vld [vmem:[%s12220_s11 + $0x348] sm:$0xff] }
 0x380   :  { %7667 = vmatprep.subr.bf16.mxu1 %v12363_v44 }
 0x383   :  { %7669 = vmatpush1.bf16.msra.mxu1 %v7668_v23  ;;  %v2319_v23 = vld [vmem:[%s12220_s11 + $0x3a0] sm:$0xff] }
 0x384   :  { %7670 = vmatprep.subr.bf16.mxu1 %v12363_v44 }
 0x387   :  { %7672 = vmatpush1.bf16.msra.mxu1 %v7671_v61  ;;  %v2324_v61 = vld [vmem:[%s12220_s11 + $0x3c8] sm:$0xff] }
 0x388   :  { %7673 = vmatprep.subr.bf16.mxu1 %v12363_v44 }
 0x38a   :  { %2524 = vmatmul.mubr.f32.vlgmr.msra.gmra.mrb[46].mxu1 %v2203_v51  ;;  %v2323_v51 = vld [vmem:[%s12220_s11 + $0x3c0] sm:$0xff] }
 0x38b   :  { %7675 = vmatpush1.bf16.msra.mxu1 %v7674_v54  ;;  %2528 = vmatprep.mubr.f32.mxu1 %v2208_v7  ;;  %v12384_v54 = vpack.c.bf16 %v10152_v49, %v10149_v47  ;;  %v2263_v47 = vld [vmem:[%s12220_s11 + $0x1e0] sm:$0xff]  ;;  %v2268_v49 = vld [vmem:[%s12220_s11 + $0x208] sm:$0xff] }
 0x38c   :  { %7676 = vmatprep.subr.bf16.mxu1 %v12363_v44  ;;  %v2328_v7 = vld [vmem:[%s12220_s11 + $0x3e8] sm:$0xff] }
 0x38e   :  { %2529 = vmatmul.mubr.f32.gmra.mrb[48].mxu1 %v2207_v6  ;;  %v2327_v6 = vld [vmem:[%s12220_s11 + $0x3e0] sm:$0xff] }
 0x38f   :  { %7678 = vmatpush1.bf16.msra.mxu1 %v7677_v34  ;;  %2533 = vmatprep.mubr.f32.mxu1 %v2212_v8  ;;  %v12385_v34 = vpack.c.bf16 %v10160_v26, %v10155_v53  ;;  %v2267_v53 = vld [vmem:[%s12220_s11 + $0x200] sm:$0xff]  ;;  %v2272_v26 = vld [vmem:[%s12220_s11 + $0x228] sm:$0xff] }
 0x390   :  { %7679 = vmatprep.subr.bf16.mxu1 %v12363_v44  ;;  %v2332_v8 = vld [vmem:[%s12220_s11 + $0x408] sm:$0xff] }
 0x392   :  { %2534 = vmatmul.mubr.f32.gmra.mrb[50].mxu1 %v2211_v42  ;;  %v2331_v42 = vld [vmem:[%s12220_s11 + $0x400] sm:$0xff] }
 0x393   :  { %7681 = vmatpush1.bf16.msra.mxu1 %v7680_v21  ;;  %2538 = vmatprep.mubr.f32.mxu1 %v2216_v4  ;;  %v12386_v21 = vpack.c.bf16 %v10163_v36, %v9993_v3  ;;  %v2276_v3 = vld [vmem:[%s12220_s11 + $0x248] sm:$0xff]  ;;  %v2275_v36 = vld [vmem:[%s12220_s11 + $0x240] sm:$0xff] }
 0x394   :  { %7682 = vmatprep.subr.bf16.mxu1 %v12363_v44  ;;  %v2336_v4 = vld [vmem:[%s12220_s11 + $0x428] sm:$0xff] }
 0x396   :  { %2539 = vmatmul.mubr.f32.gmra.mrb[52].mxu1 %v2215_v45  ;;  %v2335_v45 = vld [vmem:[%s12220_s11 + $0x420] sm:$0xff] }
 0x397   :  { %7684 = vmatpush1.bf16.msra.mxu1 %v7683_v37  ;;  %2543 = vmatprep.mubr.f32.mxu1 %v2220_v2  ;;  %v2271_v37 = vld [vmem:[%s12220_s11 + $0x220] sm:$0xff]  ;;  %v2340_v2 = vld [vmem:[%s12220_s11 + $0x448] sm:$0xff] }
 0x398   :  { %7685 = vmatprep.subr.bf16.mxu1 %v12363_v44 }
 0x39a   :  { %2544 = vmatmul.mubr.f32.gmra.mrb[54].mxu1 %v2219_v14  ;;  %v2339_v14 = vld [vmem:[%s12220_s11 + $0x440] sm:$0xff] }
 0x39b   :  { %7687 = vmatpush1.bf16.msra.mxu1 %v7686_v35  ;;  %2548 = vmatprep.mubr.f32.mxu1 %v2224_v10  ;;  %v2280_v35 = vld [vmem:[%s12220_s11 + $0x268] sm:$0xff] }
 0x39c   :  { %7688 = vmatprep.subr.bf16.mxu1 %v12363_v44  ;;  %v2344_v10 = vld [vmem:[%s12220_s11 + $0x468] sm:$0xff] }
 0x39e   :  { %2549 = vmatmul.mubr.f32.gmra.mrb[56].mxu1 %v2223_v15  ;;  %v2343_v15 = vld [vmem:[%s12220_s11 + $0x460] sm:$0xff] }
 0x39f   :  { %7690 = vmatpush1.bf16.msra.mxu1 %v7689_v30  ;;  %2553 = vmatprep.mubr.f32.mxu1 %v2228_v46  ;;  %v2279_v30 = vld [vmem:[%s12220_s11 + $0x260] sm:$0xff]  ;;  %v2348_v46 = vld [vmem:[%s12220_s11 + $0x488] sm:$0xff] }
 0x3a0   :  { %7691 = vmatprep.subr.bf16.mxu1 %v12363_v44 }
 0x3a2   :  { %2554 = vmatmul.mubr.f32.gmra.mrb[58].mxu1 %v2227_v19  ;;  %v2347_v19 = vld [vmem:[%s12220_s11 + $0x480] sm:$0xff] }
 0x3a3   :  { %7693 = vmatpush1.bf16.msra.mxu1 %v7692_v5  ;;  %2558 = vmatprep.mubr.f32.mxu1 %v2232_v25  ;;  %v2284_v5 = vld [vmem:[%s12220_s11 + $0x288] sm:$0xff] }
 0x3a4   :  { %7694 = vmatprep.subr.bf16.mxu1 %v12363_v44  ;;  %v2352_v25 = vld [vmem:[%s12220_s11 + $0x4a8] sm:$0xff] }
 0x3a6   :  { %2559 = vmatmul.mubr.f32.gmra.mrb[60].mxu1 %v2231_v59  ;;  %v2351_v59 = vld [vmem:[%s12220_s11 + $0x4a0] sm:$0xff] }
 0x3a7   :  { %7696 = vmatpush1.bf16.msra.mxu1 %v7695_v9  ;;  %2563 = vmatprep.mubr.f32.mxu1 %v2236_v50  ;;  %v2283_v9 = vld [vmem:[%s12220_s11 + $0x280] sm:$0xff]  ;;  %v2356_v50 = vld [vmem:[%s12220_s11 + $0x4c8] sm:$0xff] }
 0x3a8   :  { %7697 = vmatprep.subr.bf16.mxu1 %v12363_v44 }
 0x3aa   :  { %2564 = vmatmul.mubr.f32.gmra.mrb[62].mxu1 %v2235_v56  ;;  %v2355_v56 = vld [vmem:[%s12220_s11 + $0x4c0] sm:$0xff] }
 0x3ab   :  { %7699 = vmatpush1.bf16.msra.mxu1 %v7698_v22  ;;  %2568 = vmatprep.mubr.f32.mxu1 %v2240_v43  ;;  %v2288_v22 = vld [vmem:[%s12220_s11 + $0x2a8] sm:$0xff] }
 0x3ac   :  { %7700 = vmatprep.subr.bf16.mxu1 %v12363_v44  ;;  %v2360_v43 = vld [vmem:[%s12220_s11 + $0x4e8] sm:$0xff] }
 0x3ae   :  { %2569 = vmatmul.mubr.f32.gmra.mrb[64].mxu1 %v2239_v55  ;;  %v2359_v55 = vld [vmem:[%s12220_s11 + $0x4e0] sm:$0xff] }
 0x3af   :  { %7702 = vmatpush1.bf16.msra.mxu1 %v7701_v62  ;;  %2573 = vmatprep.mubr.f32.mxu1 %v2244_v48  ;;  %v2287_v62 = vld [vmem:[%s12220_s11 + $0x2a0] sm:$0xff]  ;;  %v2364_v48 = vld [vmem:[%s12220_s11 + $0x508] sm:$0xff] }
 0x3b0   :  { %7703 = vmatprep.subr.bf16.mxu1 %v12363_v44 }
 0x3b2   :  { %2574 = vmatmul.mubr.f32.gmra.mrb[66].mxu1 %v2243_v0  ;;  %v2363_v0 = vld [vmem:[%s12220_s11 + $0x500] sm:$0xff] }
 0x3b3   :  { %7705 = vmatpush1.bf16.msra.mxu1 %v7704_v29  ;;  %2578 = vmatprep.mubr.f32.mxu1 %v2248_v28  ;;  %v2292_v29 = vld [vmem:[%s12220_s11 + $0x2c8] sm:$0xff] }
 0x3b4   :  { %7706 = vmatprep.subr.bf16.mxu1 %v12363_v44  ;;  %v2368_v28 = vld [vmem:[%s12220_s11 + $0x528] sm:$0xff] }
 0x3b6   :  { %2579 = vmatmul.mubr.f32.gmra.mrb[68].mxu1 %v2247_v41  ;;  %v2367_v41 = vld [vmem:[%s12220_s11 + $0x520] sm:$0xff] }
 0x3b7   :  { %7708 = vmatpush1.bf16.msra.mxu1 %v7707_v39  ;;  %2583 = vmatprep.mubr.f32.mxu1 %v2252_v27  ;;  %v2291_v39 = vld [vmem:[%s12220_s11 + $0x2c0] sm:$0xff]  ;;  %v2372_v27 = vld [vmem:[%s12220_s11 + $0x548] sm:$0xff] }
 0x3b8   :  { %7709 = vmatprep.subr.bf16.mxu1 %v12363_v44 }
 0x3ba   :  { %2584 = vmatmul.mubr.f32.gmra.mrb[70].mxu1 %v2251_v13  ;;  %v2371_v13 = vld [vmem:[%s12220_s11 + $0x540] sm:$0xff] }
 0x3bb   :  { %7711 = vmatpush1.bf16.msra.mxu1 %v7710_v12  ;;  %2588 = vmatprep.mubr.f32.mxu1 %v2256_v32  ;;  %v2296_v12 = vld [vmem:[%s12220_s11 + $0x2e8] sm:$0xff] }
 0x3bc   :  { %7712 = vmatprep.subr.bf16.mxu1 %v12363_v44  ;;  %v2376_v32 = vld [vmem:[%s12220_s11 + $0x568] sm:$0xff] }
 0x3be   :  { %2589 = vmatmul.mubr.f32.gmra.mrb[72].mxu1 %v2255_v17  ;;  %v2375_v17 = vld [vmem:[%s12220_s11 + $0x560] sm:$0xff] }
 0x3bf   :  { %7714 = vmatpush1.bf16.msra.mxu1 %v12384_v54  ;;  %2593 = vmatprep.mubr.f32.mxu1 %v2260_v40  ;;  %v2380_v40 = vld [vmem:[%s12220_s11 + $0x588] sm:$0xff]  ;;  %v2379_v54 = vld [vmem:[%s12220_s11 + $0x580] sm:$0xff] }
 0x3c0   :  { %7715 = vmatprep.subr.bf16.mxu1 %v12363_v44 }
 0x3c2   :  { %2594 = vmatmul.mubr.f32.gmra.mrb[74].mxu1 %v2259_v31  ;;  %v2384_v31 = vld [vmem:[%s12220_s11 + $0x5a8] sm:$0xff] }
 0x3c3   :  { %7717 = vmatpush1.bf16.msra.mxu1 %v12385_v34  ;;  %2598 = vmatprep.mubr.f32.mxu1 %v2264_v58  ;;  %v2383_v58 = vld [vmem:[%s12220_s11 + $0x5a0] sm:$0xff]  ;;  %v2388_v34 = vld [vmem:[%s12220_s11 + $0x5c8] sm:$0xff] }
 0x3c4   :  { %7718 = vmatprep.subr.bf16.mxu1 %v12363_v44 }
 0x3c6   :  { %2599 = vmatmul.mubr.f32.gmra.mrb[76].mxu1 %v2263_v47  ;;  %v2387_v47 = vld [vmem:[%s12220_s11 + $0x5c0] sm:$0xff] }
 0x3c7   :  { %7720 = vmatpush1.bf16.msra.mxu1 %v12386_v21  ;;  %2603 = vmatprep.mubr.f32.mxu1 %v2268_v49  ;;  %v2392_v49 = vld [vmem:[%s12220_s11 + $0x5e8] sm:$0xff]  ;;  %v2391_v21 = vld [vmem:[%s12220_s11 + $0x5e0] sm:$0xff] }
 0x3ca   :  { %2604 = vmatmul.mubr.f32.gmra.mrb[78].mxu1 %v2267_v53  ;;  %v2396_v53 = vld [vmem:[%s12220_s11 + $0x608] sm:$0xff] }
 0x3cb   :  { %2608 = vmatprep.mubr.f32.mxu1 %v2272_v26  ;;  %v2395_v26 = vld [vmem:[%s12220_s11 + $0x600] sm:$0xff] }
 0x3ce   :  { %2609 = vmatmul.mubr.f32.gmra.mrb[80].mxu1 %v2271_v37  ;;  %v2400_v37 = vld [vmem:[%s12220_s11 + $0x628] sm:$0xff] }
 0x3cf   :  { %2613 = vmatprep.mubr.f32.mxu1 %v2276_v3  ;;  %v2399_v3 = vld [vmem:[%s12220_s11 + $0x620] sm:$0xff] }
 0x3d2   :  { %2614 = vmatmul.mubr.f32.gmra.mrb[82].mxu1 %v2275_v36  ;;  %v2404_v36 = vld [vmem:[%s12220_s11 + $0x648] sm:$0xff] }
 0x3d3   :  { %2618 = vmatprep.mubr.f32.mxu1 %v2280_v35  ;;  %v2403_v35 = vld [vmem:[%s12220_s11 + $0x640] sm:$0xff] }
 0x3d6   :  { %2619 = vmatmul.mubr.f32.gmra.mrb[84].mxu1 %v2279_v30  ;;  %v2408_v30 = vld [vmem:[%s12220_s11 + $0x668] sm:$0xff] }
 0x3d7   :  { %2623 = vmatprep.mubr.f32.mxu1 %v2284_v5  ;;  %v2407_v5 = vld [vmem:[%s12220_s11 + $0x660] sm:$0xff] }
 0x3da   :  { %2624 = vmatmul.mubr.f32.gmra.mrb[86].mxu1 %v2283_v9  ;;  %v2412_v9 = vld [vmem:[%s12220_s11 + $0x688] sm:$0xff] }
 0x3db   :  { %2628 = vmatprep.mubr.f32.mxu1 %v2288_v22  ;;  %v2411_v22 = vld [vmem:[%s12220_s11 + $0x680] sm:$0xff] }
 0x3de   :  { %2629 = vmatmul.mubr.f32.gmra.mrb[88].mxu1 %v2287_v62  ;;  %v2416_v62 = vld [vmem:[%s12220_s11 + $0x6a8] sm:$0xff] }
 0x3df   :  { %2633 = vmatprep.mubr.f32.mxu1 %v2292_v29  ;;  %v2415_v29 = vld [vmem:[%s12220_s11 + $0x6a0] sm:$0xff] }
 0x3e2   :  { %2634 = vmatmul.mubr.f32.gmra.mrb[90].mxu1 %v2291_v39  ;;  %v2420_v39 = vld [vmem:[%s12220_s11 + $0x6c8] sm:$0xff] }
 0x3e3   :  { %2638 = vmatprep.mubr.f32.mxu1 %v2296_v12  ;;  %v2419_v12 = vld [vmem:[%s12220_s11 + $0x6c0] sm:$0xff] }
 0x3e6   :  { %2639 = vmatmul.mubr.f32.gmra.mrb[92].mxu1 %v2295_v63  ;;  %v2424_v63 = vld [vmem:[%s12220_s11 + $0x6e8] sm:$0xff] }
 0x3e7   :  { %2643 = vmatprep.mubr.f32.mxu1 %v2300_v18  ;;  %v2423_v18 = vld [vmem:[%s12220_s11 + $0x6e0] sm:$0xff] }
 0x3ea   :  { %2644 = vmatmul.mubr.f32.gmra.mrb[94].mxu1 %v2299_v1  ;;  %v2428_v1 = vld [vmem:[%s12220_s11 + $0x708] sm:$0xff] }
 0x3eb   :  { %2648 = vmatprep.mubr.f32.mxu1 %v2304_v60  ;;  %v2427_v60 = vld [vmem:[%s12220_s11 + $0x700] sm:$0xff] }
 0x3ee   :  { %2649 = vmatmul.mubr.f32.gmra.mrb[96].mxu1 %v2303_v38  ;;  %v2432_v38 = vld [vmem:[%s12220_s11 + $0x728] sm:$0xff] }
 0x3ef   :  { %2653 = vmatprep.mubr.f32.mxu1 %v2308_v20  ;;  %v2431_v20 = vld [vmem:[%s12220_s11 + $0x720] sm:$0xff] }
 0x3f2   :  { %2654 = vmatmul.mubr.f32.gmra.mrb[98].mxu1 %v2307_v57  ;;  %v2436_v57 = vld [vmem:[%s12220_s11 + $0x748] sm:$0xff] }
 0x3f3   :  { %2658 = vmatprep.mubr.f32.mxu1 %v2312_v24  ;;  %v2435_v24 = vld [vmem:[%s12220_s11 + $0x740] sm:$0xff] }
 0x3f6   :  { %2659 = vmatmul.mubr.f32.gmra.mrb[100].mxu1 %v2311_v16  ;;  %v2440_v16 = vld [vmem:[%s12220_s11 + $0x768] sm:$0xff] }
 0x3f7   :  { %2663 = vmatprep.mubr.f32.mxu1 %v2316_v52  ;;  %v2439_v52 = vld [vmem:[%s12220_s11 + $0x760] sm:$0xff] }
 0x3fa   :  { %2664 = vmatmul.mubr.f32.gmra.mrb[102].mxu1 %v2315_v11  ;;  %v2444_v11 = vld [vmem:[%s12220_s11 + $0x788] sm:$0xff] }
 0x3fb   :  { %2668 = vmatprep.mubr.f32.mxu1 %v2320_v33  ;;  %v2443_v33 = vld [vmem:[%s12220_s11 + $0x780] sm:$0xff] }
 0x3fe   :  { %2669 = vmatmul.mubr.f32.gmra.mrb[104].mxu1 %v2319_v23  ;;  %v2448_v23 = vld [vmem:[%s12220_s11 + $0x7a8] sm:$0xff] }
 0x3ff   :  { %2673 = vmatprep.mubr.f32.mxu1 %v2324_v61  ;;  %v2447_v61 = vld [vmem:[%s12220_s11 + $0x7a0] sm:$0xff] }
 0x402   :  { %2674 = vmatmul.mubr.f32.gmra.mrb[106].mxu1 %v2323_v51  ;;  %v2452_v51 = vld [vmem:[%s12220_s11 + $0x7c8] sm:$0xff] }
 0x403   :  { %2678 = vmatprep.mubr.f32.mxu1 %v2328_v7  ;;  %v2451_v7 = vld [vmem:[%s12220_s11 + $0x7c0] sm:$0xff] }
 0x406   :  { %2679 = vmatmul.mubr.f32.gmra.mrb[108].mxu1 %v2327_v6  ;;  %v2456_v6 = vld [vmem:[%s12220_s11 + $0x7e8] sm:$0xff] }
 0x407   :  { %2683 = vmatprep.mubr.f32.mxu1 %v2332_v8  ;;  %v2455_v8 = vld [vmem:[%s12220_s11 + $0x7e0] sm:$0xff] }
 0x40a   :  { %2684 = vmatmul.mubr.f32.gmra.mrb[110].mxu1 %v2331_v42  ;;  %v2206_v42 = vld [vmem:[%s12220_s11 + $0x18] sm:$0xff] }
 0x40b   :  { %2688 = vmatprep.mubr.f32.mxu1 %v2336_v4  ;;  %v2205_v4 = vld [vmem:[%s12220_s11 + $0x10] sm:$0xff] }
 0x40e   :  { %2689 = vmatmul.mubr.f32.gmra.mrb[112].mxu1 %v2335_v45  ;;  %v2210_v45 = vld [vmem:[%s12220_s11 + $0x38] sm:$0xff] }
 0x40f   :  { %2693 = vmatprep.mubr.f32.mxu1 %v2340_v2  ;;  %v2209_v2 = vld [vmem:[%s12220_s11 + $0x30] sm:$0xff] }
 0x412   :  { %2694 = vmatmul.mubr.f32.gmra.mrb[114].mxu1 %v2339_v14  ;;  %v2214_v14 = vld [vmem:[%s12220_s11 + $0x58] sm:$0xff] }
 0x413   :  { %2698 = vmatprep.mubr.f32.mxu1 %v2344_v10  ;;  %v2213_v10 = vld [vmem:[%s12220_s11 + $0x50] sm:$0xff] }
 0x416   :  { %2699 = vmatmul.mubr.f32.gmra.mrb[116].mxu1 %v2343_v15  ;;  %v2218_v15 = vld [vmem:[%s12220_s11 + $0x78] sm:$0xff] }
 0x417   :  { %2703 = vmatprep.mubr.f32.mxu1 %v2348_v46  ;;  %v2217_v46 = vld [vmem:[%s12220_s11 + $0x70] sm:$0xff] }
 0x41a   :  { %2704 = vmatmul.mubr.f32.gmra.mrb[118].mxu1 %v2347_v19  ;;  %v2222_v19 = vld [vmem:[%s12220_s11 + $0x98] sm:$0xff] }
 0x41b   :  { %2708 = vmatprep.mubr.f32.mxu1 %v2352_v25  ;;  %v2221_v25 = vld [vmem:[%s12220_s11 + $0x90] sm:$0xff] }
 0x41e   :  { %2709 = vmatmul.mubr.f32.gmra.mrb[120].mxu1 %v2351_v59  ;;  %v2226_v59 = vld [vmem:[%s12220_s11 + $0xb8] sm:$0xff] }
 0x41f   :  { %2713 = vmatprep.mubr.f32.mxu1 %v2356_v50  ;;  %v2225_v50 = vld [vmem:[%s12220_s11 + $0xb0] sm:$0xff] }
 0x422   :  { %2714 = vmatmul.mubr.f32.gmra.mrb[122].mxu1 %v2355_v56  ;;  %v2230_v56 = vld [vmem:[%s12220_s11 + $0xd8] sm:$0xff] }
 0x423   :  { %2718 = vmatprep.mubr.f32.mxu1 %v2360_v43  ;;  %v2229_v43 = vld [vmem:[%s12220_s11 + $0xd0] sm:$0xff] }
 0x426   :  { %2719 = vmatmul.mubr.f32.gmra.mrb[124].mxu1 %v2359_v55  ;;  %v2234_v55 = vld [vmem:[%s12220_s11 + $0xf8] sm:$0xff] }
 0x427   :  { %2723 = vmatprep.mubr.f32.mxu1 %v2364_v48  ;;  %v2233_v48 = vld [vmem:[%s12220_s11 + $0xf0] sm:$0xff] }
 0x42a   :  { %2724 = vmatmul.mubr.f32.gmra.mrb[126].mxu1 %v2363_v0  ;;  %v2238_v0 = vld [vmem:[%s12220_s11 + $0x118] sm:$0xff] }
 0x42b   :  { %2728 = vmatprep.mubr.f32.mxu1 %v2368_v28  ;;  %v2237_v28 = vld [vmem:[%s12220_s11 + $0x110] sm:$0xff] }
 0x42e   :  { %2729 = vmatmul.mubr.f32.gmra.mrb[128].mxu1 %v2367_v41  ;;  %v2242_v41 = vld [vmem:[%s12220_s11 + $0x138] sm:$0xff] }
 0x42f   :  { %2733 = vmatprep.mubr.f32.mxu1 %v2372_v27  ;;  %v2241_v27 = vld [vmem:[%s12220_s11 + $0x130] sm:$0xff] }
 0x432   :  { %2734 = vmatmul.mubr.f32.gmra.mrb[130].mxu1 %v2371_v13  ;;  %v2246_v13 = vld [vmem:[%s12220_s11 + $0x158] sm:$0xff] }
 0x433   :  { %2738 = vmatprep.mubr.f32.mxu1 %v2376_v32  ;;  %v2245_v32 = vld [vmem:[%s12220_s11 + $0x150] sm:$0xff] }
 0x436   :  { %2739 = vmatmul.mubr.f32.gmra.mrb[132].mxu1 %v2375_v17  ;;  %v2250_v17 = vld [vmem:[%s12220_s11 + $0x178] sm:$0xff] }
 0x437   :  { %2743 = vmatprep.mubr.f32.mxu1 %v2380_v40  ;;  %v2249_v40 = vld [vmem:[%s12220_s11 + $0x170] sm:$0xff] }
 0x43a   :  { %2744 = vmatmul.mubr.f32.gmra.mrb[134].mxu1 %v2379_v54  ;;  %v2254_v54 = vld [vmem:[%s12220_s11 + $0x198] sm:$0xff] }
 0x43b   :  { %2748 = vmatprep.mubr.f32.mxu1 %v2384_v31  ;;  %v2253_v31 = vld [vmem:[%s12220_s11 + $0x190] sm:$0xff] }
 0x43e   :  { %2749 = vmatmul.mubr.f32.gmra.mrb[136].mxu1 %v2383_v58  ;;  %v2258_v58 = vld [vmem:[%s12220_s11 + $0x1b8] sm:$0xff] }
 0x43f   :  { %2753 = vmatprep.mubr.f32.mxu1 %v2388_v34  ;;  %v2257_v34 = vld [vmem:[%s12220_s11 + $0x1b0] sm:$0xff] }
 0x442   :  { %2754 = vmatmul.mubr.f32.gmra.mrb[138].mxu1 %v2387_v47  ;;  %v2262_v47 = vld [vmem:[%s12220_s11 + $0x1d8] sm:$0xff] }
 0x443   :  { %2758 = vmatprep.mubr.f32.mxu1 %v2392_v49  ;;  %v2261_v49 = vld [vmem:[%s12220_s11 + $0x1d0] sm:$0xff] }
 0x446   :  { %2759 = vmatmul.mubr.f32.gmra.mrb[140].mxu1 %v2391_v21  ;;  %v2266_v21 = vld [vmem:[%s12220_s11 + $0x1f8] sm:$0xff] }
 0x447   :  { %2763 = vmatprep.mubr.f32.mxu1 %v2396_v53  ;;  %v2265_v53 = vld [vmem:[%s12220_s11 + $0x1f0] sm:$0xff] }
 0x44a   :  { %2764 = vmatmul.mubr.f32.gmra.mrb[142].mxu1 %v2395_v26  ;;  %v2270_v26 = vld [vmem:[%s12220_s11 + $0x218] sm:$0xff] }
 0x44b   :  { %2768 = vmatprep.mubr.f32.mxu1 %v2400_v37  ;;  %v2269_v37 = vld [vmem:[%s12220_s11 + $0x210] sm:$0xff] }
 0x44e   :  { %2769 = vmatmul.mubr.f32.gmra.mrb[144].mxu1 %v2399_v3  ;;  %v2274_v3 = vld [vmem:[%s12220_s11 + $0x238] sm:$0xff] }
 0x44f   :  { %2773 = vmatprep.mubr.f32.mxu1 %v2404_v36  ;;  %v2273_v36 = vld [vmem:[%s12220_s11 + $0x230] sm:$0xff] }
 0x452   :  { %2774 = vmatmul.mubr.f32.gmra.mrb[146].mxu1 %v2403_v35  ;;  %v2278_v35 = vld [vmem:[%s12220_s11 + $0x258] sm:$0xff] }
 0x453   :  { %2778 = vmatprep.mubr.f32.mxu1 %v2408_v30  ;;  %v2277_v30 = vld [vmem:[%s12220_s11 + $0x250] sm:$0xff] }
 0x456   :  { %2779 = vmatmul.mubr.f32.gmra.mrb[148].mxu1 %v2407_v5  ;;  %v2282_v5 = vld [vmem:[%s12220_s11 + $0x278] sm:$0xff] }
 0x457   :  { %2783 = vmatprep.mubr.f32.mxu1 %v2412_v9  ;;  %v2281_v9 = vld [vmem:[%s12220_s11 + $0x270] sm:$0xff] }
 0x45a   :  { %2784 = vmatmul.mubr.f32.gmra.mrb[150].mxu1 %v2411_v22  ;;  %v2286_v22 = vld [vmem:[%s12220_s11 + $0x298] sm:$0xff] }
 0x45b   :  { %2788 = vmatprep.mubr.f32.mxu1 %v2416_v62  ;;  %v2285_v62 = vld [vmem:[%s12220_s11 + $0x290] sm:$0xff] }
 0x45e   :  { %2789 = vmatmul.mubr.f32.gmra.mrb[152].mxu1 %v2415_v29  ;;  %v2290_v29 = vld [vmem:[%s12220_s11 + $0x2b8] sm:$0xff] }
 0x45f   :  { %2793 = vmatprep.mubr.f32.mxu1 %v2420_v39  ;;  %v2289_v39 = vld [vmem:[%s12220_s11 + $0x2b0] sm:$0xff] }
 0x462   :  { %2794 = vmatmul.mubr.f32.gmra.mrb[154].mxu1 %v2419_v12  ;;  %v2294_v12 = vld [vmem:[%s12220_s11 + $0x2d8] sm:$0xff] }
 0x463   :  { %2798 = vmatprep.mubr.f32.mxu1 %v2424_v63  ;;  %v2293_v63 = vld [vmem:[%s12220_s11 + $0x2d0] sm:$0xff] }
 0x466   :  { %2799 = vmatmul.mubr.f32.gmra.mrb[156].mxu1 %v2423_v18  ;;  %v2298_v18 = vld [vmem:[%s12220_s11 + $0x2f8] sm:$0xff] }
 0x467   :  { %2803 = vmatprep.mubr.f32.mxu1 %v2428_v1  ;;  %v2297_v1 = vld [vmem:[%s12220_s11 + $0x2f0] sm:$0xff] }
 0x46a   :  { %2804 = vmatmul.mubr.f32.gmra.mrb[158].mxu1 %v2427_v60  ;;  %v2302_v60 = vld [vmem:[%s12220_s11 + $0x318] sm:$0xff] }
 0x46b   :  { %2808 = vmatprep.mubr.f32.mxu1 %v2432_v38  ;;  %v2301_v38 = vld [vmem:[%s12220_s11 + $0x310] sm:$0xff] }
 0x46e   :  { %2809 = vmatmul.mubr.f32.gmra.mrb[160].mxu1 %v2431_v20  ;;  %v2306_v20 = vld [vmem:[%s12220_s11 + $0x338] sm:$0xff] }
 0x46f   :  { %2813 = vmatprep.mubr.f32.mxu1 %v2436_v57  ;;  %v2305_v57 = vld [vmem:[%s12220_s11 + $0x330] sm:$0xff] }
 0x472   :  { %2814 = vmatmul.mubr.f32.gmra.mrb[162].mxu1 %v2435_v24  ;;  %v2310_v24 = vld [vmem:[%s12220_s11 + $0x358] sm:$0xff] }
 0x473   :  { %2818 = vmatprep.mubr.f32.mxu1 %v2440_v16  ;;  %v2309_v16 = vld [vmem:[%s12220_s11 + $0x350] sm:$0xff] }
 0x476   :  { %2819 = vmatmul.mubr.f32.gmra.mrb[164].mxu1 %v2439_v52  ;;  %v2314_v52 = vld [vmem:[%s12220_s11 + $0x378] sm:$0xff] }
 0x477   :  { %2823 = vmatprep.mubr.f32.mxu1 %v2444_v11  ;;  %v2313_v11 = vld [vmem:[%s12220_s11 + $0x370] sm:$0xff] }
 0x47a   :  { %2824 = vmatmul.mubr.f32.gmra.mrb[166].mxu1 %v2443_v33  ;;  %v2318_v33 = vld [vmem:[%s12220_s11 + $0x398] sm:$0xff] }
 0x47b   :  { %2828 = vmatprep.mubr.f32.mxu1 %v2448_v23  ;;  %v2317_v23 = vld [vmem:[%s12220_s11 + $0x390] sm:$0xff] }
 0x47e   :  { %2829 = vmatmul.mubr.f32.gmra.mrb[168].mxu1 %v2447_v61  ;;  %v2322_v61 = vld [vmem:[%s12220_s11 + $0x3b8] sm:$0xff] }
 0x47f   :  { %2833 = vmatprep.mubr.f32.mxu1 %v2452_v51  ;;  %v2321_v51 = vld [vmem:[%s12220_s11 + $0x3b0] sm:$0xff] }
 0x482   :  { %2834 = vmatmul.mubr.f32.gmra.mrb[170].mxu1 %v2451_v7  ;;  %v2326_v7 = vld [vmem:[%s12220_s11 + $0x3d8] sm:$0xff] }
 0x483   :  { %2838 = vmatprep.mubr.f32.mxu1 %v2456_v6  ;;  %v2325_v6 = vld [vmem:[%s12220_s11 + $0x3d0] sm:$0xff] }
 0x486   :  { %2839 = vmatmul.mubr.f32.gmra.mrb[172].mxu1 %v2455_v8  ;;  %v2330_v8 = vld [vmem:[%s12220_s11 + $0x3f8] sm:$0xff] }
 0x487   :  { %2908 = vmatprep.mubr.f32.mxu1 %v2206_v42  ;;  %v2329_v42 = vld [vmem:[%s12220_s11 + $0x3f0] sm:$0xff] }
 0x48a   :  { %2909 = vmatmul.mubr.f32.vlgmr.msra.gmra.mrb[46].mxu1 %v2205_v4  ;;  %v2334_v4 = vld [vmem:[%s12220_s11 + $0x418] sm:$0xff] }
 0x48b   :  { %2913 = vmatprep.mubr.f32.mxu1 %v2210_v45  ;;  %v2333_v45 = vld [vmem:[%s12220_s11 + $0x410] sm:$0xff] }
 0x48e   :  { %2914 = vmatmul.mubr.f32.gmra.mrb[48].mxu1 %v2209_v2  ;;  %v2338_v2 = vld [vmem:[%s12220_s11 + $0x438] sm:$0xff] }
 0x48f   :  { %2918 = vmatprep.mubr.f32.mxu1 %v2214_v14  ;;  %v2337_v14 = vld [vmem:[%s12220_s11 + $0x430] sm:$0xff] }
 0x492   :  { %2919 = vmatmul.mubr.f32.gmra.mrb[50].mxu1 %v2213_v10  ;;  %v2342_v10 = vld [vmem:[%s12220_s11 + $0x458] sm:$0xff] }
 0x493   :  { %2923 = vmatprep.mubr.f32.mxu1 %v2218_v15  ;;  %v2341_v15 = vld [vmem:[%s12220_s11 + $0x450] sm:$0xff] }
 0x496   :  { %2924 = vmatmul.mubr.f32.gmra.mrb[52].mxu1 %v2217_v46  ;;  %v2346_v46 = vld [vmem:[%s12220_s11 + $0x478] sm:$0xff] }
 0x497   :  { %2928 = vmatprep.mubr.f32.mxu1 %v2222_v19  ;;  %v2345_v19 = vld [vmem:[%s12220_s11 + $0x470] sm:$0xff] }
 0x49a   :  { %2929 = vmatmul.mubr.f32.gmra.mrb[54].mxu1 %v2221_v25  ;;  %v2350_v25 = vld [vmem:[%s12220_s11 + $0x498] sm:$0xff] }
 0x49b   :  { %2933 = vmatprep.mubr.f32.mxu1 %v2226_v59  ;;  %v2349_v59 = vld [vmem:[%s12220_s11 + $0x490] sm:$0xff] }
 0x49e   :  { %2934 = vmatmul.mubr.f32.gmra.mrb[56].mxu1 %v2225_v50  ;;  %v2354_v50 = vld [vmem:[%s12220_s11 + $0x4b8] sm:$0xff] }
 0x49f   :  { %2938 = vmatprep.mubr.f32.mxu1 %v2230_v56  ;;  %v2353_v56 = vld [vmem:[%s12220_s11 + $0x4b0] sm:$0xff] }
 0x4a2   :  { %2939 = vmatmul.mubr.f32.gmra.mrb[58].mxu1 %v2229_v43  ;;  %v2358_v43 = vld [vmem:[%s12220_s11 + $0x4d8] sm:$0xff] }
 0x4a3   :  { %2943 = vmatprep.mubr.f32.mxu1 %v2234_v55  ;;  %v2357_v55 = vld [vmem:[%s12220_s11 + $0x4d0] sm:$0xff] }
 0x4a6   :  { %2944 = vmatmul.mubr.f32.gmra.mrb[60].mxu1 %v2233_v48  ;;  %v2362_v48 = vld [vmem:[%s12220_s11 + $0x4f8] sm:$0xff] }
 0x4a7   :  { %2948 = vmatprep.mubr.f32.mxu1 %v2238_v0  ;;  %v2361_v0 = vld [vmem:[%s12220_s11 + $0x4f0] sm:$0xff] }
 0x4aa   :  { %2949 = vmatmul.mubr.f32.gmra.mrb[62].mxu1 %v2237_v28  ;;  %v2366_v28 = vld [vmem:[%s12220_s11 + $0x518] sm:$0xff] }
 0x4ab   :  { %2953 = vmatprep.mubr.f32.mxu1 %v2242_v41  ;;  %v2365_v41 = vld [vmem:[%s12220_s11 + $0x510] sm:$0xff] }
 0x4ae   :  { %2954 = vmatmul.mubr.f32.gmra.mrb[64].mxu1 %v2241_v27  ;;  %v2370_v27 = vld [vmem:[%s12220_s11 + $0x538] sm:$0xff] }
 0x4af   :  { %2958 = vmatprep.mubr.f32.mxu1 %v2246_v13  ;;  %v2369_v13 = vld [vmem:[%s12220_s11 + $0x530] sm:$0xff] }
 0x4b2   :  { %2959 = vmatmul.mubr.f32.gmra.mrb[66].mxu1 %v2245_v32  ;;  %v2374_v32 = vld [vmem:[%s12220_s11 + $0x558] sm:$0xff] }
 0x4b3   :  { %2963 = vmatprep.mubr.f32.mxu1 %v2250_v17  ;;  %v2373_v17 = vld [vmem:[%s12220_s11 + $0x550] sm:$0xff] }
 0x4b6   :  { %2964 = vmatmul.mubr.f32.gmra.mrb[68].mxu1 %v2249_v40  ;;  %v2378_v40 = vld [vmem:[%s12220_s11 + $0x578] sm:$0xff] }
 0x4b7   :  { %2968 = vmatprep.mubr.f32.mxu1 %v2254_v54  ;;  %v2377_v54 = vld [vmem:[%s12220_s11 + $0x570] sm:$0xff] }
 0x4ba   :  { %2969 = vmatmul.mubr.f32.gmra.mrb[70].mxu1 %v2253_v31  ;;  %v2382_v31 = vld [vmem:[%s12220_s11 + $0x598] sm:$0xff] }
 0x4bb   :  { %2973 = vmatprep.mubr.f32.mxu1 %v2258_v58  ;;  %v2381_v58 = vld [vmem:[%s12220_s11 + $0x590] sm:$0xff] }
 0x4be   :  { %2974 = vmatmul.mubr.f32.gmra.mrb[72].mxu1 %v2257_v34  ;;  %v2386_v34 = vld [vmem:[%s12220_s11 + $0x5b8] sm:$0xff] }
 0x4bf   :  { %2978 = vmatprep.mubr.f32.mxu1 %v2262_v47  ;;  %v2385_v47 = vld [vmem:[%s12220_s11 + $0x5b0] sm:$0xff] }
 0x4c2   :  { %2979 = vmatmul.mubr.f32.gmra.mrb[74].mxu1 %v2261_v49  ;;  %v2390_v49 = vld [vmem:[%s12220_s11 + $0x5d8] sm:$0xff] }
 0x4c3   :  { %2983 = vmatprep.mubr.f32.mxu1 %v2266_v21  ;;  %v2389_v21 = vld [vmem:[%s12220_s11 + $0x5d0] sm:$0xff] }
 0x4c6   :  { %2984 = vmatmul.mubr.f32.gmra.mrb[76].mxu1 %v2265_v53  ;;  %v2394_v53 = vld [vmem:[%s12220_s11 + $0x5f8] sm:$0xff] }
 0x4c7   :  { %2988 = vmatprep.mubr.f32.mxu1 %v2270_v26  ;;  %v2393_v26 = vld [vmem:[%s12220_s11 + $0x5f0] sm:$0xff] }
 0x4ca   :  { %2989 = vmatmul.mubr.f32.gmra.mrb[78].mxu1 %v2269_v37  ;;  %v2398_v37 = vld [vmem:[%s12220_s11 + $0x618] sm:$0xff] }
 0x4cb   :  { %2993 = vmatprep.mubr.f32.mxu1 %v2274_v3  ;;  %v2397_v3 = vld [vmem:[%s12220_s11 + $0x610] sm:$0xff] }
 0x4ce   :  { %2994 = vmatmul.mubr.f32.gmra.mrb[80].mxu1 %v2273_v36  ;;  %v2402_v36 = vld [vmem:[%s12220_s11 + $0x638] sm:$0xff] }
 0x4cf   :  { %2998 = vmatprep.mubr.f32.mxu1 %v2278_v35  ;;  %v2401_v35 = vld [vmem:[%s12220_s11 + $0x630] sm:$0xff] }
 0x4d2   :  { %2999 = vmatmul.mubr.f32.gmra.mrb[82].mxu1 %v2277_v30  ;;  %v2406_v30 = vld [vmem:[%s12220_s11 + $0x658] sm:$0xff] }
 0x4d3   :  { %3003 = vmatprep.mubr.f32.mxu1 %v2282_v5  ;;  %v2405_v5 = vld [vmem:[%s12220_s11 + $0x650] sm:$0xff] }
 0x4d6   :  { %3004 = vmatmul.mubr.f32.gmra.mrb[84].mxu1 %v2281_v9  ;;  %v2410_v9 = vld [vmem:[%s12220_s11 + $0x678] sm:$0xff] }
 0x4d7   :  { %3008 = vmatprep.mubr.f32.mxu1 %v2286_v22  ;;  %v2409_v22 = vld [vmem:[%s12220_s11 + $0x670] sm:$0xff] }
 0x4da   :  { %3009 = vmatmul.mubr.f32.gmra.mrb[86].mxu1 %v2285_v62  ;;  %v2414_v62 = vld [vmem:[%s12220_s11 + $0x698] sm:$0xff] }
 0x4db   :  { %3013 = vmatprep.mubr.f32.mxu1 %v2290_v29  ;;  %v2413_v29 = vld [vmem:[%s12220_s11 + $0x690] sm:$0xff] }
 0x4de   :  { %3014 = vmatmul.mubr.f32.gmra.mrb[88].mxu1 %v2289_v39  ;;  %v2418_v39 = vld [vmem:[%s12220_s11 + $0x6b8] sm:$0xff] }
 0x4df   :  { %3018 = vmatprep.mubr.f32.mxu1 %v2294_v12  ;;  %v2417_v12 = vld [vmem:[%s12220_s11 + $0x6b0] sm:$0xff] }
 0x4e2   :  { %3019 = vmatmul.mubr.f32.gmra.mrb[90].mxu1 %v2293_v63  ;;  %v2422_v63 = vld [vmem:[%s12220_s11 + $0x6d8] sm:$0xff] }
 0x4e3   :  { %3023 = vmatprep.mubr.f32.mxu1 %v2298_v18 }
 0x4e6   :  { %3024 = vmatmul.mubr.f32.gmra.mrb[92].mxu1 %v2297_v1 }
 0x4e7   :  { %3028 = vmatprep.mubr.f32.mxu1 %v2302_v60  ;;  %v2421_v60 = vld [vmem:[%s12220_s11 + $0x6d0] sm:$0xff] }
 0x4ea   :  { %3029 = vmatmul.mubr.f32.gmra.mrb[94].mxu1 %v2301_v38  ;;  %v2426_v38 = vld [vmem:[%s12220_s11 + $0x6f8] sm:$0xff] }
 0x4eb   :  { %3033 = vmatprep.mubr.f32.mxu1 %v2306_v20 }
 0x4ee   :  { %3034 = vmatmul.mubr.f32.gmra.mrb[96].mxu1 %v2305_v57 }
 0x4ef   :  { %3038 = vmatprep.mubr.f32.mxu1 %v2310_v24  ;;  %v2425_v24 = vld [vmem:[%s12220_s11 + $0x6f0] sm:$0xff] }
 0x4f2   :  { %3039 = vmatmul.mubr.f32.gmra.mrb[98].mxu1 %v2309_v16  ;;  %v2430_v16 = vld [vmem:[%s12220_s11 + $0x718] sm:$0xff] }
 0x4f3   :  { %3043 = vmatprep.mubr.f32.mxu1 %v2314_v52 }
 0x4f6   :  { %3044 = vmatmul.mubr.f32.gmra.mrb[100].mxu1 %v2313_v11 }
 0x4f7   :  { %3048 = vmatprep.mubr.f32.mxu1 %v2318_v33  ;;  %v2429_v33 = vld [vmem:[%s12220_s11 + $0x710] sm:$0xff] }
 0x4fa   :  { %3049 = vmatmul.mubr.f32.gmra.mrb[102].mxu1 %v2317_v23  ;;  %v2434_v23 = vld [vmem:[%s12220_s11 + $0x738] sm:$0xff] }
 0x4fb   :  { %3053 = vmatprep.mubr.f32.mxu1 %v2322_v61 }
 0x4fe   :  { %3054 = vmatmul.mubr.f32.gmra.mrb[104].mxu1 %v2321_v51 }
 0x4ff   :  { %3058 = vmatprep.mubr.f32.mxu1 %v2326_v7  ;;  %v2433_v7 = vld [vmem:[%s12220_s11 + $0x730] sm:$0xff] }
 0x502   :  { %3059 = vmatmul.mubr.f32.gmra.mrb[106].mxu1 %v2325_v6  ;;  %v2438_v6 = vld [vmem:[%s12220_s11 + $0x758] sm:$0xff] }
 0x503   :  { %3063 = vmatprep.mubr.f32.mxu1 %v2330_v8 }
 0x506   :  { %3064 = vmatmul.mubr.f32.gmra.mrb[108].mxu1 %v2329_v42 }
 0x507   :  { %3068 = vmatprep.mubr.f32.mxu1 %v2334_v4  ;;  %v2437_v4 = vld [vmem:[%s12220_s11 + $0x750] sm:$0xff] }
 0x50a   :  { %3069 = vmatmul.mubr.f32.gmra.mrb[110].mxu1 %v2333_v45  ;;  %v2442_v45 = vld [vmem:[%s12220_s11 + $0x778] sm:$0xff] }
 0x50b   :  { %3073 = vmatprep.mubr.f32.mxu1 %v2338_v2 }
 0x50e   :  { %3074 = vmatmul.mubr.f32.gmra.mrb[112].mxu1 %v2337_v14 }
 0x50f   :  { %3078 = vmatprep.mubr.f32.mxu1 %v2342_v10  ;;  %v2441_v10 = vld [vmem:[%s12220_s11 + $0x770] sm:$0xff] }
 0x512   :  { %3079 = vmatmul.mubr.f32.gmra.mrb[114].mxu1 %v2341_v15  ;;  %v2446_v15 = vld [vmem:[%s12220_s11 + $0x798] sm:$0xff] }
 0x513   :  { %3083 = vmatprep.mubr.f32.mxu1 %v2346_v46 }
 0x516   :  { %3084 = vmatmul.mubr.f32.gmra.mrb[116].mxu1 %v2345_v19 }
 0x517   :  { %3088 = vmatprep.mubr.f32.mxu1 %v2350_v25  ;;  %v2445_v25 = vld [vmem:[%s12220_s11 + $0x790] sm:$0xff] }
 0x51a   :  { %3089 = vmatmul.mubr.f32.gmra.mrb[118].mxu1 %v2349_v59  ;;  %v2450_v59 = vld [vmem:[%s12220_s11 + $0x7b8] sm:$0xff] }
 0x51b   :  { %3093 = vmatprep.mubr.f32.mxu1 %v2354_v50 }
 0x51e   :  { %3094 = vmatmul.mubr.f32.gmra.mrb[120].mxu1 %v2353_v56 }
 0x51f   :  { %3098 = vmatprep.mubr.f32.mxu1 %v2358_v43  ;;  %v2449_v43 = vld [vmem:[%s12220_s11 + $0x7b0] sm:$0xff] }
 0x522   :  { %3099 = vmatmul.mubr.f32.gmra.mrb[122].mxu1 %v2357_v55  ;;  %v2454_v55 = vld [vmem:[%s12220_s11 + $0x7d8] sm:$0xff] }
 0x523   :  { %3103 = vmatprep.mubr.f32.mxu1 %v2362_v48 }
 0x526   :  { %3104 = vmatmul.mubr.f32.gmra.mrb[124].mxu1 %v2361_v0 }
 0x527   :  { %3108 = vmatprep.mubr.f32.mxu1 %v2366_v28  ;;  %v2453_v28 = vld [vmem:[%s12220_s11 + $0x7d0] sm:$0xff] }
 0x52a   :  { %3109 = vmatmul.mubr.f32.gmra.mrb[126].mxu1 %v2365_v41  ;;  %v2458_v41 = vld [vmem:[%s12220_s11 + $0x7f8] sm:$0xff] }
 0x52b   :  { %3113 = vmatprep.mubr.f32.mxu1 %v2370_v27 }
 0x52e   :  { %3114 = vmatmul.mubr.f32.gmra.mrb[128].mxu1 %v2369_v13 }
 0x52f   :  { %3118 = vmatprep.mubr.f32.mxu1 %v2374_v32  ;;  %v2457_v32 = vld [vmem:[%s12220_s11 + $0x7f0] sm:$0xff] }
 0x532   :  { %3119 = vmatmul.mubr.f32.gmra.mrb[130].mxu1 %v2373_v17 }
 0x533   :  { %3123 = vmatprep.mubr.f32.mxu1 %v2378_v40 }
 0x536   :  { %3124 = vmatmul.mubr.f32.gmra.mrb[132].mxu1 %v2377_v54 }
 0x537   :  { %3128 = vmatprep.mubr.f32.mxu1 %v2382_v31 }
 0x53a   :  { %3129 = vmatmul.mubr.f32.gmra.mrb[134].mxu1 %v2381_v58 }
 0x53b   :  { %3133 = vmatprep.mubr.f32.mxu1 %v2386_v34 }
 0x53e   :  { %3134 = vmatmul.mubr.f32.gmra.mrb[136].mxu1 %v2385_v47 }
 0x53f   :  { %3138 = vmatprep.mubr.f32.mxu1 %v2390_v49 }
 0x542   :  { %3139 = vmatmul.mubr.f32.gmra.mrb[138].mxu1 %v2389_v21 }
 0x543   :  { %3143 = vmatprep.mubr.f32.mxu1 %v2394_v53 }
 0x546   :  { %3144 = vmatmul.mubr.f32.gmra.mrb[140].mxu1 %v2393_v26 }
 0x547   :  { %3148 = vmatprep.mubr.f32.mxu1 %v2398_v37 }
 0x54a   :  { %3149 = vmatmul.mubr.f32.gmra.mrb[142].mxu1 %v2397_v3 }
 0x54b   :  { %3153 = vmatprep.mubr.f32.mxu1 %v2402_v36 }
 0x54e   :  { %3154 = vmatmul.mubr.f32.gmra.mrb[144].mxu1 %v2401_v35 }
 0x54f   :  { %3158 = vmatprep.mubr.f32.mxu1 %v2406_v30  ;;  %v3277_v30 = vld [vmem:[%s12218_s9] sm:$0xff] }
 0x552   :  { %3159 = vmatmul.mubr.f32.gmra.mrb[146].mxu1 %v2405_v5  ;;  %v3278_v5 = vld [vmem:[%s12218_s9 + $0x8] sm:$0xff] }
 0x553   :  { %3163 = vmatprep.mubr.f32.mxu1 %v2410_v9 }
 0x556   :  { %3164 = vmatmul.mubr.f32.gmra.mrb[148].mxu1 %v2409_v22  ;;  %v7721_v22 = vpack.c.bf16 %v3278_v5, %v3277_v30 }
 0x557   :  { %3168 = vmatprep.mubr.f32.mxu1 %v2414_v62 }
 0x558   :  { %7722 = vmatprep.subr.bf16.mxu0 %v7721_v22 }
 0x559   :  { %7724 = vmatpush3.bf16.msra.mxu0 %v7721_v22 }
 0x55a   :  { %3169 = vmatmul.mubr.f32.gmra.mrb[150].mxu1 %v2413_v29 }
 0x55b   :  { %3173 = vmatprep.mubr.f32.mxu1 %v2418_v39  ;;  %v3279_v39 = vld [vmem:[%s12218_s9 + $0x10] sm:$0xff] }
 0x55d   :  { %v11068_v18 = vpop.f32.mrb[46].mxu1 }
 0x55e   :  { %v2912_v1 = vpop.f32.mrb[47].mxu1  ;;  %3174 = vmatmul.mubr.f32.gmra.mrb[152].mxu1 %v2417_v12  ;;  %v3280_v12 = vld [vmem:[%s12218_s9 + $0x18] sm:$0xff] }
 0x55f   :  { %3178 = vmatprep.mubr.f32.mxu1 %v2422_v63  ;;  %v7725_v1 = vpack.c.bf16 %v3280_v12, %v3279_v39 }
 0x561   :  { %v11076_v20 = vpop.f32.mrb[48].mxu1  ;;  %7726 = vmatprep.subr.bf16.mxu0 %v7725_v1 }
 0x562   :  { %v2917_v57 = vpop.f32.mrb[49].mxu1  ;;  %3179 = vmatmul.mubr.f32.gmra.mrb[154].mxu1 %v2421_v60  ;;  %7728 = vmatpush3.bf16.msra.mxu0 %v7725_v1 }
 0x563   :  { %3183 = vmatprep.mubr.f32.mxu1 %v2426_v38 }
 0x565   :  { %v11084_v52 = vpop.f32.mrb[50].mxu1 }
 0x566   :  { %v2922_v11 = vpop.f32.mrb[51].mxu1  ;;  %3184 = vmatmul.mubr.f32.gmra.mrb[156].mxu1 %v2425_v24 }
 0x567   :  { %3188 = vmatprep.mubr.f32.mxu1 %v2430_v16 }
 0x569   :  { %v11092_v61 = vpop.f32.mrb[52].mxu1 }
 0x56a   :  { %v2927_v51 = vpop.f32.mrb[53].mxu1  ;;  %3189 = vmatmul.mubr.f32.gmra.mrb[158].mxu1 %v2429_v33 }
 0x56b   :  { %3193 = vmatprep.mubr.f32.mxu1 %v2434_v23 }
 0x56d   :  { %v11100_v8 = vpop.f32.mrb[54].mxu1 }
 0x56e   :  { %v2932_v42 = vpop.f32.mrb[55].mxu1  ;;  %3194 = vmatmul.mubr.f32.gmra.mrb[160].mxu1 %v2433_v7 }
 0x56f   :  { %3198 = vmatprep.mubr.f32.mxu1 %v2438_v6 }
 0x571   :  { %v11108_v2 = vpop.f32.mrb[56].mxu1 }
 0x572   :  { %v2937_v14 = vpop.f32.mrb[57].mxu1  ;;  %3199 = vmatmul.mubr.f32.gmra.mrb[162].mxu1 %v2437_v4 }
 0x573   :  { %3203 = vmatprep.mubr.f32.mxu1 %v2442_v45 }
 0x575   :  { %v11116_v46 = vpop.f32.mrb[58].mxu1 }
 0x576   :  { %v2942_v19 = vpop.f32.mrb[59].mxu1  ;;  %3204 = vmatmul.mubr.f32.gmra.mrb[164].mxu1 %v2441_v10 }
 0x577   :  { %3208 = vmatprep.mubr.f32.mxu1 %v2446_v15 }
 0x579   :  { %v11124_v50 = vpop.f32.mrb[60].mxu1 }
 0x57a   :  { %v2947_v56 = vpop.f32.mrb[61].mxu1  ;;  %3209 = vmatmul.mubr.f32.gmra.mrb[166].mxu1 %v2445_v25 }
 0x57b   :  { %3213 = vmatprep.mubr.f32.mxu1 %v2450_v59 }
 0x57d   :  { %v11132_v48 = vpop.f32.mrb[62].mxu1 }
 0x57e   :  { %v2952_v0 = vpop.f32.mrb[63].mxu1  ;;  %3214 = vmatmul.mubr.f32.gmra.mrb[168].mxu1 %v2449_v43 }
 0x57f   :  { %3218 = vmatprep.mubr.f32.mxu1 %v2454_v55 }
 0x581   :  { %v11140_v27 = vpop.f32.mrb[64].mxu1 }
 0x582   :  { %v2957_v13 = vpop.f32.mrb[65].mxu1  ;;  %3219 = vmatmul.mubr.f32.gmra.mrb[170].mxu1 %v2453_v28 }
 0x583   :  { %3223 = vmatprep.mubr.f32.mxu1 %v2458_v41 }
 0x585   :  { %v11145_v17 = vpop.f32.mrb[66].mxu1 }
 0x586   :  { %v2962_v40 = vpop.f32.mrb[67].mxu1  ;;  %3224 = vmatmul.mubr.f32.gmra.mrb[172].mxu1 %v2457_v32 }
 0x589   :  { %v11147_v54 = vpop.f32.mrb[68].mxu1 }
 0x58a   :  { %v2967_v31 = vpop.f32.mrb[69].mxu1 }
 0x58d   :  { %v11149_v58 = vpop.f32.mrb[70].mxu1 }
 0x58e   :  { %v2972_v34 = vpop.f32.mrb[71].mxu1 }
 0x591   :  { %v11151_v47 = vpop.f32.mrb[72].mxu1 }
 0x592   :  { %v2977_v49 = vpop.f32.mrb[73].mxu1 }
 0x595   :  { %v11153_v21 = vpop.f32.mrb[74].mxu1 }
 0x596   :  { %v2982_v53 = vpop.f32.mrb[75].mxu1 }
 0x599   :  { %v11155_v26 = vpop.f32.mrb[76].mxu1 }
 0x59a   :  { %v2987_v37 = vpop.f32.mrb[77].mxu1 }
 0x59d   :  { %v11157_v3 = vpop.f32.mrb[78].mxu1 }
 0x59e   :  { %v3229_v36 = vmax.f32 %v11068_v18, %v11157_v3  ;;  %v2992_v35 = vpop.f32.mrb[79].mxu1 }
 0x5a1   :  { %v11167_v9 = vpop.f32.mrb[80].mxu1 }
 0x5a2   :  { %v3230_v62 = vmax.f32 %v11076_v20, %v11167_v9  ;;  %v2997_v29 = vpop.f32.mrb[81].mxu1 }
 0x5a5   :  { %v11177_v63 = vpop.f32.mrb[82].mxu1 }
 0x5a6   :  { %v3231_v60 = vmax.f32 %v11084_v52, %v11177_v63  ;;  %v3002_v38 = vpop.f32.mrb[83].mxu1 }
 0x5a9   :  { %v11181_v57 = vpop.f32.mrb[84].mxu1 }
 0x5aa   :  { %v3007_v16 = vpop.f32.mrb[85].mxu1 }
 0x5ad   :  { %v11185_v11 = vpop.f32.mrb[86].mxu1 }
 0x5ae   :  { %v3012_v23 = vpop.f32.mrb[87].mxu1 }
 0x5b1   :  { %v11189_v51 = vpop.f32.mrb[88].mxu1 }
 0x5b2   :  { %v3017_v6 = vpop.f32.mrb[89].mxu1 }
 0x5b5   :  { %v11193_v42 = vpop.f32.mrb[90].mxu1 }
 0x5b6   :  { %v3022_v45 = vpop.f32.mrb[91].mxu1 }
 0x5b9   :  { %v11197_v14 = vpop.f32.mrb[92].mxu1 }
 0x5ba   :  { %v3027_v15 = vpop.f32.mrb[93].mxu1 }
 0x5bd   :  { %v11201_v19 = vpop.f32.mrb[94].mxu1 }
 0x5be   :  { %v3032_v59 = vpop.f32.mrb[95].mxu1 }
 0x5c1   :  { %v11205_v56 = vpop.f32.mrb[96].mxu1 }
 0x5c2   :  { %v3037_v55 = vpop.f32.mrb[97].mxu1 }
 0x5c5   :  { %v11209_v0 = vpop.f32.mrb[98].mxu1 }
 0x5c6   :  { %v3042_v41 = vpop.f32.mrb[99].mxu1 }
 0x5c9   :  { %v11213_v13 = vpop.f32.mrb[100].mxu1 }
 0x5ca   :  { %v3047_v40 = vpop.f32.mrb[101].mxu1 }
 0x5cd   :  { %v11217_v31 = vpop.f32.mrb[102].mxu1 }
 0x5ce   :  { %v3052_v49 = vpop.f32.mrb[103].mxu1 }
 0x5d1   :  { %v11221_v53 = vpop.f32.mrb[104].mxu1 }
 0x5d2   :  { %v3057_v35 = vpop.f32.mrb[105].mxu1 }
 0x5d5   :  { %v11225_v30 = vpop.f32.mrb[106].mxu1 }
 0x5d6   :  { %v3062_v22 = vpop.f32.mrb[107].mxu1 }
 0x5d9   :  { %v11229_v29 = vpop.f32.mrb[108].mxu1 }
 0x5da   :  { %v3067_v12 = vpop.f32.mrb[109].mxu1 }
 0x5dd   :  { %v3070_v1 = vpop.f32.mrb[110].mxu1 }
 0x5de   :  { %v3072_v38 = vpop.f32.mrb[111].mxu1 }
 0x5e1   :  { %v3075_v16 = vpop.f32.mrb[112].mxu1 }
 0x5e2   :  { %v3077_v23 = vpop.f32.mrb[113].mxu1 }
 0x5e5   :  { %v3080_v6 = vpop.f32.mrb[114].mxu1 }
 0x5e6   :  { %v3082_v45 = vpop.f32.mrb[115].mxu1 }
 0x5e9   :  { %v3085_v15 = vpop.f32.mrb[116].mxu1 }
 0x5ea   :  { %v3087_v59 = vpop.f32.mrb[117].mxu1 }
 0x5ed   :  { %v3090_v55 = vpop.f32.mrb[118].mxu1 }
 0x5ee   :  { %v3092_v41 = vpop.f32.mrb[119].mxu1 }
 0x5f1   :  { %v3095_v40 = vpop.f32.mrb[120].mxu1 }
 0x5f2   :  { %v3097_v49 = vpop.f32.mrb[121].mxu1 }
 0x5f5   :  { %v3100_v35 = vpop.f32.mrb[122].mxu1 }
 0x5f6   :  { %v3102_v22 = vpop.f32.mrb[123].mxu1 }
 0x5f9   :  { %v3105_v5 = vpop.f32.mrb[124].mxu1 }
 0x5fa   :  { %v3107_v37 = vpop.f32.mrb[125].mxu1 }
 0x5fd   :  { %v3110_v34 = vpop.f32.mrb[126].mxu1 }
 0x5fe   :  { %v3112_v32 = vpop.f32.mrb[127].mxu1 }
 0x601   :  { %v11233_v39 = vpop.f32.mrb[128].mxu1 }
 0x602   :  { %v3117_v12 = vpop.f32.mrb[129].mxu1 }
 0x605   :  { %v11235_v38 = vpop.f32.mrb[130].mxu1 }
 0x606   :  { %v3122_v23 = vpop.f32.mrb[131].mxu1 }
 0x609   :  { %v11237_v28 = vpop.f32.mrb[132].mxu1 }
 0x60a   :  { %v3127_v45 = vpop.f32.mrb[133].mxu1 }
 0x60d   :  { %v11239_v59 = vpop.f32.mrb[134].mxu1 }
 0x60e   :  { %v3132_v41 = vpop.f32.mrb[135].mxu1 }
 0x611   :  { %v11241_v43 = vpop.f32.mrb[136].mxu1 }
 0x612   :  { %v3137_v49 = vpop.f32.mrb[137].mxu1 }
 0x615   :  { %v11243_v22 = vpop.f32.mrb[138].mxu1 }
 0x616   :  { %v3142_v37 = vpop.f32.mrb[139].mxu1 }
 0x619   :  { %v11245_v25 = vpop.f32.mrb[140].mxu1 }
 0x61a   :  { %v3147_v32 = vpop.f32.mrb[141].mxu1 }
 0x61d   :  { %v3150_v10 = vpop.f32.mrb[142].mxu1 }
 0x61e   :  { %v3245_v12 = vmax.f32 %v3070_v1, %v3150_v10  ;;  %v3152_v4 = vpop.f32.mrb[143].mxu1  ;;  %v12389_v1 = vmax.f32 %v11108_v2, %v11189_v51 }
 0x620   :  { %v3261_v23 = vmax.f32 %v3229_v36, %v3245_v12 }
 0x621   :  { %v3155_v45 = vpop.f32.mrb[144].mxu1 }
 0x622   :  { %v3246_v7 = vmax.f32 %v3075_v16, %v3155_v45  ;;  %v3157_v33 = vpop.f32.mrb[145].mxu1  ;;  %7133 = vmatprep.mubr.msk.f32.mxu0 %vm1722_vm1, %v3261_v23 }
 0x623   :  { %v12387_v33 = vmax.f32 %v11092_v61, %v11181_v57 }
 0x624   :  { %v3262_v41 = vmax.f32 %v3230_v62, %v3246_v7 }
 0x625   :  { %v3160_v49 = vpop.f32.mrb[146].mxu1 }
 0x626   :  { %v3247_v37 = vmax.f32 %v3080_v6, %v3160_v49  ;;  %v3162_v24 = vpop.f32.mrb[147].mxu1  ;;  %7134 = vmatmul.mubr.msk.f32.vlgmr.msra.gmra.mrb[82].mxu0 %vm1722_vm1, %v3262_v41  ;;  %v12393_v41 = vmax.f32 %v11140_v27, %v11205_v56  ;;  %v12395_v27 = vmax.f32 %v11147_v54, %v11213_v13  ;;  %v12397_v54 = vmax.f32 %v11151_v47, %v11221_v53 }
 0x627   :  { %v12388_v24 = vmax.f32 %v11100_v8, %v11185_v11  ;;  %v12399_v47 = vmax.f32 %v11155_v26, %v11229_v29  ;;  %v3284_v26 = vld [vmem:[%s12218_s9 + $0x38] sm:$0xff] }
 0x628   :  { %v3263_v4 = vmax.f32 %v3231_v60, %v3247_v37 }
 0x629   :  { %v3165_v18 = vpop.f32.mrb[148].mxu1 }
 0x62a   :  { %v3248_v3 = vmax.f32 %v3085_v15, %v3165_v18  ;;  %v3167_v36 = vpop.f32.mrb[149].mxu1  ;;  %7136 = vmatprep.mubr.msk.f32.mxu0 %vm1722_vm1, %v3263_v4  ;;  %v12390_v15 = vmax.f32 %v11116_v46, %v11193_v42 }
 0x62c   :  { %v3264_v10 = vmax.f32 %v12387_v33, %v3248_v3 }
 0x62d   :  { %v3170_v20 = vpop.f32.mrb[150].mxu1 }
 0x62e   :  { %v3249_v9 = vmax.f32 %v3090_v55, %v3170_v20  ;;  %v3172_v62 = vpop.f32.mrb[151].mxu1  ;;  %7137 = vmatmul.mubr.msk.f32.gmra.mrb[84].mxu0 %vm1722_vm1, %v3264_v10 }
 0x630   :  { %v3265_v7 = vmax.f32 %v12388_v24, %v3249_v9  ;;  %v11333_v24 = vld [vmem:[%s12219_s10] ss:$0 sm:$0xff] }
 0x631   :  { %v3175_v52 = vpop.f32.mrb[152].mxu1 }
 0x632   :  { %v3250_v63 = vmax.f32 %v3095_v40, %v3175_v52  ;;  %v3177_v60 = vpop.f32.mrb[153].mxu1  ;;  %7139 = vmatprep.mubr.msk.f32.mxu0 %vm1722_vm1, %v3265_v7  ;;  %v12391_v40 = vmax.f32 %v11124_v50, %v11197_v14 }
 0x634   :  { %v3266_v16 = vmax.f32 %v12389_v1, %v3250_v63 }
 0x635   :  { %v3180_v61 = vpop.f32.mrb[154].mxu1 }
 0x636   :  { %v3251_v57 = vmax.f32 %v3100_v35, %v3180_v61  ;;  %v3182_v6 = vpop.f32.mrb[155].mxu1  ;;  %7140 = vmatmul.mubr.msk.f32.gmra.mrb[86].mxu0 %vm1722_vm1, %v3266_v16  ;;  %v12392_v35 = vmax.f32 %v11132_v48, %v11201_v19  ;;  %v12394_v48 = vmax.f32 %v11145_v17, %v11209_v0  ;;  %v12396_v17 = vmax.f32 %v11149_v58, %v11217_v31 }
 0x637   :  { %v12398_v58 = vmax.f32 %v11153_v21, %v11225_v30  ;;  %v3282_v21 = vld [vmem:[%s12218_s9 + $0x28] sm:$0xff] }
 0x638   :  { %v3267_v55 = vmax.f32 %v12390_v15, %v3251_v57 }
 0x639   :  { %v3185_v8 = vpop.f32.mrb[156].mxu1 }
 0x63a   :  { %v3252_v11 = vmax.f32 %v3105_v5, %v3185_v8  ;;  %v3187_v32 = vpop.f32.mrb[157].mxu1  ;;  %7142 = vmatprep.mubr.msk.f32.mxu0 %vm1722_vm1, %v3267_v55 }
 0x63c   :  { %v3268_v12 = vmax.f32 %v12391_v40, %v3252_v11 }
 0x63d   :  { %v3190_v2 = vpop.f32.mrb[158].mxu1 }
 0x63e   :  { %v3253_v51 = vmax.f32 %v3110_v34, %v3190_v2  ;;  %v3192_v23 = vpop.f32.mrb[159].mxu1  ;;  %7143 = vmatmul.mubr.msk.f32.gmra.mrb[88].mxu0 %vm1722_vm1, %v3268_v12 }
 0x640   :  { %v3269_v45 = vmax.f32 %v12392_v35, %v3253_v51 }
 0x641   :  { %v3195_v46 = vpop.f32.mrb[160].mxu1 }
 0x642   :  { %v3254_v42 = vmax.f32 %v11233_v39, %v3195_v46  ;;  %v3197_v5 = vpop.f32.mrb[161].mxu1  ;;  %7145 = vmatprep.mubr.msk.f32.mxu0 %vm1722_vm1, %v3269_v45 }
 0x644   :  { %v3270_v50 = vmax.f32 %v12393_v41, %v3254_v42 }
 0x645   :  { %v3200_v14 = vpop.f32.mrb[162].mxu1 }
 0x646   :  { %v3255_v34 = vmax.f32 %v11235_v38, %v3200_v14  ;;  %v3202_v49 = vpop.f32.mrb[163].mxu1  ;;  %7146 = vmatmul.mubr.msk.f32.gmra.mrb[90].mxu0 %vm1722_vm1, %v3270_v50 }
 0x648   :  { %v3271_v19 = vmax.f32 %v12394_v48, %v3255_v34 }
 0x649   :  { %v3205_v37 = vpop.f32.mrb[164].mxu1 }
 0x64a   :  { %v3256_v39 = vmax.f32 %v11237_v28, %v3205_v37  ;;  %v3207_v4 = vpop.f32.mrb[165].mxu1  ;;  %7148 = vmatprep.mubr.msk.f32.mxu0 %vm1722_vm1, %v3271_v19 }
 0x64c   :  { %v3272_v56 = vmax.f32 %v12395_v27, %v3256_v39 }
 0x64d   :  { %v3210_v18 = vpop.f32.mrb[166].mxu1 }
 0x64e   :  { %v3257_v38 = vmax.f32 %v11239_v59, %v3210_v18  ;;  %v3212_v3 = vpop.f32.mrb[167].mxu1  ;;  %7149 = vmatmul.mubr.msk.f32.gmra.mrb[92].mxu0 %vm1722_vm1, %v3272_v56 }
 0x650   :  { %v3273_v0 = vmax.f32 %v12396_v17, %v3257_v38 }
 0x651   :  { %v3215_v36 = vpop.f32.mrb[168].mxu1 }
 0x652   :  { %v3258_v28 = vmax.f32 %v11241_v43, %v3215_v36  ;;  %v3217_v33 = vpop.f32.mrb[169].mxu1  ;;  %7151 = vmatprep.mubr.msk.f32.mxu0 %vm1722_vm1, %v3273_v0 }
 0x654   :  { %v3274_v13 = vmax.f32 %v12397_v54, %v3258_v28 }
 0x655   :  { %v3220_v10 = vpop.f32.mrb[170].mxu1 }
 0x656   :  { %v3259_v59 = vmax.f32 %v11243_v22, %v3220_v10  ;;  %v3222_v20 = vpop.f32.mrb[171].mxu1  ;;  %7152 = vmatmul.mubr.msk.f32.gmra.mrb[94].mxu0 %vm1722_vm1, %v3274_v13  ;;  %v3281_v22 = vld [vmem:[%s12218_s9 + $0x20] sm:$0xff] }
 0x657   :  { %v7729_v30 = vpack.c.bf16 %v3282_v21, %v3281_v22 }
 0x658   :  { %v3275_v31 = vmax.f32 %v12398_v58, %v3259_v59 }
 0x659   :  { %v3225_v9 = vpop.f32.mrb[172].mxu1  ;;  %7730 = vmatprep.subr.bf16.mxu0 %v7729_v30 }
 0x65a   :  { %v3260_v43 = vmax.f32 %v11245_v25, %v3225_v9  ;;  %v3227_v62 = vpop.f32.mrb[173].mxu1  ;;  %7154 = vmatprep.mubr.msk.f32.mxu0 %vm1722_vm1, %v3275_v31  ;;  %v3283_v25 = vld [vmem:[%s12218_s9 + $0x30] sm:$0xff]  ;;  %7732 = vmatpush3.bf16.msra.mxu0 %v7729_v30 }
 0x65b   :  { %v7733_v29 = vpack.c.bf16 %v3284_v26, %v3283_v25 }
 0x65c   :  { %v3276_v53 = vmax.f32 %v12399_v47, %v3260_v43 }
 0x65d   :  { %7734 = vmatprep.subr.bf16.mxu0 %v7733_v29 }
 0x65e   :  { %7155 = vmatmul.mubr.msk.f32.gmra.mrb[96].mxu0 %vm1722_vm1, %v3276_v53 }
 0x65f   :  { %7736 = vmatpush3.bf16.msra.mxu0 %v7733_v29 }
 0x6f9   :  { %v7135_v7 = vpop.f32.mrb[82].mxu0 }
 0x6fa   :  { %v3428_v52 = vadd.f32 %v7135_v7, %v11333_v24  ;;  %v3422_v63 = vpop.f32.mrb[83].mxu0 }
 0x6fb   :  { %v3423_v60 = vadd.f32 %v11333_v24, %v3422_v63  ;;  %v3285_v63 = vld [vmem:[%s12218_s9 + $0x40] sm:$0xff] }
 0x6fc   :  { %v3518_v1 = vmul.f32 0.1, %v3428_v52  ;;  %vm3502_vm2 = vcmp.ge.f32.partialorder %v3428_v52, 0.0 }
 0x6fd   :  { %vm3501_vm3 = vcmp.ge.f32.partialorder %v3423_v60, 0.0  ;;  %v3517_v16 = vmul.f32 0.1, %v3423_v60 }
 0x6fe   :  { %v3534_v57 = vsel %vm3502_vm2, %v3428_v52, %v3518_v1 }
 0x6ff   :  { %v3533_v61 = vsel %vm3501_vm3, %v3423_v60, %v3517_v16  ;;  %v3286_v60 = vld [vmem:[%s12218_s9 + $0x48] sm:$0xff]  ;;  %v3288_v16 = vld [vmem:[%s12218_s9 + $0x58] sm:$0xff] }
 0x700   :  { %7165 = vmatprep.mubr.msk.f32.mxu0 %vm1722_vm1, %v3533_v61  ;;  %v7737_v1 = vpack.c.bf16 %v3286_v60, %v3285_v63 }
 0x701   :  { %v7138_v6 = vpop.f32.mrb[84].mxu0  ;;  %7166 = vmatmul.mubr.msk.f32.vlgmr.msra.gmra.mrb[98].mxu0 %vm1722_vm1, %v3534_v57  ;;  %v11382_v57 = vld [vmem:[%s12219_s10 + $0x1] ss:$0 sm:$0xff] }
 0x702   :  { %v3438_v15 = vadd.f32 %v7138_v6, %v11333_v24  ;;  %v3432_v55 = vpop.f32.mrb[85].mxu0  ;;  %7738 = vmatprep.subr.bf16.mxu0 %v7737_v1 }
 0x703   :  { %v3433_v8 = vadd.f32 %v11333_v24, %v3432_v55  ;;  %7740 = vmatpush3.bf16.msra.mxu0 %v7737_v1 }
 0x704   :  { %v3520_v11 = vmul.f32 0.1, %v3438_v15  ;;  %vm3504_vm4 = vcmp.ge.f32.partialorder %v3438_v15, 0.0 }
 0x705   :  { %vm3503_vm5 = vcmp.ge.f32.partialorder %v3433_v8, 0.0  ;;  %v3519_v32 = vmul.f32 0.1, %v3433_v8 }
 0x706   :  { %v3536_v12 = vsel %vm3504_vm4, %v3438_v15, %v3520_v11 }
 0x707   :  { %v3535_v40 = vsel %vm3503_vm5, %v3433_v8, %v3519_v32 }
 0x708   :  { %7168 = vmatprep.mubr.msk.f32.mxu0 %vm1722_vm1, %v3535_v40 }
 0x709   :  { %v7141_v2 = vpop.f32.mrb[86].mxu0  ;;  %7169 = vmatmul.mubr.msk.f32.gmra.mrb[100].mxu0 %vm1722_vm1, %v3536_v12 }
 0x70a   :  { %v3448_v51 = vadd.f32 %v7141_v2, %v11333_v24  ;;  %v3442_v23 = vpop.f32.mrb[87].mxu0 }
 0x70b   :  { %v3443_v35 = vadd.f32 %v11333_v24, %v3442_v23 }
 0x70c   :  { %v3522_v45 = vmul.f32 0.1, %v3448_v51  ;;  %vm3506_vm6 = vcmp.ge.f32.partialorder %v3448_v51, 0.0 }
 0x70d   :  { %vm3505_vm7 = vcmp.ge.f32.partialorder %v3443_v35, 0.0  ;;  %v3521_v46 = vmul.f32 0.1, %v3443_v35 }
 0x70e   :  { %v3538_v5 = vsel %vm3506_vm6, %v3448_v51, %v3522_v45 }
 0x70f   :  { %v3537_v42 = vsel %vm3505_vm7, %v3443_v35, %v3521_v46 }
 0x710   :  { %7171 = vmatprep.mubr.msk.f32.mxu0 %vm1722_vm1, %v3537_v42 }
 0x711   :  { %v7144_v41 = vpop.f32.mrb[88].mxu0  ;;  %7172 = vmatmul.mubr.msk.f32.gmra.mrb[102].mxu0 %vm1722_vm1, %v3538_v5 }
 0x712   :  { %v3458_v50 = vadd.f32 %v7144_v41, %v11333_v24  ;;  %v3452_v14 = vpop.f32.mrb[89].mxu0 }
 0x713   :  { %v3453_v34 = vadd.f32 %v11333_v24, %v3452_v14 }
 0x714   :  { %v3524_v49 = vmul.f32 0.1, %v3458_v50  ;;  %vm3508_vm8 = vcmp.ge.f32.partialorder %v3458_v50, 0.0 }
 0x715   :  { %vm3507_vm9 = vcmp.ge.f32.partialorder %v3453_v34, 0.0  ;;  %v3523_v48 = vmul.f32 0.1, %v3453_v34 }
 0x716   :  { %v3540_v37 = vsel %vm3508_vm8, %v3458_v50, %v3524_v49 }
 0x717   :  { %v3539_v19 = vsel %vm3507_vm9, %v3453_v34, %v3523_v48 }
 0x718   :  { %7174 = vmatprep.mubr.msk.f32.mxu0 %vm1722_vm1, %v3539_v19 }
 0x719   :  { %v7147_v39 = vpop.f32.mrb[90].mxu0  ;;  %7175 = vmatmul.mubr.msk.f32.gmra.mrb[104].mxu0 %vm1722_vm1, %v3540_v37 }
 0x71a   :  { %v3468_v4 = vadd.f32 %v7147_v39, %v11333_v24  ;;  %v3462_v27 = vpop.f32.mrb[91].mxu0 }
 0x71b   :  { %v3463_v56 = vadd.f32 %v11333_v24, %v3462_v27 }
 0x71c   :  { %v3526_v18 = vmul.f32 0.1, %v3468_v4  ;;  %vm3510_vm10 = vcmp.ge.f32.partialorder %v3468_v4, 0.0 }
 0x71d   :  { %vm3509_vm11 = vcmp.ge.f32.partialorder %v3463_v56, 0.0  ;;  %v3525_v38 = vmul.f32 0.1, %v3463_v56 }
 0x71e   :  { %v3542_v17 = vsel %vm3510_vm10, %v3468_v4, %v3526_v18 }
 0x71f   :  { %v3541_v3 = vsel %vm3509_vm11, %v3463_v56, %v3525_v38 }
 0x720   :  { %7177 = vmatprep.mubr.msk.f32.mxu0 %vm1722_vm1, %v3541_v3 }
 0x721   :  { %v7150_v0 = vpop.f32.mrb[92].mxu0  ;;  %7178 = vmatmul.mubr.msk.f32.gmra.mrb[106].mxu0 %vm1722_vm1, %v3542_v17 }
 0x722   :  { %v3478_v36 = vadd.f32 %v7150_v0, %v11333_v24  ;;  %v3472_v28 = vpop.f32.mrb[93].mxu0 }
 0x723   :  { %v3473_v33 = vadd.f32 %v11333_v24, %v3472_v28 }
 0x724   :  { %v3528_v54 = vmul.f32 0.1, %v3478_v36  ;;  %vm3512_vm12 = vcmp.ge.f32.partialorder %v3478_v36, 0.0 }
 0x725   :  { %vm3511_vm13 = vcmp.ge.f32.partialorder %v3473_v33, 0.0  ;;  %v3527_v13 = vmul.f32 0.1, %v3473_v33 }
 0x726   :  { %v3544_v59 = vsel %vm3512_vm12, %v3478_v36, %v3528_v54 }
 0x727   :  { %v3543_v10 = vsel %vm3511_vm13, %v3473_v33, %v3527_v13 }
 0x728   :  { %7180 = vmatprep.mubr.msk.f32.mxu0 %vm1722_vm1, %v3543_v10 }
 0x729   :  { %v7153_v20 = vpop.f32.mrb[94].mxu0  ;;  %7181 = vmatmul.mubr.msk.f32.gmra.mrb[108].mxu0 %vm1722_vm1, %v3544_v59 }
 0x72a   :  { %v3488_v58 = vadd.f32 %v7153_v20, %v11333_v24  ;;  %v3482_v31 = vpop.f32.mrb[95].mxu0 }
 0x72b   :  { %v3483_v9 = vadd.f32 %v11333_v24, %v3482_v31 }
 0x72c   :  { %v3530_v43 = vmul.f32 0.1, %v3488_v58  ;;  %vm3514_vm14 = vcmp.ge.f32.partialorder %v3488_v58, 0.0 }
 0x72d   :  { %vm3513_vm15 = vcmp.ge.f32.partialorder %v3483_v9, 0.0  ;;  %v3529_v62 = vmul.f32 0.1, %v3483_v9 }
 0x72e   :  { %v3546_v53 = vsel %vm3514_vm14, %v3488_v58, %v3530_v43 }
 0x72f   :  { %v3545_v47 = vsel %vm3513_vm15, %v3483_v9, %v3529_v62 }
 0x730   :  { %7183 = vmatprep.mubr.msk.f32.mxu0 %vm1722_vm1, %v3545_v47 }
 0x731   :  { %v7156_v22 = vpop.f32.mrb[96].mxu0  ;;  %7184 = vmatmul.mubr.msk.f32.gmra.mrb[110].mxu0 %vm1722_vm1, %v3546_v53 }
 0x732   :  { %v3498_v21 = vadd.f32 %v7156_v22, %v11333_v24  ;;  %v3492_v25 = vpop.f32.mrb[97].mxu0 }
 0x733   :  { %v3493_v30 = vadd.f32 %v11333_v24, %v3492_v25  ;;  %v3287_v24 = vld [vmem:[%s12218_s9 + $0x50] sm:$0xff] }
 0x734   :  { %v3532_v26 = vmul.f32 0.1, %v3498_v21  ;;  %vm3516_vm0 = vcmp.ge.f32.partialorder %v3498_v21, 0.0  ;;  %v7741_v61 = vpack.c.bf16 %v3288_v16, %v3287_v24 }
 0x735   :  { %vm3515_vm2 = vcmp.ge.f32.partialorder %v3493_v30, 0.0  ;;  %v3531_v29 = vmul.f32 0.1, %v3493_v30 }
 0x736   :  { %v3548_v52 = vsel %vm3516_vm0, %v3498_v21, %v3532_v26  ;;  %7742 = vmatprep.subr.bf16.mxu0 %v7741_v61 }
 0x737   :  { %v3547_v7 = vsel %vm3515_vm2, %v3493_v30, %v3531_v29  ;;  %7744 = vmatpush3.bf16.msra.mxu0 %v7741_v61 }
 0x738   :  { %7186 = vmatprep.mubr.msk.f32.mxu0 %vm1722_vm1, %v3547_v7 }
 0x739   :  { %7187 = vmatmul.mubr.msk.f32.gmra.mrb[112].mxu0 %vm1722_vm1, %v3548_v52 }
 0x7d4   :  { %v7167_v6 = vpop.f32.mrb[98].mxu0 }
 0x7d5   :  { %v3675_v15 = vadd.f32 %v7167_v6, %v11382_v57  ;;  %v3669_v55 = vpop.f32.mrb[99].mxu0 }
 0x7d6   :  { %v3670_v8 = vadd.f32 %v11382_v57, %v3669_v55  ;;  %v3289_v55 = vld [vmem:[%s12218_s9 + $0x60] sm:$0xff] }
 0x7d7   :  { %v3765_v11 = vmul.f32 0.1, %v3675_v15  ;;  %vm3749_vm3 = vcmp.ge.f32.partialorder %v3675_v15, 0.0 }
 0x7d8   :  { %vm3748_vm4 = vcmp.ge.f32.partialorder %v3670_v8, 0.0  ;;  %v3764_v32 = vmul.f32 0.1, %v3670_v8 }
 0x7d9   :  { %v3781_v12 = vsel %vm3749_vm3, %v3675_v15, %v3765_v11 }
 0x7da   :  { %v3780_v40 = vsel %vm3748_vm4, %v3670_v8, %v3764_v32  ;;  %v3290_v8 = vld [vmem:[%s12218_s9 + $0x68] sm:$0xff]  ;;  %v3292_v32 = vld [vmem:[%s12218_s9 + $0x78] sm:$0xff] }
 0x7db   :  { %7197 = vmatprep.mubr.msk.f32.mxu0 %vm1722_vm1, %v3780_v40  ;;  %v7745_v11 = vpack.c.bf16 %v3290_v8, %v3289_v55 }
 0x7dc   :  { %v7170_v2 = vpop.f32.mrb[100].mxu0  ;;  %7198 = vmatmul.mubr.msk.f32.vlgmr.msra.gmra.mrb[114].mxu0 %vm1722_vm1, %v3781_v12  ;;  %v11431_v12 = vld [vmem:[%s12219_s10 + $0x2] ss:$0 sm:$0xff] }
 0x7dd   :  { %v3685_v51 = vadd.f32 %v7170_v2, %v11382_v57  ;;  %v3679_v23 = vpop.f32.mrb[101].mxu0  ;;  %7746 = vmatprep.subr.bf16.mxu0 %v7745_v11 }
 0x7de   :  { %v3680_v35 = vadd.f32 %v11382_v57, %v3679_v23  ;;  %7748 = vmatpush3.bf16.msra.mxu0 %v7745_v11 }
 0x7df   :  { %v3767_v45 = vmul.f32 0.1, %v3685_v51  ;;  %vm3751_vm5 = vcmp.ge.f32.partialorder %v3685_v51, 0.0 }
 0x7e0   :  { %vm3750_vm6 = vcmp.ge.f32.partialorder %v3680_v35, 0.0  ;;  %v3766_v46 = vmul.f32 0.1, %v3680_v35 }
 0x7e1   :  { %v3783_v5 = vsel %vm3751_vm5, %v3685_v51, %v3767_v45 }
 0x7e2   :  { %v3782_v42 = vsel %vm3750_vm6, %v3680_v35, %v3766_v46 }
 0x7e3   :  { %7200 = vmatprep.mubr.msk.f32.mxu0 %vm1722_vm1, %v3782_v42 }
 0x7e4   :  { %v7173_v41 = vpop.f32.mrb[102].mxu0  ;;  %7201 = vmatmul.mubr.msk.f32.gmra.mrb[116].mxu0 %vm1722_vm1, %v3783_v5 }
 0x7e5   :  { %v3695_v50 = vadd.f32 %v7173_v41, %v11382_v57  ;;  %v3689_v14 = vpop.f32.mrb[103].mxu0 }
 0x7e6   :  { %v3690_v34 = vadd.f32 %v11382_v57, %v3689_v14 }
 0x7e7   :  { %v3769_v49 = vmul.f32 0.1, %v3695_v50  ;;  %vm3753_vm7 = vcmp.ge.f32.partialorder %v3695_v50, 0.0 }
 0x7e8   :  { %vm3752_vm8 = vcmp.ge.f32.partialorder %v3690_v34, 0.0  ;;  %v3768_v48 = vmul.f32 0.1, %v3690_v34 }
 0x7e9   :  { %v3785_v37 = vsel %vm3753_vm7, %v3695_v50, %v3769_v49 }
 0x7ea   :  { %v3784_v19 = vsel %vm3752_vm8, %v3690_v34, %v3768_v48 }
 0x7eb   :  { %7203 = vmatprep.mubr.msk.f32.mxu0 %vm1722_vm1, %v3784_v19 }
 0x7ec   :  { %v7176_v39 = vpop.f32.mrb[104].mxu0  ;;  %7204 = vmatmul.mubr.msk.f32.gmra.mrb[118].mxu0 %vm1722_vm1, %v3785_v37 }
 0x7ed   :  { %v3705_v4 = vadd.f32 %v7176_v39, %v11382_v57  ;;  %v3699_v27 = vpop.f32.mrb[105].mxu0 }
 0x7ee   :  { %v3700_v56 = vadd.f32 %v11382_v57, %v3699_v27 }
 0x7ef   :  { %v3771_v18 = vmul.f32 0.1, %v3705_v4  ;;  %vm3755_vm9 = vcmp.ge.f32.partialorder %v3705_v4, 0.0 }
 0x7f0   :  { %vm3754_vm10 = vcmp.ge.f32.partialorder %v3700_v56, 0.0  ;;  %v3770_v38 = vmul.f32 0.1, %v3700_v56 }
 0x7f1   :  { %v3787_v17 = vsel %vm3755_vm9, %v3705_v4, %v3771_v18 }
 0x7f2   :  { %v3786_v3 = vsel %vm3754_vm10, %v3700_v56, %v3770_v38 }
 0x7f3   :  { %7206 = vmatprep.mubr.msk.f32.mxu0 %vm1722_vm1, %v3786_v3 }
 0x7f4   :  { %v7179_v0 = vpop.f32.mrb[106].mxu0  ;;  %7207 = vmatmul.mubr.msk.f32.gmra.mrb[120].mxu0 %vm1722_vm1, %v3787_v17 }
 0x7f5   :  { %v3715_v36 = vadd.f32 %v7179_v0, %v11382_v57  ;;  %v3709_v28 = vpop.f32.mrb[107].mxu0 }
 0x7f6   :  { %v3710_v33 = vadd.f32 %v11382_v57, %v3709_v28 }
 0x7f7   :  { %v3773_v54 = vmul.f32 0.1, %v3715_v36  ;;  %vm3757_vm11 = vcmp.ge.f32.partialorder %v3715_v36, 0.0 }
 0x7f8   :  { %vm3756_vm12 = vcmp.ge.f32.partialorder %v3710_v33, 0.0  ;;  %v3772_v13 = vmul.f32 0.1, %v3710_v33 }
 0x7f9   :  { %v3789_v59 = vsel %vm3757_vm11, %v3715_v36, %v3773_v54 }
 0x7fa   :  { %v3788_v10 = vsel %vm3756_vm12, %v3710_v33, %v3772_v13 }
 0x7fb   :  { %7209 = vmatprep.mubr.msk.f32.mxu0 %vm1722_vm1, %v3788_v10 }
 0x7fc   :  { %v7182_v20 = vpop.f32.mrb[108].mxu0  ;;  %7210 = vmatmul.mubr.msk.f32.gmra.mrb[122].mxu0 %vm1722_vm1, %v3789_v59 }
 0x7fd   :  { %v3725_v58 = vadd.f32 %v7182_v20, %v11382_v57  ;;  %v3719_v31 = vpop.f32.mrb[109].mxu0 }
 0x7fe   :  { %v3720_v9 = vadd.f32 %v11382_v57, %v3719_v31 }
 0x7ff   :  { %v3775_v43 = vmul.f32 0.1, %v3725_v58  ;;  %vm3759_vm13 = vcmp.ge.f32.partialorder %v3725_v58, 0.0 }
 0x800   :  { %vm3758_vm14 = vcmp.ge.f32.partialorder %v3720_v9, 0.0  ;;  %v3774_v62 = vmul.f32 0.1, %v3720_v9 }
 0x801   :  { %v3791_v53 = vsel %vm3759_vm13, %v3725_v58, %v3775_v43 }
 0x802   :  { %v3790_v47 = vsel %vm3758_vm14, %v3720_v9, %v3774_v62 }
 0x803   :  { %7212 = vmatprep.mubr.msk.f32.mxu0 %vm1722_vm1, %v3790_v47 }
 0x804   :  { %v7185_v22 = vpop.f32.mrb[110].mxu0  ;;  %7213 = vmatmul.mubr.msk.f32.gmra.mrb[124].mxu0 %vm1722_vm1, %v3791_v53 }
 0x805   :  { %v3735_v21 = vadd.f32 %v7185_v22, %v11382_v57  ;;  %v3729_v25 = vpop.f32.mrb[111].mxu0 }
 0x806   :  { %v3730_v30 = vadd.f32 %v11382_v57, %v3729_v25 }
 0x807   :  { %v3777_v26 = vmul.f32 0.1, %v3735_v21  ;;  %vm3761_vm15 = vcmp.ge.f32.partialorder %v3735_v21, 0.0 }
 0x808   :  { %vm3760_vm0 = vcmp.ge.f32.partialorder %v3730_v30, 0.0  ;;  %v3776_v29 = vmul.f32 0.1, %v3730_v30 }
 0x809   :  { %v3793_v52 = vsel %vm3761_vm15, %v3735_v21, %v3777_v26 }
 0x80a   :  { %v3792_v7 = vsel %vm3760_vm0, %v3730_v30, %v3776_v29 }
 0x80b   :  { %7215 = vmatprep.mubr.msk.f32.mxu0 %vm1722_vm1, %v3792_v7 }
 0x80c   :  { %v7188_v63 = vpop.f32.mrb[112].mxu0  ;;  %7216 = vmatmul.mubr.msk.f32.gmra.mrb[126].mxu0 %vm1722_vm1, %v3793_v52 }
 0x80d   :  { %v3745_v60 = vadd.f32 %v7188_v63, %v11382_v57  ;;  %v3739_v24 = vpop.f32.mrb[113].mxu0 }
 0x80e   :  { %v3740_v1 = vadd.f32 %v11382_v57, %v3739_v24  ;;  %v3291_v57 = vld [vmem:[%s12218_s9 + $0x70] sm:$0xff] }
 0x80f   :  { %v3779_v16 = vmul.f32 0.1, %v3745_v60  ;;  %vm3763_vm2 = vcmp.ge.f32.partialorder %v3745_v60, 0.0  ;;  %v7749_v40 = vpack.c.bf16 %v3292_v32, %v3291_v57 }
 0x810   :  { %vm3762_vm3 = vcmp.ge.f32.partialorder %v3740_v1, 0.0  ;;  %v3778_v61 = vmul.f32 0.1, %v3740_v1 }
 0x811   :  { %v3795_v15 = vsel %vm3763_vm2, %v3745_v60, %v3779_v16  ;;  %7750 = vmatprep.subr.bf16.mxu0 %v7749_v40 }
 0x812   :  { %v3794_v6 = vsel %vm3762_vm3, %v3740_v1, %v3778_v61  ;;  %7752 = vmatpush3.bf16.msra.mxu0 %v7749_v40 }
 0x813   :  { %7218 = vmatprep.mubr.msk.f32.mxu0 %vm1722_vm1, %v3794_v6 }
 0x814   :  { %7219 = vmatmul.mubr.msk.f32.gmra.mrb[128].mxu0 %vm1722_vm1, %v3795_v15 }
 0x8af   :  { %v7199_v2 = vpop.f32.mrb[114].mxu0 }
 0x8b0   :  { %v3922_v51 = vadd.f32 %v7199_v2, %v11431_v12  ;;  %v3916_v23 = vpop.f32.mrb[115].mxu0 }
 0x8b1   :  { %v3917_v35 = vadd.f32 %v11431_v12, %v3916_v23  ;;  %v3293_v23 = vld [vmem:[%s12218_s9 + $0x80] sm:$0xff] }
 0x8b2   :  { %v4012_v45 = vmul.f32 0.1, %v3922_v51  ;;  %vm3996_vm4 = vcmp.ge.f32.partialorder %v3922_v51, 0.0 }
 0x8b3   :  { %vm3995_vm5 = vcmp.ge.f32.partialorder %v3917_v35, 0.0  ;;  %v4011_v46 = vmul.f32 0.1, %v3917_v35 }
 0x8b4   :  { %v4028_v5 = vsel %vm3996_vm4, %v3922_v51, %v4012_v45 }
 0x8b5   :  { %v4027_v42 = vsel %vm3995_vm5, %v3917_v35, %v4011_v46  ;;  %v3294_v35 = vld [vmem:[%s12218_s9 + $0x88] sm:$0xff]  ;;  %v3296_v46 = vld [vmem:[%s12218_s9 + $0x98] sm:$0xff] }
 0x8b6   :  { %7229 = vmatprep.mubr.msk.f32.mxu0 %vm1722_vm1, %v4027_v42  ;;  %v7753_v45 = vpack.c.bf16 %v3294_v35, %v3293_v23 }
 0x8b7   :  { %v7202_v41 = vpop.f32.mrb[116].mxu0  ;;  %7230 = vmatmul.mubr.msk.f32.vlgmr.msra.gmra.mrb[130].mxu0 %vm1722_vm1, %v4028_v5  ;;  %v11480_v5 = vld [vmem:[%s12219_s10 + $0x3] ss:$0 sm:$0xff] }
 0x8b8   :  { %v3932_v50 = vadd.f32 %v7202_v41, %v11431_v12  ;;  %v3926_v14 = vpop.f32.mrb[117].mxu0  ;;  %7754 = vmatprep.subr.bf16.mxu0 %v7753_v45 }
 0x8b9   :  { %v3927_v34 = vadd.f32 %v11431_v12, %v3926_v14  ;;  %7756 = vmatpush3.bf16.msra.mxu0 %v7753_v45 }
 0x8ba   :  { %v4014_v49 = vmul.f32 0.1, %v3932_v50  ;;  %vm3998_vm6 = vcmp.ge.f32.partialorder %v3932_v50, 0.0 }
 0x8bb   :  { %vm3997_vm7 = vcmp.ge.f32.partialorder %v3927_v34, 0.0  ;;  %v4013_v48 = vmul.f32 0.1, %v3927_v34 }
 0x8bc   :  { %v4030_v37 = vsel %vm3998_vm6, %v3932_v50, %v4014_v49 }
 0x8bd   :  { %v4029_v19 = vsel %vm3997_vm7, %v3927_v34, %v4013_v48 }
 0x8be   :  { %7232 = vmatprep.mubr.msk.f32.mxu0 %vm1722_vm1, %v4029_v19 }
 0x8bf   :  { %v7205_v39 = vpop.f32.mrb[118].mxu0  ;;  %7233 = vmatmul.mubr.msk.f32.gmra.mrb[132].mxu0 %vm1722_vm1, %v4030_v37 }
 0x8c0   :  { %v3942_v4 = vadd.f32 %v7205_v39, %v11431_v12  ;;  %v3936_v27 = vpop.f32.mrb[119].mxu0 }
 0x8c1   :  { %v3937_v56 = vadd.f32 %v11431_v12, %v3936_v27 }
 0x8c2   :  { %v4016_v18 = vmul.f32 0.1, %v3942_v4  ;;  %vm4000_vm8 = vcmp.ge.f32.partialorder %v3942_v4, 0.0 }
 0x8c3   :  { %vm3999_vm9 = vcmp.ge.f32.partialorder %v3937_v56, 0.0  ;;  %v4015_v38 = vmul.f32 0.1, %v3937_v56 }
 0x8c4   :  { %v4032_v17 = vsel %vm4000_vm8, %v3942_v4, %v4016_v18 }
 0x8c5   :  { %v4031_v3 = vsel %vm3999_vm9, %v3937_v56, %v4015_v38 }
 0x8c6   :  { %7235 = vmatprep.mubr.msk.f32.mxu0 %vm1722_vm1, %v4031_v3 }
 0x8c7   :  { %v7208_v0 = vpop.f32.mrb[120].mxu0  ;;  %7236 = vmatmul.mubr.msk.f32.gmra.mrb[134].mxu0 %vm1722_vm1, %v4032_v17 }
 0x8c8   :  { %v3952_v36 = vadd.f32 %v7208_v0, %v11431_v12  ;;  %v3946_v28 = vpop.f32.mrb[121].mxu0 }
 0x8c9   :  { %v3947_v33 = vadd.f32 %v11431_v12, %v3946_v28 }
 0x8ca   :  { %v4018_v54 = vmul.f32 0.1, %v3952_v36  ;;  %vm4002_vm10 = vcmp.ge.f32.partialorder %v3952_v36, 0.0 }
 0x8cb   :  { %vm4001_vm11 = vcmp.ge.f32.partialorder %v3947_v33, 0.0  ;;  %v4017_v13 = vmul.f32 0.1, %v3947_v33 }
 0x8cc   :  { %v4034_v59 = vsel %vm4002_vm10, %v3952_v36, %v4018_v54 }
 0x8cd   :  { %v4033_v10 = vsel %vm4001_vm11, %v3947_v33, %v4017_v13 }
 0x8ce   :  { %7238 = vmatprep.mubr.msk.f32.mxu0 %vm1722_vm1, %v4033_v10 }
 0x8cf   :  { %v7211_v20 = vpop.f32.mrb[122].mxu0  ;;  %7239 = vmatmul.mubr.msk.f32.gmra.mrb[136].mxu0 %vm1722_vm1, %v4034_v59 }
 0x8d0   :  { %v3962_v58 = vadd.f32 %v7211_v20, %v11431_v12  ;;  %v3956_v31 = vpop.f32.mrb[123].mxu0 }
 0x8d1   :  { %v3957_v9 = vadd.f32 %v11431_v12, %v3956_v31 }
 0x8d2   :  { %v4020_v43 = vmul.f32 0.1, %v3962_v58  ;;  %vm4004_vm12 = vcmp.ge.f32.partialorder %v3962_v58, 0.0 }
 0x8d3   :  { %vm4003_vm13 = vcmp.ge.f32.partialorder %v3957_v9, 0.0  ;;  %v4019_v62 = vmul.f32 0.1, %v3957_v9 }
 0x8d4   :  { %v4036_v53 = vsel %vm4004_vm12, %v3962_v58, %v4020_v43 }
 0x8d5   :  { %v4035_v47 = vsel %vm4003_vm13, %v3957_v9, %v4019_v62 }
 0x8d6   :  { %7241 = vmatprep.mubr.msk.f32.mxu0 %vm1722_vm1, %v4035_v47 }
 0x8d7   :  { %v7214_v22 = vpop.f32.mrb[124].mxu0  ;;  %7242 = vmatmul.mubr.msk.f32.gmra.mrb[138].mxu0 %vm1722_vm1, %v4036_v53 }
 0x8d8   :  { %v3972_v21 = vadd.f32 %v7214_v22, %v11431_v12  ;;  %v3966_v25 = vpop.f32.mrb[125].mxu0 }
 0x8d9   :  { %v3967_v30 = vadd.f32 %v11431_v12, %v3966_v25 }
 0x8da   :  { %v4022_v26 = vmul.f32 0.1, %v3972_v21  ;;  %vm4006_vm14 = vcmp.ge.f32.partialorder %v3972_v21, 0.0 }
 0x8db   :  { %vm4005_vm15 = vcmp.ge.f32.partialorder %v3967_v30, 0.0  ;;  %v4021_v29 = vmul.f32 0.1, %v3967_v30 }
 0x8dc   :  { %v4038_v52 = vsel %vm4006_vm14, %v3972_v21, %v4022_v26 }
 0x8dd   :  { %v4037_v7 = vsel %vm4005_vm15, %v3967_v30, %v4021_v29 }
 0x8de   :  { %7244 = vmatprep.mubr.msk.f32.mxu0 %vm1722_vm1, %v4037_v7 }
 0x8df   :  { %v7217_v63 = vpop.f32.mrb[126].mxu0  ;;  %7245 = vmatmul.mubr.msk.f32.gmra.mrb[140].mxu0 %vm1722_vm1, %v4038_v52 }
 0x8e0   :  { %v3982_v60 = vadd.f32 %v7217_v63, %v11431_v12  ;;  %v3976_v24 = vpop.f32.mrb[127].mxu0 }
 0x8e1   :  { %v3977_v1 = vadd.f32 %v11431_v12, %v3976_v24 }
 0x8e2   :  { %v4024_v16 = vmul.f32 0.1, %v3982_v60  ;;  %vm4008_vm0 = vcmp.ge.f32.partialorder %v3982_v60, 0.0 }
 0x8e3   :  { %vm4007_vm2 = vcmp.ge.f32.partialorder %v3977_v1, 0.0  ;;  %v4023_v61 = vmul.f32 0.1, %v3977_v1 }
 0x8e4   :  { %v4040_v15 = vsel %vm4008_vm0, %v3982_v60, %v4024_v16 }
 0x8e5   :  { %v4039_v6 = vsel %vm4007_vm2, %v3977_v1, %v4023_v61 }
 0x8e6   :  { %7247 = vmatprep.mubr.msk.f32.mxu0 %vm1722_vm1, %v4039_v6 }
 0x8e7   :  { %v7220_v55 = vpop.f32.mrb[128].mxu0  ;;  %7248 = vmatmul.mubr.msk.f32.gmra.mrb[142].mxu0 %vm1722_vm1, %v4040_v15 }
 0x8e8   :  { %v3992_v8 = vadd.f32 %v7220_v55, %v11431_v12  ;;  %v3986_v57 = vpop.f32.mrb[129].mxu0 }
 0x8e9   :  { %v3987_v11 = vadd.f32 %v11431_v12, %v3986_v57  ;;  %v3295_v12 = vld [vmem:[%s12218_s9 + $0x90] sm:$0xff] }
 0x8ea   :  { %v4026_v32 = vmul.f32 0.1, %v3992_v8  ;;  %vm4010_vm3 = vcmp.ge.f32.partialorder %v3992_v8, 0.0  ;;  %v7757_v42 = vpack.c.bf16 %v3296_v46, %v3295_v12 }
 0x8eb   :  { %vm4009_vm4 = vcmp.ge.f32.partialorder %v3987_v11, 0.0  ;;  %v4025_v40 = vmul.f32 0.1, %v3987_v11 }
 0x8ec   :  { %v4042_v51 = vsel %vm4010_vm3, %v3992_v8, %v4026_v32  ;;  %7758 = vmatprep.subr.bf16.mxu0 %v7757_v42 }
 0x8ed   :  { %v4041_v2 = vsel %vm4009_vm4, %v3987_v11, %v4025_v40  ;;  %7760 = vmatpush3.bf16.msra.mxu0 %v7757_v42 }
 0x8ee   :  { %7250 = vmatprep.mubr.msk.f32.mxu0 %vm1722_vm1, %v4041_v2 }
 0x8ef   :  { %7251 = vmatmul.mubr.msk.f32.gmra.mrb[144].mxu0 %vm1722_vm1, %v4042_v51 }
 0x98a   :  { %v7231_v41 = vpop.f32.mrb[130].mxu0 }
 0x98b   :  { %v4169_v50 = vadd.f32 %v7231_v41, %v11480_v5  ;;  %v4163_v14 = vpop.f32.mrb[131].mxu0 }
 0x98c   :  { %v4164_v34 = vadd.f32 %v11480_v5, %v4163_v14  ;;  %v4537_v14 = vld [vmem:[%s12221_s12] sm:$0xff] }
 0x98d   :  { %v4259_v49 = vmul.f32 0.1, %v4169_v50  ;;  %vm4243_vm5 = vcmp.ge.f32.partialorder %v4169_v50, 0.0 }
 0x98e   :  { %vm4242_vm6 = vcmp.ge.f32.partialorder %v4164_v34, 0.0  ;;  %v4258_v48 = vmul.f32 0.1, %v4164_v34 }
 0x98f   :  { %v4275_v37 = vsel %vm4243_vm5, %v4169_v50, %v4259_v49 }
 0x990   :  { %v4274_v19 = vsel %vm4242_vm6, %v4164_v34, %v4258_v48  ;;  %v11520_v34 = vld [vmem:[%s12219_s10 + $0x4] ss:$0 sm:$0xff] }
 0x991   :  { %7261 = vmatprep.mubr.msk.f32.mxu0 %vm1722_vm1, %v4274_v19 }
 0x992   :  { %v7234_v39 = vpop.f32.mrb[132].mxu0  ;;  %7262 = vmatmul.mubr.msk.f32.vlgmr.msra.gmra.mrb[146].mxu0 %vm1722_vm1, %v4275_v37 }
 0x993   :  { %v4179_v4 = vadd.f32 %v7234_v39, %v11480_v5  ;;  %v4173_v27 = vpop.f32.mrb[133].mxu0 }
 0x994   :  { %v4174_v56 = vadd.f32 %v11480_v5, %v4173_v27 }
 0x995   :  { %v4261_v18 = vmul.f32 0.1, %v4179_v4  ;;  %vm4245_vm7 = vcmp.ge.f32.partialorder %v4179_v4, 0.0 }
 0x996   :  { %vm4244_vm8 = vcmp.ge.f32.partialorder %v4174_v56, 0.0  ;;  %v4260_v38 = vmul.f32 0.1, %v4174_v56 }
 0x997   :  { %v4277_v17 = vsel %vm4245_vm7, %v4179_v4, %v4261_v18 }
 0x998   :  { %v4276_v3 = vsel %vm4244_vm8, %v4174_v56, %v4260_v38 }
 0x999   :  { %7264 = vmatprep.mubr.msk.f32.mxu0 %vm1722_vm1, %v4276_v3 }
 0x99a   :  { %v7237_v0 = vpop.f32.mrb[134].mxu0  ;;  %7265 = vmatmul.mubr.msk.f32.gmra.mrb[148].mxu0 %vm1722_vm1, %v4277_v17 }
 0x99b   :  { %v4189_v36 = vadd.f32 %v7237_v0, %v11480_v5  ;;  %v4183_v28 = vpop.f32.mrb[135].mxu0 }
 0x99c   :  { %v4184_v33 = vadd.f32 %v11480_v5, %v4183_v28 }
 0x99d   :  { %v4263_v54 = vmul.f32 0.1, %v4189_v36  ;;  %vm4247_vm9 = vcmp.ge.f32.partialorder %v4189_v36, 0.0 }
 0x99e   :  { %vm4246_vm10 = vcmp.ge.f32.partialorder %v4184_v33, 0.0  ;;  %v4262_v13 = vmul.f32 0.1, %v4184_v33 }
 0x99f   :  { %v4279_v59 = vsel %vm4247_vm9, %v4189_v36, %v4263_v54 }
 0x9a0   :  { %v4278_v10 = vsel %vm4246_vm10, %v4184_v33, %v4262_v13 }
 0x9a1   :  { %7267 = vmatprep.mubr.msk.f32.mxu0 %vm1722_vm1, %v4278_v10 }
 0x9a2   :  { %v7240_v20 = vpop.f32.mrb[136].mxu0  ;;  %7268 = vmatmul.mubr.msk.f32.gmra.mrb[150].mxu0 %vm1722_vm1, %v4279_v59 }
 0x9a3   :  { %v4199_v58 = vadd.f32 %v7240_v20, %v11480_v5  ;;  %v4193_v31 = vpop.f32.mrb[137].mxu0 }
 0x9a4   :  { %v4194_v9 = vadd.f32 %v11480_v5, %v4193_v31 }
 0x9a5   :  { %v4265_v43 = vmul.f32 0.1, %v4199_v58  ;;  %vm4249_vm11 = vcmp.ge.f32.partialorder %v4199_v58, 0.0 }
 0x9a6   :  { %vm4248_vm12 = vcmp.ge.f32.partialorder %v4194_v9, 0.0  ;;  %v4264_v62 = vmul.f32 0.1, %v4194_v9 }
 0x9a7   :  { %v4281_v53 = vsel %vm4249_vm11, %v4199_v58, %v4265_v43 }
 0x9a8   :  { %v4280_v47 = vsel %vm4248_vm12, %v4194_v9, %v4264_v62 }
 0x9a9   :  { %7270 = vmatprep.mubr.msk.f32.mxu0 %vm1722_vm1, %v4280_v47 }
 0x9aa   :  { %v7243_v22 = vpop.f32.mrb[138].mxu0  ;;  %7271 = vmatmul.mubr.msk.f32.gmra.mrb[152].mxu0 %vm1722_vm1, %v4281_v53 }
 0x9ab   :  { %v4209_v21 = vadd.f32 %v7243_v22, %v11480_v5  ;;  %v4203_v25 = vpop.f32.mrb[139].mxu0 }
 0x9ac   :  { %v4204_v30 = vadd.f32 %v11480_v5, %v4203_v25 }
 0x9ad   :  { %v4267_v26 = vmul.f32 0.1, %v4209_v21  ;;  %vm4251_vm13 = vcmp.ge.f32.partialorder %v4209_v21, 0.0 }
 0x9ae   :  { %vm4250_vm14 = vcmp.ge.f32.partialorder %v4204_v30, 0.0  ;;  %v4266_v29 = vmul.f32 0.1, %v4204_v30 }
 0x9af   :  { %v4283_v52 = vsel %vm4251_vm13, %v4209_v21, %v4267_v26 }
 0x9b0   :  { %v4282_v7 = vsel %vm4250_vm14, %v4204_v30, %v4266_v29 }
 0x9b1   :  { %7273 = vmatprep.mubr.msk.f32.mxu0 %vm1722_vm1, %v4282_v7 }
 0x9b2   :  { %v7246_v63 = vpop.f32.mrb[140].mxu0  ;;  %7274 = vmatmul.mubr.msk.f32.gmra.mrb[154].mxu0 %vm1722_vm1, %v4283_v52 }
 0x9b3   :  { %v4219_v60 = vadd.f32 %v7246_v63, %v11480_v5  ;;  %v4213_v24 = vpop.f32.mrb[141].mxu0 }
 0x9b4   :  { %v4214_v1 = vadd.f32 %v11480_v5, %v4213_v24 }
 0x9b5   :  { %v4269_v16 = vmul.f32 0.1, %v4219_v60  ;;  %vm4253_vm15 = vcmp.ge.f32.partialorder %v4219_v60, 0.0 }
 0x9b6   :  { %vm4252_vm0 = vcmp.ge.f32.partialorder %v4214_v1, 0.0  ;;  %v4268_v61 = vmul.f32 0.1, %v4214_v1 }
 0x9b7   :  { %v4285_v15 = vsel %vm4253_vm15, %v4219_v60, %v4269_v16 }
 0x9b8   :  { %v4284_v6 = vsel %vm4252_vm0, %v4214_v1, %v4268_v61 }
 0x9b9   :  { %7276 = vmatprep.mubr.msk.f32.mxu0 %vm1722_vm1, %v4284_v6 }
 0x9ba   :  { %v7249_v55 = vpop.f32.mrb[142].mxu0  ;;  %7277 = vmatmul.mubr.msk.f32.gmra.mrb[156].mxu0 %vm1722_vm1, %v4285_v15 }
 0x9bb   :  { %v4229_v8 = vadd.f32 %v7249_v55, %v11480_v5  ;;  %v4223_v57 = vpop.f32.mrb[143].mxu0 }
 0x9bc   :  { %v4224_v11 = vadd.f32 %v11480_v5, %v4223_v57 }
 0x9bd   :  { %v4271_v32 = vmul.f32 0.1, %v4229_v8  ;;  %vm4255_vm2 = vcmp.ge.f32.partialorder %v4229_v8, 0.0 }
 0x9be   :  { %vm4254_vm3 = vcmp.ge.f32.partialorder %v4224_v11, 0.0  ;;  %v4270_v40 = vmul.f32 0.1, %v4224_v11 }
 0x9bf   :  { %v4287_v51 = vsel %vm4255_vm2, %v4229_v8, %v4271_v32 }
 0x9c0   :  { %v4286_v2 = vsel %vm4254_vm3, %v4224_v11, %v4270_v40 }
 0x9c1   :  { %7279 = vmatprep.mubr.msk.f32.mxu0 %vm1722_vm1, %v4286_v2 }
 0x9c2   :  { %v7252_v23 = vpop.f32.mrb[144].mxu0  ;;  %7280 = vmatmul.mubr.msk.f32.gmra.mrb[158].mxu0 %vm1722_vm1, %v4287_v51 }
 0x9c3   :  { %v4239_v35 = vadd.f32 %v7252_v23, %v11480_v5  ;;  %v4233_v12 = vpop.f32.mrb[145].mxu0 }
 0x9c4   :  { %v4234_v45 = vadd.f32 %v11480_v5, %v4233_v12 }
 0x9c5   :  { %v4273_v46 = vmul.f32 0.1, %v4239_v35  ;;  %vm4257_vm4 = vcmp.ge.f32.partialorder %v4239_v35, 0.0 }
 0x9c6   :  { %vm4256_vm5 = vcmp.ge.f32.partialorder %v4234_v45, 0.0  ;;  %v4272_v42 = vmul.f32 0.1, %v4234_v45 }
 0x9c7   :  { %v4289_v50 = vsel %vm4257_vm4, %v4239_v35, %v4273_v46 }
 0x9c8   :  { %v4288_v41 = vsel %vm4256_vm5, %v4234_v45, %v4272_v42 }
 0x9c9   :  { %7282 = vmatprep.mubr.msk.f32.mxu0 %vm1722_vm1, %v4288_v41 }
 0x9ca   :  { %7283 = vmatmul.mubr.msk.f32.gmra.mrb[160].mxu0 %vm1722_vm1, %v4289_v50 }
 0x9cb   :  { %7317 = vmatprep.mubr.f32.mxu0 %v4537_v14 }
 0xa65   :  { %v7263_v5 = vpop.f32.mrb[146].mxu0 }
 0xa66   :  { %v4416_v49 = vadd.f32 %v7263_v5, %v11520_v34  ;;  %v4410_v48 = vpop.f32.mrb[147].mxu0 }
 0xa67   :  { %v4411_v19 = vadd.f32 %v11520_v34, %v4410_v48 }
 0xa68   :  { %vm4490_vm6 = vcmp.ge.f32.partialorder %v4416_v49, 0.0  ;;  %v4506_v37 = vmul.f32 0.1, %v4416_v49 }
 0xa69   :  { %vm4489_vm7 = vcmp.ge.f32.partialorder %v4411_v19, 0.0  ;;  %v4505_v39 = vmul.f32 0.1, %v4411_v19 }
 0xa6a   :  { %v4522_v4 = vsel %vm4490_vm6, %v4416_v49, %v4506_v37 }
 0xa6b   :  { %v4521_v27 = vsel %vm4489_vm7, %v4411_v19, %v4505_v39  ;;  %vm8056_vm7 = vmmov 0  }
 0xa6c   :  { %v7761_v56 = vpack.c.bf16 %v4522_v4, %v4521_v27 }
 0xa6d   :  { %v7266_v18 = vpop.f32.mrb[148].mxu0 }
 0xa6e   :  { %v4426_v38 = vadd.f32 %v7266_v18, %v11520_v34  ;;  %v4420_v3 = vpop.f32.mrb[149].mxu0  ;;  %7762 = vmatprep.subr.bf16.mxu0 %v7761_v56 }
 0xa6f   :  { %v4421_v17 = vadd.f32 %v11520_v34, %v4420_v3  ;;  %7764 = vmatpush3.bf16.msra.mxu0 %v7761_v56  ;;  %v5039_v3 = vld [vmem:[%s12222_s13 + $0x28] sm:$0xff] }
 0xa70   :  { %vm4492_vm8 = vcmp.ge.f32.partialorder %v4426_v38, 0.0  ;;  %v4508_v0 = vmul.f32 0.1, %v4426_v38 }
 0xa71   :  { %vm4491_vm9 = vcmp.ge.f32.partialorder %v4421_v17, 0.0  ;;  %v4507_v36 = vmul.f32 0.1, %v4421_v17 }
 0xa72   :  { %v4524_v28 = vsel %vm4492_vm8, %v4426_v38, %v4508_v0  ;;  %v5038_v38 = vld [vmem:[%s12222_s13 + $0x20] sm:$0xff]  ;;  %v4539_v0 = vld [vmem:[%s12221_s12 + $0x10] sm:$0xff] }
 0xa73   :  { %v4523_v33 = vsel %vm4491_vm9, %v4421_v17, %v4507_v36  ;;  %v7794_v17 = vpack.c.bf16 %v5039_v3, %v5038_v38  ;;  %v4540_v36 = vld [vmem:[%s12221_s12 + $0x18] sm:$0xff]  ;;  %v4598_v38 = vld [vmem:[%s12221_s12 + $0x1e8] sm:$0xff]  ;;  %v4599_v3 = vld [vmem:[%s12221_s12 + $0x1f0] sm:$0xff] }
 0xa74   :  { %v7765_v54 = vpack.c.bf16 %v4524_v28, %v4523_v33  ;;  %v4541_v28 = vld [vmem:[%s12221_s12 + $0x20] sm:$0xff]  ;;  %v4542_v33 = vld [vmem:[%s12221_s12 + $0x28] sm:$0xff] }
 0xa75   :  { %v7269_v13 = vpop.f32.mrb[150].mxu0 }
 0xa76   :  { %v4436_v10 = vadd.f32 %v7269_v13, %v11520_v34  ;;  %v4430_v59 = vpop.f32.mrb[151].mxu0  ;;  %7766 = vmatprep.subr.bf16.mxu0 %v7765_v54  ;;  %v4544_v13 = vld [vmem:[%s12221_s12 + $0x38] sm:$0xff] }
 0xa77   :  { %v4431_v20 = vadd.f32 %v11520_v34, %v4430_v59  ;;  %7768 = vmatpush3.bf16.msra.mxu0 %v7765_v54  ;;  %v4543_v54 = vld [vmem:[%s12221_s12 + $0x30] sm:$0xff]  ;;  %v4546_v59 = vld [vmem:[%s12221_s12 + $0x48] sm:$0xff] }
 0xa78   :  { %vm4494_vm10 = vcmp.ge.f32.partialorder %v4436_v10, 0.0  ;;  %v4510_v58 = vmul.f32 0.1, %v4436_v10 }
 0xa79   :  { %vm4493_vm11 = vcmp.ge.f32.partialorder %v4431_v20, 0.0  ;;  %v4509_v31 = vmul.f32 0.1, %v4431_v20 }
 0xa7a   :  { %v4526_v9 = vsel %vm4494_vm10, %v4436_v10, %v4510_v58  ;;  %v4545_v10 = vld [vmem:[%s12221_s12 + $0x40] sm:$0xff]  ;;  %v4548_v58 = vld [vmem:[%s12221_s12 + $0x58] sm:$0xff] }
 0xa7b   :  { %v4525_v43 = vsel %vm4493_vm11, %v4431_v20, %v4509_v31  ;;  %v4547_v20 = vld [vmem:[%s12221_s12 + $0x50] sm:$0xff]  ;;  %v4549_v31 = vld [vmem:[%s12221_s12 + $0x60] sm:$0xff] }
 0xa7c   :  { %v7769_v62 = vpack.c.bf16 %v4526_v9, %v4525_v43  ;;  %v4550_v9 = vld [vmem:[%s12221_s12 + $0x68] sm:$0xff]  ;;  %v4551_v43 = vld [vmem:[%s12221_s12 + $0x70] sm:$0xff] }
 0xa7d   :  { %v7272_v47 = vpop.f32.mrb[152].mxu0 }
 0xa7e   :  { %v4446_v53 = vadd.f32 %v7272_v47, %v11520_v34  ;;  %v4440_v22 = vpop.f32.mrb[153].mxu0  ;;  %7770 = vmatprep.subr.bf16.mxu0 %v7769_v62  ;;  %v4553_v47 = vld [vmem:[%s12221_s12 + $0x80] sm:$0xff] }
 0xa7f   :  { %v4441_v21 = vadd.f32 %v11520_v34, %v4440_v22  ;;  %7772 = vmatpush3.bf16.msra.mxu0 %v7769_v62  ;;  %v4552_v62 = vld [vmem:[%s12221_s12 + $0x78] sm:$0xff]  ;;  %v4555_v22 = vld [vmem:[%s12221_s12 + $0x90] sm:$0xff] }
 0xa80   :  { %vm4496_vm12 = vcmp.ge.f32.partialorder %v4446_v53, 0.0  ;;  %v4512_v25 = vmul.f32 0.1, %v4446_v53 }
 0xa81   :  { %vm4495_vm13 = vcmp.ge.f32.partialorder %v4441_v21, 0.0  ;;  %v4511_v30 = vmul.f32 0.1, %v4441_v21 }
 0xa82   :  { %v4528_v26 = vsel %vm4496_vm12, %v4446_v53, %v4512_v25  ;;  %v4554_v53 = vld [vmem:[%s12221_s12 + $0x88] sm:$0xff]  ;;  %v4557_v25 = vld [vmem:[%s12221_s12 + $0xa0] sm:$0xff] }
 0xa83   :  { %v4527_v29 = vsel %vm4495_vm13, %v4441_v21, %v4511_v30  ;;  %v4556_v21 = vld [vmem:[%s12221_s12 + $0x98] sm:$0xff]  ;;  %v4558_v30 = vld [vmem:[%s12221_s12 + $0xa8] sm:$0xff] }
 0xa84   :  { %v7773_v7 = vpack.c.bf16 %v4528_v26, %v4527_v29  ;;  %v4559_v26 = vld [vmem:[%s12221_s12 + $0xb0] sm:$0xff]  ;;  %v4560_v29 = vld [vmem:[%s12221_s12 + $0xb8] sm:$0xff] }
 0xa85   :  { %v7275_v52 = vpop.f32.mrb[154].mxu0 }
 0xa86   :  { %v4456_v63 = vadd.f32 %v7275_v52, %v11520_v34  ;;  %v4450_v60 = vpop.f32.mrb[155].mxu0  ;;  %7774 = vmatprep.subr.bf16.mxu0 %v7773_v7  ;;  %v4562_v52 = vld [vmem:[%s12221_s12 + $0xc8] sm:$0xff] }
 0xa87   :  { %v4451_v24 = vadd.f32 %v11520_v34, %v4450_v60  ;;  %7776 = vmatpush3.bf16.msra.mxu0 %v7773_v7  ;;  %v4561_v7 = vld [vmem:[%s12221_s12 + $0xc0] sm:$0xff]  ;;  %v4564_v60 = vld [vmem:[%s12221_s12 + $0xd8] sm:$0xff] }
 0xa88   :  { %vm4498_vm14 = vcmp.ge.f32.partialorder %v4456_v63, 0.0  ;;  %v4514_v1 = vmul.f32 0.1, %v4456_v63 }
 0xa89   :  { %vm4497_vm15 = vcmp.ge.f32.partialorder %v4451_v24, 0.0  ;;  %v4513_v16 = vmul.f32 0.1, %v4451_v24 }
 0xa8a   :  { %v4530_v61 = vsel %vm4498_vm14, %v4456_v63, %v4514_v1  ;;  %v4563_v63 = vld [vmem:[%s12221_s12 + $0xd0] sm:$0xff]  ;;  %v4566_v1 = vld [vmem:[%s12221_s12 + $0xe8] sm:$0xff] }
 0xa8b   :  { %v4529_v6 = vsel %vm4497_vm15, %v4451_v24, %v4513_v16  ;;  %v4565_v24 = vld [vmem:[%s12221_s12 + $0xe0] sm:$0xff]  ;;  %v4567_v16 = vld [vmem:[%s12221_s12 + $0xf0] sm:$0xff] }
 0xa8c   :  { %v7777_v15 = vpack.c.bf16 %v4530_v61, %v4529_v6  ;;  %v4568_v61 = vld [vmem:[%s12221_s12 + $0xf8] sm:$0xff]  ;;  %v4569_v6 = vld [vmem:[%s12221_s12 + $0x100] sm:$0xff] }
 0xa8d   :  { %v7278_v55 = vpop.f32.mrb[156].mxu0 }
 0xa8e   :  { %v4466_v8 = vadd.f32 %v7278_v55, %v11520_v34  ;;  %v4460_v57 = vpop.f32.mrb[157].mxu0  ;;  %7778 = vmatprep.subr.bf16.mxu0 %v7777_v15  ;;  %v4571_v55 = vld [vmem:[%s12221_s12 + $0x110] sm:$0xff] }
 0xa8f   :  { %v4461_v11 = vadd.f32 %v11520_v34, %v4460_v57  ;;  %7780 = vmatpush3.bf16.msra.mxu0 %v7777_v15  ;;  %v4570_v15 = vld [vmem:[%s12221_s12 + $0x108] sm:$0xff]  ;;  %v4573_v57 = vld [vmem:[%s12221_s12 + $0x120] sm:$0xff] }
 0xa90   :  { %vm4500_vm0 = vcmp.ge.f32.partialorder %v4466_v8, 0.0  ;;  %v4516_v32 = vmul.f32 0.1, %v4466_v8 }
 0xa91   :  { %vm4499_vm2 = vcmp.ge.f32.partialorder %v4461_v11, 0.0  ;;  %v4515_v40 = vmul.f32 0.1, %v4461_v11 }
 0xa92   :  { %v4532_v2 = vsel %vm4500_vm0, %v4466_v8, %v4516_v32  ;;  %v4572_v8 = vld [vmem:[%s12221_s12 + $0x118] sm:$0xff]  ;;  %v4575_v32 = vld [vmem:[%s12221_s12 + $0x130] sm:$0xff] }
 0xa93   :  { %v4531_v51 = vsel %vm4499_vm2, %v4461_v11, %v4515_v40  ;;  %v4574_v11 = vld [vmem:[%s12221_s12 + $0x128] sm:$0xff]  ;;  %v4576_v40 = vld [vmem:[%s12221_s12 + $0x138] sm:$0xff] }
 0xa94   :  { %v7781_v23 = vpack.c.bf16 %v4532_v2, %v4531_v51  ;;  %v4577_v2 = vld [vmem:[%s12221_s12 + $0x140] sm:$0xff]  ;;  %v4578_v51 = vld [vmem:[%s12221_s12 + $0x148] sm:$0xff] }
 0xa95   :  { %v7281_v35 = vpop.f32.mrb[158].mxu0 }
 0xa96   :  { %v4476_v12 = vadd.f32 %v7281_v35, %v11520_v34  ;;  %v4470_v45 = vpop.f32.mrb[159].mxu0  ;;  %7782 = vmatprep.subr.bf16.mxu0 %v7781_v23  ;;  %v4580_v35 = vld [vmem:[%s12221_s12 + $0x158] sm:$0xff] }
 0xa97   :  { %v4471_v46 = vadd.f32 %v11520_v34, %v4470_v45  ;;  %7784 = vmatpush3.bf16.msra.mxu0 %v7781_v23  ;;  %v4579_v23 = vld [vmem:[%s12221_s12 + $0x150] sm:$0xff]  ;;  %v4582_v45 = vld [vmem:[%s12221_s12 + $0x168] sm:$0xff] }
 0xa98   :  { %vm4502_vm3 = vcmp.ge.f32.partialorder %v4476_v12, 0.0  ;;  %v4518_v42 = vmul.f32 0.1, %v4476_v12 }
 0xa99   :  { %vm4501_vm4 = vcmp.ge.f32.partialorder %v4471_v46, 0.0  ;;  %v4517_v41 = vmul.f32 0.1, %v4471_v46 }
 0xa9a   :  { %v4534_v50 = vsel %vm4502_vm3, %v4476_v12, %v4518_v42  ;;  %v4581_v12 = vld [vmem:[%s12221_s12 + $0x160] sm:$0xff]  ;;  %v4584_v42 = vld [vmem:[%s12221_s12 + $0x178] sm:$0xff] }
 0xa9b   :  { %v4533_v14 = vsel %vm4501_vm4, %v4471_v46, %v4517_v41  ;;  %v4583_v46 = vld [vmem:[%s12221_s12 + $0x170] sm:$0xff]  ;;  %v4585_v41 = vld [vmem:[%s12221_s12 + $0x180] sm:$0xff] }
 0xa9c   :  { %v7785_v5 = vpack.c.bf16 %v4534_v50, %v4533_v14  ;;  %v4586_v50 = vld [vmem:[%s12221_s12 + $0x188] sm:$0xff]  ;;  %v4587_v14 = vld [vmem:[%s12221_s12 + $0x190] sm:$0xff] }
 0xa9d   :  { %v7284_v49 = vpop.f32.mrb[160].mxu0 }
 0xa9e   :  { %v4486_v48 = vadd.f32 %v7284_v49, %v11520_v34  ;;  %v4480_v19 = vpop.f32.mrb[161].mxu0  ;;  %7786 = vmatprep.subr.bf16.mxu0 %v7785_v5  ;;  %v4589_v49 = vld [vmem:[%s12221_s12 + $0x1a0] sm:$0xff] }
 0xa9f   :  { %v4481_v37 = vadd.f32 %v11520_v34, %v4480_v19  ;;  %7788 = vmatpush3.bf16.msra.mxu0 %v7785_v5  ;;  %v4538_v34 = vld [vmem:[%s12221_s12 + $0x8] sm:$0xff]  ;;  %v4588_v5 = vld [vmem:[%s12221_s12 + $0x198] sm:$0xff]  ;;  %v4591_v19 = vld [vmem:[%s12221_s12 + $0x1b0] sm:$0xff] }
 0xaa0   :  { %vm4504_vm5 = vcmp.ge.f32.partialorder %v4486_v48, 0.0  ;;  %v4520_v39 = vmul.f32 0.1, %v4486_v48 }
 0xaa1   :  { %vm4503_vm6 = vcmp.ge.f32.partialorder %v4481_v37, 0.0  ;;  %v4519_v4 = vmul.f32 0.1, %v4481_v37 }
 0xaa2   :  { %v4536_v27 = vsel %vm4504_vm5, %v4486_v48, %v4520_v39  ;;  %v4590_v48 = vld [vmem:[%s12221_s12 + $0x1a8] sm:$0xff]  ;;  %v4593_v39 = vld [vmem:[%s12221_s12 + $0x1c0] sm:$0xff] }
 0xaa3   :  { %v4535_v56 = vsel %vm4503_vm6, %v4481_v37, %v4519_v4  ;;  %v4592_v37 = vld [vmem:[%s12221_s12 + $0x1b8] sm:$0xff]  ;;  %v4594_v4 = vld [vmem:[%s12221_s12 + $0x1c8] sm:$0xff] }
 0xaa4   :  { %v7789_v18 = vpack.c.bf16 %v4536_v27, %v4535_v56  ;;  %v4595_v27 = vld [vmem:[%s12221_s12 + $0x1d0] sm:$0xff]  ;;  %v4596_v56 = vld [vmem:[%s12221_s12 + $0x1d8] sm:$0xff] }
 0xaa6   :  { %7790 = vmatprep.subr.bf16.mxu0 %v7789_v18 }
 0xaa7   :  { %7792 = vmatpush3.bf16.msra.mxu0 %v7789_v18  ;;  %v4597_v18 = vld [vmem:[%s12221_s12 + $0x1e0] sm:$0xff] }
 0xaa8   :  { %7793 = vmatprep.subr.bf16.mxu0 %v12363_v44 }
 0xaaa   :  { %7318 = vmatmul.mubr.f32.vlgmr.msra.gmra.mrb[162].mxu0 %v4538_v34  ;;  %v4600_v34 = vld [vmem:[%s12221_s12 + $0x1f8] sm:$0xff] }
 0xaab   :  { %7320 = vmatprep.mubr.f32.mxu0 %v4539_v0  ;;  %7795 = vmatpush3.bf16.msra.mxu0 %v7794_v17  ;;  %v5040_v17 = vld [vmem:[%s12222_s13 + $0x30] sm:$0xff]  ;;  %v5041_v0 = vld [vmem:[%s12222_s13 + $0x38] sm:$0xff] }
 0xaac   :  { %7796 = vmatprep.subr.bf16.mxu0 %v12363_v44 }
 0xaae   :  { %7321 = vmatmul.mubr.f32.gmra.mrb[164].mxu0 %v4540_v36  ;;  %v7797_v36 = vpack.c.bf16 %v5041_v0, %v5040_v17 }
 0xaaf   :  { %7323 = vmatprep.mubr.f32.mxu0 %v4541_v28  ;;  %v8057_v28 = vmov 0.0  }
 0xab0   :  { %7798 = vmatpush3.bf16.msra.mxu0 %v7797_v36 }
 0xab1   :  { %7799 = vmatprep.subr.bf16.mxu0 %v12363_v44 }
 0xab2   :  { %7324 = vmatmul.mubr.f32.gmra.mrb[166].mxu0 %v4542_v33 }
 0xab3   :  { %7326 = vmatprep.mubr.f32.mxu0 %v4543_v54 }
 0xab6   :  { %7327 = vmatmul.mubr.f32.gmra.mrb[168].mxu0 %v4544_v13 }
 0xab7   :  { %7329 = vmatprep.mubr.f32.mxu0 %v4545_v10 }
 0xaba   :  { %7330 = vmatmul.mubr.f32.gmra.mrb[170].mxu0 %v4546_v59 }
 0xabb   :  { %7332 = vmatprep.mubr.f32.mxu0 %v4547_v20 }
 0xabe   :  { %7333 = vmatmul.mubr.f32.gmra.mrb[172].mxu0 %v4548_v58 }
 0xabf   :  { %7335 = vmatprep.mubr.f32.mxu0 %v4549_v31 }
 0xac2   :  { %7336 = vmatmul.mubr.f32.gmra.mrb[174].mxu0 %v4550_v9 }
 0xac3   :  { %7338 = vmatprep.mubr.f32.mxu0 %v4551_v43 }
 0xac6   :  { %7339 = vmatmul.mubr.f32.gmra.mrb[176].mxu0 %v4552_v62 }
 0xac7   :  { %7341 = vmatprep.mubr.f32.mxu0 %v4553_v47 }
 0xaca   :  { %7342 = vmatmul.mubr.f32.gmra.mrb[178].mxu0 %v4554_v53 }
 0xacb   :  { %7344 = vmatprep.mubr.f32.mxu0 %v4555_v22 }
 0xace   :  { %7345 = vmatmul.mubr.f32.gmra.mrb[180].mxu0 %v4556_v21 }
 0xacf   :  { %7347 = vmatprep.mubr.f32.mxu0 %v4557_v25 }
 0xad2   :  { %7348 = vmatmul.mubr.f32.gmra.mrb[182].mxu0 %v4558_v30 }
 0xad3   :  { %7350 = vmatprep.mubr.f32.mxu0 %v4559_v26 }
 0xad6   :  { %7351 = vmatmul.mubr.f32.gmra.mrb[184].mxu0 %v4560_v29 }
 0xad7   :  { %7353 = vmatprep.mubr.f32.mxu0 %v4561_v7 }
 0xada   :  { %7354 = vmatmul.mubr.f32.gmra.mrb[186].mxu0 %v4562_v52 }
 0xadb   :  { %7356 = vmatprep.mubr.f32.mxu0 %v4563_v63 }
 0xade   :  { %7357 = vmatmul.mubr.f32.gmra.mrb[188].mxu0 %v4564_v60 }
 0xadf   :  { %7359 = vmatprep.mubr.f32.mxu0 %v4565_v24 }
 0xae2   :  { %7360 = vmatmul.mubr.f32.gmra.mrb[190].mxu0 %v4566_v1 }
 0xae3   :  { %7362 = vmatprep.mubr.f32.mxu0 %v4567_v16 }
 0xae6   :  { %7363 = vmatmul.mubr.f32.gmra.mrb[192].mxu0 %v4568_v61 }
 0xae7   :  { %7365 = vmatprep.mubr.f32.mxu0 %v4569_v6 }
 0xaea   :  { %7366 = vmatmul.mubr.f32.gmra.mrb[194].mxu0 %v4570_v15 }
 0xaeb   :  { %7368 = vmatprep.mubr.f32.mxu0 %v4571_v55 }
 0xaee   :  { %7369 = vmatmul.mubr.f32.gmra.mrb[196].mxu0 %v4572_v8 }
 0xaef   :  { %7371 = vmatprep.mubr.f32.mxu0 %v4573_v57 }
 0xaf2   :  { %7372 = vmatmul.mubr.f32.gmra.mrb[198].mxu0 %v4574_v11 }
 0xaf3   :  { %7374 = vmatprep.mubr.f32.mxu0 %v4575_v32 }
 0xaf6   :  { %7375 = vmatmul.mubr.f32.gmra.mrb[200].mxu0 %v4576_v40 }
 0xaf7   :  { %7377 = vmatprep.mubr.f32.mxu0 %v4577_v2 }
 0xafa   :  { %7378 = vmatmul.mubr.f32.gmra.mrb[202].mxu0 %v4578_v51 }
 0xafb   :  { %7380 = vmatprep.mubr.f32.mxu0 %v4579_v23  ;;  %v5037_v23 = vld [vmem:[%s12222_s13 + $0x18] sm:$0xff] }
 0xafe   :  { %7381 = vmatmul.mubr.f32.gmra.mrb[204].mxu0 %v4580_v35 }
 0xaff   :  { %7383 = vmatprep.mubr.f32.mxu0 %v4581_v12  ;;  %v5036_v12 = vld [vmem:[%s12222_s13 + $0x10] sm:$0xff] }
 0xb02   :  { %7384 = vmatmul.mubr.f32.gmra.mrb[206].mxu0 %v4582_v45 }
 0xb03   :  { %7386 = vmatprep.mubr.f32.mxu0 %v4583_v46 }
 0xb06   :  { %7387 = vmatmul.mubr.f32.gmra.mrb[208].mxu0 %v4584_v42 }
 0xb07   :  { %7389 = vmatprep.mubr.f32.mxu0 %v4585_v41 }
 0xb0a   :  { %7390 = vmatmul.mubr.f32.gmra.mrb[210].mxu0 %v4586_v50 }
 0xb0b   :  { %7392 = vmatprep.mubr.f32.mxu0 %v4587_v14 }
 0xb0e   :  { %7393 = vmatmul.mubr.f32.gmra.mrb[212].mxu0 %v4588_v5 }
 0xb0f   :  { %7395 = vmatprep.mubr.f32.mxu0 %v4589_v49 }
 0xb12   :  { %7396 = vmatmul.mubr.f32.gmra.mrb[214].mxu0 %v4590_v48 }
 0xb13   :  { %7398 = vmatprep.mubr.f32.mxu0 %v4591_v19 }
 0xb16   :  { %7399 = vmatmul.mubr.f32.gmra.mrb[216].mxu0 %v4592_v37 }
 0xb17   :  { %7401 = vmatprep.mubr.f32.mxu0 %v4593_v39 }
 0xb1a   :  { %7402 = vmatmul.mubr.f32.gmra.mrb[218].mxu0 %v4594_v4 }
 0xb1b   :  { %7404 = vmatprep.mubr.f32.mxu0 %v4595_v27 }
 0xb1e   :  { %7405 = vmatmul.mubr.f32.gmra.mrb[220].mxu0 %v4596_v56 }
 0xb1f   :  { %7407 = vmatprep.mubr.f32.mxu0 %v4597_v18 }
 0xb22   :  { %7408 = vmatmul.mubr.f32.gmra.mrb[222].mxu0 %v4598_v38 }
 0xb23   :  { %7410 = vmatprep.mubr.f32.mxu0 %v4599_v3 }
 0xb26   :  { %7411 = vmatmul.mubr.f32.gmra.mrb[224].mxu0 %v4600_v34 }
 0xb27   :  { %7421 = vmatprep.mubr.msk.f32.mxu0 %vm8056_vm7, %v8057_v28 }
 0xb7d   :  { %v11744_v33 = vpop.f32.mrb[162].mxu0 }
 0xb7e   :  { %v11746_v54 = vpop.f32.mrb[163].mxu0 }
 0xb81   :  { %v11748_v13 = vpop.f32.mrb[164].mxu0 }
 0xb82   :  { %v11750_v10 = vpop.f32.mrb[165].mxu0 }
 0xb85   :  { %v11752_v59 = vpop.f32.mrb[166].mxu0 }
 0xb86   :  { %v11754_v20 = vpop.f32.mrb[167].mxu0 }
 0xb89   :  { %v11756_v58 = vpop.f32.mrb[168].mxu0 }
 0xb8a   :  { %v11758_v31 = vpop.f32.mrb[169].mxu0 }
 0xb8d   :  { %v11760_v9 = vpop.f32.mrb[170].mxu0 }
 0xb8e   :  { %v11762_v43 = vpop.f32.mrb[171].mxu0 }
 0xb91   :  { %v11764_v62 = vpop.f32.mrb[172].mxu0 }
 0xb92   :  { %v11766_v47 = vpop.f32.mrb[173].mxu0 }
 0xb95   :  { %v11768_v53 = vpop.f32.mrb[174].mxu0 }
 0xb96   :  { %v11770_v22 = vpop.f32.mrb[175].mxu0 }
 0xb99   :  { %v11772_v21 = vpop.f32.mrb[176].mxu0 }
 0xb9a   :  { %v11774_v25 = vpop.f32.mrb[177].mxu0 }
 0xb9d   :  { %v7343_v30 = vpop.f32.mrb[178].mxu0 }
 0xb9e   :  { %v4987_v26 = vmax.f32 %v11744_v33, %v7343_v30  ;;  %v4747_v29 = vpop.f32.mrb[179].mxu0  ;;  %v5035_v30 = vld [vmem:[%s12222_s13 + $0x8] sm:$0xff] }
 0xb9f   :  { %v4986_v7 = vmax.f32 %v11746_v54, %v4747_v29 }
 0xba1   :  { %v11778_v52 = vpop.f32.mrb[180].mxu0 }
 0xba2   :  { %v4989_v63 = vmax.f32 %v11748_v13, %v11778_v52  ;;  %v11782_v60 = vpop.f32.mrb[181].mxu0  ;;  %v5034_v13 = vld [vmem:[%s12222_s13] sm:$0xff] }
 0xba3   :  { %v4988_v24 = vmax.f32 %v11750_v10, %v11782_v60  ;;  %v7800_v41 = vpack.c.bf16 %v5035_v30, %v5034_v13  ;;  %v5045_v10 = vld [vmem:[%s12222_s13 + $0x58] sm:$0xff] }
 0xba5   :  { %v11786_v1 = vpop.f32.mrb[182].mxu0 }
 0xba6   :  { %v4991_v16 = vmax.f32 %v11752_v59, %v11786_v1  ;;  %v11790_v61 = vpop.f32.mrb[183].mxu0 }
 0xba7   :  { %v12400_v60 = vmax.f32 %v11754_v20, %v11790_v61  ;;  %v5046_v20 = vld [vmem:[%s12222_s13 + $0x60] sm:$0xff]  ;;  %v5047_v61 = vld [vmem:[%s12222_s13 + $0x68] sm:$0xff] }
 0xba9   :  { %v11794_v15 = vpop.f32.mrb[184].mxu0 }
 0xbaa   :  { %v11798_v8 = vpop.f32.mrb[185].mxu0 }
 0xbad   :  { %v11802_v11 = vpop.f32.mrb[186].mxu0 }
 0xbae   :  { %v11806_v40 = vpop.f32.mrb[187].mxu0 }
 0xbb1   :  { %v11810_v51 = vpop.f32.mrb[188].mxu0 }
 0xbb2   :  { %v11814_v35 = vpop.f32.mrb[189].mxu0 }
 0xbb5   :  { %v11818_v45 = vpop.f32.mrb[190].mxu0 }
 0xbb6   :  { %v11822_v42 = vpop.f32.mrb[191].mxu0 }
 0xbb9   :  { %v11826_v50 = vpop.f32.mrb[192].mxu0 }
 0xbba   :  { %v11830_v5 = vpop.f32.mrb[193].mxu0 }
 0xbbd   :  { %v7367_v48 = vpop.f32.mrb[194].mxu0 }
 0xbbe   :  { %v4827_v19 = vpop.f32.mrb[195].mxu0 }
 0xbc1   :  { %v7370_v37 = vpop.f32.mrb[196].mxu0 }
 0xbc2   :  { %v4837_v39 = vpop.f32.mrb[197].mxu0 }
 0xbc5   :  { %v7373_v4 = vpop.f32.mrb[198].mxu0 }
 0xbc6   :  { %v4847_v27 = vpop.f32.mrb[199].mxu0 }
 0xbc9   :  { %v7376_v56 = vpop.f32.mrb[200].mxu0 }
 0xbca   :  { %v4857_v18 = vpop.f32.mrb[201].mxu0 }
 0xbcd   :  { %v11834_v38 = vpop.f32.mrb[202].mxu0 }
 0xbce   :  { %v11836_v3 = vpop.f32.mrb[203].mxu0 }
 0xbd1   :  { %v11838_v34 = vpop.f32.mrb[204].mxu0 }
 0xbd2   :  { %v11840_v17 = vpop.f32.mrb[205].mxu0 }
 0xbd5   :  { %v11842_v0 = vpop.f32.mrb[206].mxu0 }
 0xbd6   :  { %v11844_v36 = vpop.f32.mrb[207].mxu0 }
 0xbd9   :  { %v11846_v33 = vpop.f32.mrb[208].mxu0 }
 0xbda   :  { %v11848_v54 = vpop.f32.mrb[209].mxu0 }
 0xbdd   :  { %v7391_v29 = vpop.f32.mrb[210].mxu0 }
 0xbde   :  { %v5003_v52 = vmax.f32 %v7367_v48, %v7391_v29  ;;  %v4907_v49 = vpop.f32.mrb[211].mxu0  ;;  %v7803_v48 = vpack.c.bf16 %v5037_v23, %v5036_v12 }
 0xbdf   :  { %v5002_v14 = vmax.f32 %v4827_v19, %v4907_v49  ;;  %v5042_v49 = vld [vmem:[%s12222_s13 + $0x40] sm:$0xff]  ;;  %v12401_v19 = vmax.f32 %v11756_v58, %v11794_v15 }
 0xbe0   :  { %v5019_v46 = vmax.f32 %v4987_v26, %v5003_v52 }
 0xbe1   :  { %v5018_v2 = vmax.f32 %v4986_v7, %v5002_v14  ;;  %v7394_v32 = vpop.f32.mrb[212].mxu0  ;;  %v5043_v7 = vld [vmem:[%s12222_s13 + $0x48] sm:$0xff] }
 0xbe2   :  { %v5005_v57 = vmax.f32 %v7370_v37, %v7394_v32  ;;  %v4917_v55 = vpop.f32.mrb[213].mxu0  ;;  %7422 = vmatmul.mubr.msk.f32.vlgmr.msra.gmra.mrb[226].mxu0 %vm1722_vm1, %v5019_v46 }
 0xbe3   :  { %v5004_v6 = vmax.f32 %v4837_v39, %v4917_v55  ;;  %7801 = vmatpush3.bf16.msra.mxu0 %v7800_v41  ;;  %7432 = vmatprep.mubr.msk.f32.mxu0 %vm8056_vm7, %v8057_v28  ;;  %v5044_v41 = vld [vmem:[%s12222_s13 + $0x50] sm:$0xff] }
 0xbe4   :  { %v11865_v26 = vmax.f32 %v4989_v63, %v5005_v57  ;;  %7802 = vmatprep.subr.bf16.mxu0 %v12363_v44  ;;  %v7806_v63 = vpack.c.bf16 %v5043_v7, %v5042_v49 }
 0xbe5   :  { %v5020_v55 = vmax.f32 %v4988_v24, %v5004_v6  ;;  %v7397_v32 = vpop.f32.mrb[214].mxu0 }
 0xbe6   :  { %v5007_v23 = vmax.f32 %v7373_v4, %v7397_v32  ;;  %v4927_v12 = vpop.f32.mrb[215].mxu0 }
 0xbe7   :  { %v5006_v46 = vmax.f32 %v4847_v27, %v4927_v12  ;;  %7804 = vmatpush3.bf16.msra.mxu0 %v7803_v48  ;;  %v12405_v48 = vmax.f32 %v11764_v62, %v11810_v51 }
 0xbe8   :  { %v11880_v57 = vmax.f32 %v4991_v16, %v5007_v23  ;;  %7805 = vmatprep.subr.bf16.mxu0 %v12363_v44  ;;  %v7809_v16 = vpack.c.bf16 %v5045_v10, %v5044_v41  ;;  %v12407_v23 = vmax.f32 %v11768_v53, %v11818_v45  ;;  %v12409_v10 = vmax.f32 %v11772_v21, %v11826_v50  ;;  %v5056_v21 = vld [vmem:[%s12222_s13 + $0xb0] sm:$0xff]  ;;  %v5057_v50 = vld [vmem:[%s12222_s13 + $0xb8] sm:$0xff] }
 0xbe9   :  { %v11892_v24 = vmax.f32 %v12400_v60, %v5006_v46  ;;  %v7400_v6 = vpop.f32.mrb[216].mxu0 }
 0xbea   :  { %v5009_v14 = vmax.f32 %v7376_v56, %v7400_v6  ;;  %7433 = vmatmul.mubr.msk.f32.vlgmr.msra.gmra.mrb[228].mxu0 %vm1722_vm1, %v5018_v2  ;;  %v4937_v59 = vpop.f32.mrb[217].mxu0  ;;  %v12402_v2 = vmax.f32 %v11758_v31, %v11798_v8  ;;  %v7812_v56 = vpack.c.bf16 %v5047_v61, %v5046_v20  ;;  %v5048_v31 = vld [vmem:[%s12222_s13 + $0x70] sm:$0xff]  ;;  %v5049_v8 = vld [vmem:[%s12222_s13 + $0x78] sm:$0xff]  ;;  %v7827_v6 = vpack.c.bf16 %v5057_v50, %v5056_v21 }
 0xbeb   :  { %v5008_v1 = vmax.f32 %v4857_v18, %v4937_v59  ;;  %7807 = vmatpush3.bf16.msra.mxu0 %v7806_v63  ;;  %7443 = vmatprep.mubr.msk.f32.mxu0 %vm8056_vm7, %v8057_v28  ;;  %v12403_v18 = vmax.f32 %v11760_v9, %v11802_v11  ;;  %v7815_v52 = vpack.c.bf16 %v5049_v8, %v5048_v31  ;;  %v5061_v59 = vld [vmem:[%s12222_s13 + $0xd8] sm:$0xff]  ;;  %v5071_v31 = vld [vmem:[%s12222_s13 + $0x128] sm:$0xff] }
 0xbec   :  { %v11900_v37 = vmax.f32 %v12401_v19, %v5009_v14  ;;  %7808 = vmatprep.subr.bf16.mxu0 %v12363_v44  ;;  %v5063_v19 = vld [vmem:[%s12222_s13 + $0xe8] sm:$0xff]  ;;  %v5065_v61 = vld [vmem:[%s12222_s13 + $0xf8] sm:$0xff] }
 0xbed   :  { %v11912_v39 = vmax.f32 %v12402_v2, %v5008_v1  ;;  %v7403_v4 = vpop.f32.mrb[218].mxu0  ;;  %v5097_v50 = vld [vmem:[%s12222_s13 + $0x1f8] sm:$0xff] }
 0xbee   :  { %v5011_v58 = vmax.f32 %v11834_v38, %v7403_v4  ;;  %v4947_v15 = vpop.f32.mrb[219].mxu0  ;;  %v12404_v38 = vmax.f32 %v11762_v43, %v11806_v40  ;;  %v5050_v43 = vld [vmem:[%s12222_s13 + $0x80] sm:$0xff]  ;;  %v5051_v40 = vld [vmem:[%s12222_s13 + $0x88] sm:$0xff] }
 0xbef   :  { %v5010_v27 = vmax.f32 %v11836_v3, %v4947_v15  ;;  %7810 = vmatpush3.bf16.msra.mxu0 %v7809_v16  ;;  %v7818_v32 = vpack.c.bf16 %v5051_v40, %v5050_v43  ;;  %v5062_v16 = vld [vmem:[%s12222_s13 + $0xe0] sm:$0xff]  ;;  %v5079_v40 = vld [vmem:[%s12222_s13 + $0x168] sm:$0xff] }
 0xbf0   :  { %v11919_v13 = vmax.f32 %v12403_v18, %v5011_v58  ;;  %7811 = vmatprep.subr.bf16.mxu0 %v12363_v44  ;;  %v7836_v20 = vpack.c.bf16 %v5063_v19, %v5062_v16  ;;  %v5066_v4 = vld [vmem:[%s12222_s13 + $0x100] sm:$0xff]  ;;  %v5067_v58 = vld [vmem:[%s12222_s13 + $0x108] sm:$0xff] }
 0xbf1   :  { %v11931_v3 = vmax.f32 %v12404_v38, %v5010_v27  ;;  %v7406_v30 = vpop.f32.mrb[220].mxu0  ;;  %v7842_v15 = vpack.c.bf16 %v5067_v58, %v5066_v4  ;;  %v5069_v27 = vld [vmem:[%s12222_s13 + $0x118] sm:$0xff]  ;;  %v5070_v18 = vld [vmem:[%s12222_s13 + $0x120] sm:$0xff] }
 0xbf2   :  { %v5013_v9 = vmax.f32 %v11838_v34, %v7406_v30  ;;  %7444 = vmatmul.mubr.msk.f32.vlgmr.msra.gmra.mrb[230].mxu0 %vm1722_vm1, %v5020_v55  ;;  %v4957_v11 = vpop.f32.mrb[221].mxu0  ;;  %v12406_v34 = vmax.f32 %v11766_v47, %v11814_v35  ;;  %v5052_v47 = vld [vmem:[%s12222_s13 + $0x90] sm:$0xff]  ;;  %v5053_v35 = vld [vmem:[%s12222_s13 + $0x98] sm:$0xff]  ;;  %v7848_v8 = vpack.c.bf16 %v5071_v31, %v5070_v18  ;;  %v5078_v43 = vld [vmem:[%s12222_s13 + $0x160] sm:$0xff] }
 0xbf3   :  { %v5012_v29 = vmax.f32 %v11840_v17, %v4957_v11  ;;  %7813 = vmatpush3.bf16.msra.mxu0 %v7812_v56  ;;  %7454 = vmatprep.mubr.msk.f32.mxu0 %vm8056_vm7, %v8057_v28  ;;  %v7821_v41 = vpack.c.bf16 %v5053_v35, %v5052_v47  ;;  %v5073_v38 = vld [vmem:[%s12222_s13 + $0x138] sm:$0xff]  ;;  %v5075_v11 = vld [vmem:[%s12222_s13 + $0x148] sm:$0xff]  ;;  %v5086_v35 = vld [vmem:[%s12222_s13 + $0x1a0] sm:$0xff] }
 0xbf4   :  { %v11941_v49 = vmax.f32 %v12405_v48, %v5013_v9  ;;  %7814 = vmatprep.subr.bf16.mxu0 %v12363_v44  ;;  %v5074_v9 = vld [vmem:[%s12222_s13 + $0x140] sm:$0xff] }
 0xbf5   :  { %v11953_v17 = vmax.f32 %v12406_v34, %v5012_v29  ;;  %v7409_v7 = vpop.f32.mrb[222].mxu0  ;;  %v7854_v29 = vpack.c.bf16 %v5075_v11, %v5074_v9  ;;  %v7860_v34 = vpack.c.bf16 %v5079_v40, %v5078_v43 }
 0xbf6   :  { %v5015_v62 = vmax.f32 %v11842_v0, %v7409_v7  ;;  %v4967_v51 = vpop.f32.mrb[223].mxu0  ;;  %v12408_v0 = vmax.f32 %v11770_v22, %v11822_v42  ;;  %v5054_v42 = vld [vmem:[%s12222_s13 + $0xa0] sm:$0xff]  ;;  %v5081_v7 = vld [vmem:[%s12222_s13 + $0x178] sm:$0xff] }
 0xbf7   :  { %v5014_v55 = vmax.f32 %v11844_v36, %v4967_v51  ;;  %7816 = vmatpush3.bf16.msra.mxu0 %v7815_v52  ;;  %v5077_v52 = vld [vmem:[%s12222_s13 + $0x158] sm:$0xff]  ;;  %v5082_v51 = vld [vmem:[%s12222_s13 + $0x180] sm:$0xff] }
 0xbf8   :  { %v11960_v12 = vmax.f32 %v12407_v23, %v5015_v62  ;;  %7817 = vmatprep.subr.bf16.mxu0 %v12363_v44  ;;  %v5085_v23 = vld [vmem:[%s12222_s13 + $0x198] sm:$0xff] }
 0xbf9   :  { %v11972_v36 = vmax.f32 %v12408_v0, %v5014_v55  ;;  %v7412_v46 = vpop.f32.mrb[224].mxu0  ;;  %v5083_v55 = vld [vmem:[%s12222_s13 + $0x188] sm:$0xff] }
 0xbfa   :  { %v5017_v53 = vmax.f32 %v11846_v33, %v7412_v46  ;;  %7455 = vmatmul.mubr.msk.f32.vlgmr.msra.gmra.mrb[232].mxu0 %vm1722_vm1, %v11865_v26  ;;  %v4977_v45 = vpop.f32.mrb[225].mxu0  ;;  %v5055_v33 = vld [vmem:[%s12222_s13 + $0xa8] sm:$0xff] }
 0xbfb   :  { %v5016_v63 = vmax.f32 %v11848_v54, %v4977_v45  ;;  %7819 = vmatpush3.bf16.msra.mxu0 %v7818_v32  ;;  %7465 = vmatprep.mubr.msk.f32.mxu0 %vm8056_vm7, %v8057_v28  ;;  %v12410_v54 = vmax.f32 %v11774_v25, %v11830_v5  ;;  %v7824_v60 = vpack.c.bf16 %v5055_v33, %v5054_v42  ;;  %v5058_v25 = vld [vmem:[%s12222_s13 + $0xc0] sm:$0xff]  ;;  %v5059_v5 = vld [vmem:[%s12222_s13 + $0xc8] sm:$0xff]  ;;  %v5093_v42 = vld [vmem:[%s12222_s13 + $0x1d8] sm:$0xff] }
 0xbfc   :  { %v11983_v22 = vmax.f32 %v12409_v10, %v5017_v53  ;;  %7820 = vmatprep.subr.bf16.mxu0 %v12363_v44  ;;  %v7830_v14 = vpack.c.bf16 %v5059_v5, %v5058_v25  ;;  %v7866_v32 = vpack.c.bf16 %v5083_v55, %v5082_v51  ;;  %v5087_v0 = vld [vmem:[%s12222_s13 + $0x1a8] sm:$0xff]  ;;  %v5089_v53 = vld [vmem:[%s12222_s13 + $0x1b8] sm:$0xff] }
 0xbfd   :  { %v11995_v26 = vmax.f32 %v12410_v54, %v5016_v63  ;;  %v7872_v46 = vpack.c.bf16 %v5087_v0, %v5086_v35  ;;  %v5090_v63 = vld [vmem:[%s12222_s13 + $0x1c0] sm:$0xff] }
 0xbfe   :  { %v5094_v54 = vld [vmem:[%s12222_s13 + $0x1e0] sm:$0xff] }
 0xbff   :  { %7822 = vmatpush3.bf16.msra.mxu0 %v7821_v41  ;;  %v5091_v41 = vld [vmem:[%s12222_s13 + $0x1c8] sm:$0xff] }
 0xc00   :  { %7823 = vmatprep.subr.bf16.mxu0 %v12363_v44  ;;  %v7878_v10 = vpack.c.bf16 %v5091_v41, %v5090_v63 }
 0xc02   :  { %7466 = vmatmul.mubr.msk.f32.vlgmr.msra.gmra.mrb[234].mxu0 %vm1722_vm1, %v11892_v24  ;;  %v5060_v24 = vld [vmem:[%s12222_s13 + $0xd0] sm:$0xff] }
 0xc03   :  { %7825 = vmatpush3.bf16.msra.mxu0 %v7824_v60  ;;  %7476 = vmatprep.mubr.msk.f32.mxu0 %vm8056_vm7, %v8057_v28  ;;  %v7833_v1 = vpack.c.bf16 %v5061_v59, %v5060_v24  ;;  %v5095_v60 = vld [vmem:[%s12222_s13 + $0x1e8] sm:$0xff] }
 0xc04   :  { %7826 = vmatprep.subr.bf16.mxu0 %v12363_v44  ;;  %v7884_v21 = vpack.c.bf16 %v5095_v60, %v5094_v54 }
 0xc07   :  { %7828 = vmatpush3.bf16.msra.mxu0 %v7827_v6 }
 0xc08   :  { %7829 = vmatprep.subr.bf16.mxu0 %v12363_v44 }
 0xc0a   :  { %7477 = vmatmul.mubr.msk.f32.vlgmr.msra.gmra.mrb[236].mxu0 %vm1722_vm1, %v11880_v57  ;;  %v5064_v57 = vld [vmem:[%s12222_s13 + $0xf0] sm:$0xff] }
 0xc0b   :  { %7831 = vmatpush3.bf16.msra.mxu0 %v7830_v14  ;;  %7487 = vmatprep.mubr.msk.f32.mxu0 %vm8056_vm7, %v8057_v28  ;;  %v7839_v2 = vpack.c.bf16 %v5065_v61, %v5064_v57 }
 0xc0c   :  { %7832 = vmatprep.subr.bf16.mxu0 %v12363_v44 }
 0xc0f   :  { %7834 = vmatpush3.bf16.msra.mxu0 %v7833_v1 }
 0xc10   :  { %7835 = vmatprep.subr.bf16.mxu0 %v12363_v44 }
 0xc12   :  { %7488 = vmatmul.mubr.msk.f32.vlgmr.msra.gmra.mrb[238].mxu0 %vm1722_vm1, %v11912_v39  ;;  %v5068_v39 = vld [vmem:[%s12222_s13 + $0x110] sm:$0xff] }
 0xc13   :  { %7837 = vmatpush3.bf16.msra.mxu0 %v7836_v20  ;;  %7498 = vmatprep.mubr.msk.f32.mxu0 %vm8056_vm7, %v8057_v28  ;;  %v7845_v56 = vpack.c.bf16 %v5069_v27, %v5068_v39 }
 0xc14   :  { %7838 = vmatprep.subr.bf16.mxu0 %v12363_v44 }
 0xc17   :  { %7840 = vmatpush3.bf16.msra.mxu0 %v7839_v2 }
 0xc18   :  { %7841 = vmatprep.subr.bf16.mxu0 %v12363_v44 }
 0xc1a   :  { %7499 = vmatmul.mubr.msk.f32.vlgmr.msra.gmra.mrb[240].mxu0 %vm1722_vm1, %v11900_v37  ;;  %v5072_v37 = vld [vmem:[%s12222_s13 + $0x130] sm:$0xff] }
 0xc1b   :  { %7843 = vmatpush3.bf16.msra.mxu0 %v7842_v15  ;;  %7509 = vmatprep.mubr.msk.f32.mxu0 %vm8056_vm7, %v8057_v28  ;;  %v7851_v30 = vpack.c.bf16 %v5073_v38, %v5072_v37 }
 0xc1c   :  { %7844 = vmatprep.subr.bf16.mxu0 %v12363_v44 }
 0xc1f   :  { %7846 = vmatpush3.bf16.msra.mxu0 %v7845_v56 }
 0xc20   :  { %7847 = vmatprep.subr.bf16.mxu0 %v12363_v44 }
 0xc22   :  { %7510 = vmatmul.mubr.msk.f32.vlgmr.msra.gmra.mrb[242].mxu0 %vm1722_vm1, %v11931_v3  ;;  %v5076_v3 = vld [vmem:[%s12222_s13 + $0x150] sm:$0xff] }
 0xc23   :  { %7849 = vmatpush3.bf16.msra.mxu0 %v7848_v8  ;;  %7520 = vmatprep.mubr.msk.f32.mxu0 %vm8056_vm7, %v8057_v28  ;;  %v7857_v48 = vpack.c.bf16 %v5077_v52, %v5076_v3 }
 0xc24   :  { %7850 = vmatprep.subr.bf16.mxu0 %v12363_v44 }
 0xc27   :  { %7852 = vmatpush3.bf16.msra.mxu0 %v7851_v30 }
 0xc28   :  { %7853 = vmatprep.subr.bf16.mxu0 %v12363_v44 }
 0xc2a   :  { %7521 = vmatmul.mubr.msk.f32.vlgmr.msra.gmra.mrb[244].mxu0 %vm1722_vm1, %v11919_v13  ;;  %v5080_v13 = vld [vmem:[%s12222_s13 + $0x170] sm:$0xff] }
 0xc2b   :  { %7855 = vmatpush3.bf16.msra.mxu0 %v7854_v29  ;;  %7531 = vmatprep.mubr.msk.f32.mxu0 %vm8056_vm7, %v8057_v28  ;;  %v7863_v62 = vpack.c.bf16 %v5081_v7, %v5080_v13 }
 0xc2c   :  { %7856 = vmatprep.subr.bf16.mxu0 %v12363_v44 }
 0xc2f   :  { %7858 = vmatpush3.bf16.msra.mxu0 %v7857_v48 }
 0xc30   :  { %7859 = vmatprep.subr.bf16.mxu0 %v12363_v44 }
 0xc32   :  { %7532 = vmatmul.mubr.msk.f32.vlgmr.msra.gmra.mrb[246].mxu0 %vm1722_vm1, %v11953_v17  ;;  %v5084_v17 = vld [vmem:[%s12222_s13 + $0x190] sm:$0xff] }
 0xc33   :  { %7861 = vmatpush3.bf16.msra.mxu0 %v7860_v34  ;;  %7542 = vmatprep.mubr.msk.f32.mxu0 %vm8056_vm7, %v8057_v28  ;;  %v7869_v47 = vpack.c.bf16 %v5085_v23, %v5084_v17 }
 0xc34   :  { %7862 = vmatprep.subr.bf16.mxu0 %v12363_v44 }
 0xc37   :  { %7864 = vmatpush3.bf16.msra.mxu0 %v7863_v62 }
 0xc38   :  { %7865 = vmatprep.subr.bf16.mxu0 %v12363_v44 }
 0xc3a   :  { %7543 = vmatmul.mubr.msk.f32.vlgmr.msra.gmra.mrb[248].mxu0 %vm1722_vm1, %v11941_v49  ;;  %v5088_v49 = vld [vmem:[%s12222_s13 + $0x1b0] sm:$0xff] }
 0xc3b   :  { %7867 = vmatpush3.bf16.msra.mxu0 %v7866_v32  ;;  %7553 = vmatprep.mubr.msk.f32.mxu0 %vm8056_vm7, %v8057_v28  ;;  %v7875_v45 = vpack.c.bf16 %v5089_v53, %v5088_v49 }
 0xc3c   :  { %7868 = vmatprep.subr.bf16.mxu0 %v12363_v44 }
 0xc3f   :  { %7870 = vmatpush3.bf16.msra.mxu0 %v7869_v47  ;;  %v6490_v47 = vld [vmem:[%s12223_s14] ss:$0 sm:$0xff]  ;;  %s8058_s14 = smov [#allocation2]  }
 0xc40   :  { %7871 = vmatprep.subr.bf16.mxu0 %v12363_v44  ;;  %s6315_s0 = sshll.u32 %s8058_s14, 4  ;;  %s6316_s0 = int_to_ptr.vmem [resolvable:$true] %s6315_s0 }
 0xc41   :  { %s8031_s2 = scalar_lea.vmem %s6316_s0, 32  ;;  %p8036_p1 = scmp.lt.s32.totalorder %s6316_s0, %s6316_s0 }
 0xc42   :  { %7554 = vmatmul.mubr.msk.f32.vlgmr.msra.gmra.mrb[250].mxu0 %vm1722_vm1, %v11972_v36  ;;  %v5092_v36 = vld [vmem:[%s12222_s13 + $0x1d0] sm:$0xff]  ;;  %p8032_p0 = scmp.ne.s32.totalorder %s6316_s0, %s8031_s2  ;;  %p8037_p2 = scmp.lt.s32.totalorder %s8031_s2, %s8031_s2 }
 0xc43   :  { %7873 = vmatpush3.bf16.msra.mxu0 %v7872_v46  ;;  %7564 = vmatprep.mubr.msk.f32.mxu0 %vm8056_vm7, %v8057_v28  ;;  %v7881_v33 = vpack.c.bf16 %v5093_v42, %v5092_v36 }
 0xc44   :  { %7874 = vmatprep.subr.bf16.mxu0 %v12363_v44  ;;  %p8038_p3 = por %p8037_p2, %p8036_p1 }
 0xc46   :  { %p8039_p4 = pnand %p8038_p3, %p8032_p0 }
 0xc47   :  { %7876 = vmatpush3.bf16.msra.mxu0 %v7875_v45 }
 0xc48   :  { %7877 = vmatprep.subr.bf16.mxu0 %v12363_v44 }
 0xc4a   :  { %7565 = vmatmul.mubr.msk.f32.vlgmr.msra.gmra.mrb[252].mxu0 %vm1722_vm1, %v11960_v12  ;;  %v5096_v12 = vld [vmem:[%s12222_s13 + $0x1f0] sm:$0xff] }
 0xc4b   :  { %7879 = vmatpush3.bf16.msra.mxu0 %v7878_v10  ;;  %7575 = vmatprep.mubr.msk.f32.mxu0 %vm8056_vm7, %v8057_v28  ;;  %v7887_v6 = vpack.c.bf16 %v5097_v50, %v5096_v12 }
 0xc4c   :  { %7880 = vmatprep.subr.bf16.mxu0 %v12363_v44 }
 0xc4f   :  { %7882 = vmatpush3.bf16.msra.mxu0 %v7881_v33 }
 0xc50   :  { %7883 = vmatprep.subr.bf16.mxu0 %v12363_v44 }
 0xc52   :  { %7576 = vmatmul.mubr.msk.f32.vlgmr.msra.gmra.mrb[254].mxu0 %vm1722_vm1, %v11995_v26 }
 0xc53   :  { %7885 = vmatpush3.bf16.msra.mxu0 %v7884_v21  ;;  %7586 = vmatprep.mubr.msk.f32.mxu0 %vm8056_vm7, %v8057_v28 }
 0xc54   :  { %7886 = vmatprep.subr.bf16.mxu0 %v12363_v44 }
 0xc57   :  { %7888 = vmatpush3.bf16.msra.mxu0 %v7887_v6 }
 0xc5a   :  { %7587 = vmatmul.mubr.msk.f32.vlgmr.msra.gmra.mrb[0].mxu0 %vm1722_vm1, %v11983_v22  ;;  %vm6288_vm1 = vcmask 74752  }
 0xcb5   :  { %v5167_v25 = vpop.f32.mrb[226].mxu0 }
 0xcb6   :  { %v7423_v5 = vpop.f32.mrb[227].mxu0 }
 0xcbd   :  { %v5240_v14 = vpop.f32.mrb[228].mxu0 }
 0xcbe   :  { %v5241_v24 = vadd.f32 %v5240_v14, %v5167_v25  ;;  %v7434_v59 = vpop.f32.mrb[229].mxu0 }
 0xcc5   :  { %v5313_v1 = vpop.f32.mrb[230].mxu0 }
 0xcc6   :  { %v5317_v16 = vadd.f32 %v5313_v1, %v5241_v24  ;;  %v7445_v19 = vpop.f32.mrb[231].mxu0 }
 0xccd   :  { %v5387_v26 = vpop.f32.mrb[232].mxu0 }
 0xcce   :  { %v5391_v20 = vadd.f32 %v5387_v26, %v5317_v16  ;;  %v7456_v57 = vpop.f32.mrb[233].mxu0 }
 0xcd5   :  { %v5461_v61 = vpop.f32.mrb[234].mxu0 }
 0xcd6   :  { %v5465_v2 = vadd.f32 %v5461_v61, %v5391_v20  ;;  %v7467_v28 = vpop.f32.mrb[235].mxu0 }
 0xcdd   :  { %v5535_v4 = vpop.f32.mrb[236].mxu0 }
 0xcde   :  { %v5539_v44 = vadd.f32 %v5535_v4, %v5465_v2  ;;  %v7478_v58 = vpop.f32.mrb[237].mxu0 }
 0xce5   :  { %v5609_v15 = vpop.f32.mrb[238].mxu0 }
 0xce6   :  { %v5613_v39 = vadd.f32 %v5609_v15, %v5539_v44  ;;  %v7489_v22 = vpop.f32.mrb[239].mxu0 }
 0xced   :  { %v5683_v27 = vpop.f32.mrb[240].mxu0 }
 0xcee   :  { %v5687_v56 = vadd.f32 %v5683_v27, %v5613_v39  ;;  %v7500_v18 = vpop.f32.mrb[241].mxu0 }
 0xcf5   :  { %v5757_v31 = vpop.f32.mrb[242].mxu0 }
 0xcf6   :  { %v5761_v8 = vadd.f32 %v5757_v31, %v5687_v56  ;;  %v7511_v37 = vpop.f32.mrb[243].mxu0 }
 0xcfd   :  { %v5831_v38 = vpop.f32.mrb[244].mxu0 }
 0xcfe   :  { %v5835_v30 = vadd.f32 %v5831_v38, %v5761_v8  ;;  %v7522_v9 = vpop.f32.mrb[245].mxu0 }
 0xd05   :  { %v5905_v11 = vpop.f32.mrb[246].mxu0 }
 0xd06   :  { %v5909_v29 = vadd.f32 %v5905_v11, %v5835_v30  ;;  %v7533_v3 = vpop.f32.mrb[247].mxu0 }
 0xd0d   :  { %v5979_v52 = vpop.f32.mrb[248].mxu0 }
 0xd0e   :  { %v5983_v48 = vadd.f32 %v5979_v52, %v5909_v29  ;;  %v7544_v43 = vpop.f32.mrb[249].mxu0 }
 0xd15   :  { %v6053_v40 = vpop.f32.mrb[250].mxu0 }
 0xd16   :  { %v6057_v34 = vadd.f32 %v6053_v40, %v5983_v48  ;;  %v7555_v13 = vpop.f32.mrb[251].mxu0 }
 0xd1d   :  { %v6127_v7 = vpop.f32.mrb[252].mxu0 }
 0xd1e   :  { %v6131_v62 = vadd.f32 %v6127_v7, %v6057_v34  ;;  %v7566_v51 = vpop.f32.mrb[253].mxu0 }
 0xd25   :  { %v6201_v55 = vpop.f32.mrb[254].mxu0 }
 0xd26   :  { %v6205_v32 = vadd.f32 %v6201_v55, %v6131_v62  ;;  %v7577_v17 = vpop.f32.mrb[255].mxu0 }
 0xd2d   :  { %v6275_v23 = vpop.f32.mrb[0].mxu0 }
 0xd2e   :  { %v6279_v35 = vadd.f32 %v6275_v23, %v6205_v32  ;;  %v7588_v0 = vpop.f32.mrb[1].mxu0 }
 0xd30   :  { %v6287_v46 = vadd.f32 %v6490_v47, %v6279_v35 }
 0xd32   :  { %v6289_v49 = vsel %vm6288_vm1, %v6287_v46, -inf }
 0xd33   :  { %v6290_v53 = vrot.slane %v6289_v49, 4 }
 0xd35   :  { %v6291_v45 = vmax.f32 %v6289_v49, %v6290_v53 }
 0xd37   :  { %v6292_v63 = vrot.slane %v6291_v45, 2 }
 0xd39   :  { %v6293_v41 = vmax.f32 %v6291_v45, %v6292_v63 }
 0xd3b   :  { %v6294_v10 = vrot.slane %v6293_v41, 1 }
 0xd3d   :  { %v6295_v36 = vmax.f32 %v6293_v41, %v6294_v10 }
 0xd3f   :  { %v6296_v42 = vsub.f32 %v6287_v46, %v6295_v36 }
 0xd41   :  { %v6297_v33 = vmul.f32 1.442695, %v6296_v42 }
 0xd43   :  { %8027 = vpow2.f32 %v6297_v33 }
 0xd4d   :  { %v8028_v54 = vpop.eup %8027 }
 0xd4e   :  { %v6299_v60 = vsel %vm6288_vm1, %v8028_v54, 0.0 }
 0xd4f   :  { %v6300_v21 = vrot.slane %v6299_v60, 4 }
 0xd51   :  { %v6301_v12 = vadd.f32 %v6300_v21, %v6299_v60 }
 0xd53   :  { %v6302_v50 = vrot.slane %v6301_v12, 2 }
 0xd55   :  { %v6303_v6 = vadd.f32 %v6302_v50, %v6301_v12 }
 0xd57   :  { %v6304_v25 = vrot.slane %v6303_v6, 1 }
 0xd59   :  { %v6305_v5 = vadd.f32 %v6304_v25, %v6303_v6 }
 0xd5b   :  { %8029 = vrcp.f32 %v6305_v5 }
 0xd65   :  { %v8030_v14 = vpop.eup %8029 }
 0xd66   :  { %v6307_v24 = vmul.f32 %v8030_v14, %v8028_v54 }
 0xd68   :  { %6308 = vst.msk [vmem:[#allocation2] sm:$0x3] %vm6288_vm1, %v6307_v24 }
 0xd69   :  { %8042 = shalt.err (!%p8039_p4)
}
 0xd6a   :  { %s8043_s3 = scalar_lea.hbm %s12224_s15, 32 }
 0xd6b   :  { %p8044_p5 = scmp.ne.s32.totalorder %s12224_s15, %s8043_s3  ;;  %p8047_p6 = scmp.lt.u32.totalorder %s8043_s3, %s12224_s15 }
 0xd6d   :  { %p8049_p7 = pnand %p8047_p6, %p8044_p5 }
 0xd6f   :  { %8052 = shalt.err (!%p8049_p7)
}
 0xd70   :  { %6318 = dma.vmem_to_hbm [thread:$0]  %s6316_s0, 32, %s12224_s15, [#allocation3]  }
 0xd71   :  { %8053 = dma.done.wait [#allocation3], 32  }
 0xd72   :  { %8054 = vsyncadd [#allocation3], 4294967264 }
 0xd73   :  { %6322 = vsyncpa [#allocation3], 1 }

</bundles_post_ra>
